<compile_context>
chip_gen: v6e
topology: v6e:2x2x1
jax: 0.10.0
libtpu: 0.0.40
codegen_flags: <defaults>
</compile_context>

<pallas_src>
import functools

import jax
import jax.numpy as jnp
from jax.experimental import pallas as pl
from jax.experimental.pallas import tpu as pltpu


def _round_up(x, m):
    return ((x + m - 1) // m) * m


# -----------------------------------------------------------------------------
# Fused DownConvBlock kernel: one batch image per grid step.
# -----------------------------------------------------------------------------
def _down_conv_block_kernel(x_ref, w1_ref, b1_ref, w2_ref, b2_ref, o_ref,
                            *, width, m1):
    """x_ref : (1, Mx, Cin)   bf16  row-flattened (H, width) image + zero slack rows
       w1_ref: (Cin, 9*C1)    bf16  taps folded into the N axis (tap-major columns)
       b1_ref: (1,  C1)       f32
       w2_ref: (C1, 9*C2)     bf16
       b2_ref: (1,  C2)       f32
       o_ref : (1, M2, C2)    f32   row-flattened (H-4, width) output (junk cols
                                    beyond width-4 are cropped by the wrapper)."""
    c1 = b1_ref.shape[-1]
    c2 = b2_ref.shape[-1]
    m2 = o_ref.shape[1]

    def conv3x3(lhs, w_ref, b_ref, cout, m_out):
        # One MXU matmul covering all 9 taps (taps folded into N, shared LHS),
        # f32 accumulation; then 9 static shifted row/lane slices summed in VMEM.
        z = jnp.dot(lhs, w_ref[...], preferred_element_type=jnp.float32)
        acc = jnp.zeros((m_out, cout), jnp.float32)
        for p in range(9):
            dy, dx = divmod(p, 3)
            off = dy * width + dx
            acc = acc + z[off:off + m_out, p * cout:(p + 1) * cout]
        # Fused bias + ReLU epilogue in f32.
        return jnp.maximum(acc + b_ref[...], 0.0)

    y1 = conv3x3(x_ref[0], w1_ref, b1_ref, c1, m1).astype(jnp.bfloat16)
    y2 = conv3x3(y1, w2_ref, b2_ref, c2, m2)
    o_ref[0] = y2.astype(o_ref.dtype)


# -----------------------------------------------------------------------------
# Wrapper: packing, pallas_call, un-flattening.
# -----------------------------------------------------------------------------
def down_conv_block(x_nchw, params):
    """x_nchw: (N, Cin, H, W) float32 -> (N, Cout, H-4, W-4) float32."""
    wt1, bs1, wt2, bs2 = params["w1"], params["b1"], params["w2"], params["b2"]
    n, cin, h, w = x_nchw.shape
    c1 = wt1.shape[0]
    c2 = wt2.shape[0]

    # Row-flattened sizes (+ zero slack rows so all shifted slices stay in bounds).
    m2 = (h - 4) * w                              # conv2 output rows (exact)
    m1 = _round_up((h - 2) * w + 2, 8)            # conv1 rows kept for conv2 reads
    mx = _round_up(m1 + 2 * w + 2, 8)             # input rows incl. slack
    cin_p = _round_up(cin, 8)                     # pad tiny K for clean MXU packing

    # NCHW -> NHWC -> row-flattened, bf16, channels on the lane axis.  This is a
    # metadata reshape + a tiny zero pad of the *input* (no 9x im2col inflation).
    x_rows = jnp.transpose(x_nchw, (0, 2, 3, 1)).reshape(n, h * w, cin)
    x_rows = jnp.pad(x_rows, ((0, 0), (0, mx - h * w), (0, cin_p - cin)))
    x_rows = x_rows.astype(jnp.bfloat16)

    # Pre-pack weights ONCE: (Cout, Cin, 3, 3) -> (Cin, 9*Cout), taps folded into N.
    w1p = jnp.transpose(wt1, (1, 2, 3, 0)).reshape(cin, 9 * c1)
    w1p = jnp.pad(w1p, ((0, cin_p - cin), (0, 0))).astype(jnp.bfloat16)
    w2p = jnp.transpose(wt2, (1, 2, 3, 0)).reshape(c1, 9 * c2).astype(jnp.bfloat16)
    b1p = bs1.reshape(1, c1).astype(jnp.float32)
    b2p = bs2.reshape(1, c2).astype(jnp.float32)

    out_flat = pl.pallas_call(
        functools.partial(_down_conv_block_kernel, width=w, m1=m1),
        out_shape=jax.ShapeDtypeStruct((n, m2, c2), jnp.float32),
        grid_spec=pltpu.PrefetchScalarGridSpec(
            num_scalar_prefetch=0,
            grid=(n,),
            in_specs=[
                pl.BlockSpec((1, mx, cin_p), lambda i: (i, 0, 0)),
                # constant block index -> weights / biases stay resident in VMEM
                pl.BlockSpec((cin_p, 9 * c1), lambda i: (0, 0)),
                pl.BlockSpec((1, c1), lambda i: (0, 0)),
                pl.BlockSpec((c1, 9 * c2), lambda i: (0, 0)),
                pl.BlockSpec((1, c2), lambda i: (0, 0)),
            ],
            out_specs=pl.BlockSpec((1, m2, c2), lambda i: (i, 0, 0)),
        ),
        compiler_params=pltpu.CompilerParams(
            dimension_semantics=("parallel",)),
    )(x_rows, w1p, b1p, w2p, b2p)

    # Un-flatten the padded-width rows, crop the junk columns, back to NCHW.
    out = out_flat.reshape(n, h - 4, w, c2)[:, :, :w - 4, :]
    return jnp.transpose(out, (0, 3, 1, 2))


# -----------------------------------------------------------------------------
# Deterministic PyTorch-style init + pure-JAX reference for verification.
# -----------------------------------------------------------------------------
def init_params(key, cin, cout):
    k1, k2, k3, k4 = jax.random.split(key, 4)
    s1 = 1.0 / float(cin * 9) ** 0.5
    s2 = 1.0 / float(cout * 9) ** 0.5
    return {
        "w1": jax.random.uniform(k1, (cout, cin, 3, 3), jnp.float32, -s1, s1),
        "b1": jax.random.uniform(k2, (cout,), jnp.float32, -s1, s1),
        "w2": jax.random.uniform(k3, (cout, cout, 3, 3), jnp.float32, -s2, s2),
        "b2": jax.random.uniform(k4, (cout,), jnp.float32, -s2, s2),
    }


def reference(x, params):
    def conv(x, wt, bs):
        y = jax.lax.conv_general_dilated(
            x, wt, window_strides=(1, 1), padding="VALID",
            dimension_numbers=("NCHW", "OIHW", "NCHW"))
        return jax.nn.relu(y + bs[None, :, None, None])

    y = conv(x, params["w1"], params["b1"])
    return conv(y, params["w2"], params["b2"])


if __name__ == "__main__":
    key = jax.random.PRNGKey(0)
    kx, kp = jax.random.split(key)

    N, CIN, H, W = 2, 4, 16, 16
    COUT = 32
    x = jax.random.normal(kx, (N, CIN, H, W), jnp.float32)
    params = init_params(kp, CIN, COUT)

    fwd = jax.jit(down_conv_block)
    out = fwd(x, params)
    jax.block_until_ready(out)

    assert out.shape == (N, COUT, H - 4, W - 4), out.shape
    assert out.dtype == jnp.float32

    ref = reference(x, params)
    err = float(jnp.max(jnp.abs(out - ref)))
    assert err < 5e-2, f"max abs error vs reference: {err}"

    print("KERNEL_OK")
</pallas_src>

<mosaic_0001>
module attributes {stable_mosaic.version = 11 : i64} {
  func.func @_down_conv_block_kernel(%arg0: i32, %arg1: memref<1x272x8xbf16, #tpu.memory_space<vmem>>, %arg2: memref<8x288xbf16, #tpu.memory_space<vmem>>, %arg3: memref<1x32xf32, #tpu.memory_space<vmem>>, %arg4: memref<32x288xbf16, #tpu.memory_space<vmem>>, %arg5: memref<1x32xf32, #tpu.memory_space<vmem>>, %arg6: memref<1x192x32xf32, #tpu.memory_space<vmem>>) attributes {dimension_semantics = [#tpu.dimension_semantics<parallel>], iteration_bounds = array<i64: 2>, scalar_prefetch = 0 : i64, scratch_operands = 0 : i64, tpu.core_type = #tpu.core_type<tc>, window_params = [{transform_indices = @transform_0, window_bounds = array<i64: 1, 272, 8>}, {pipeline_mode = #tpu.pipeline_mode<synchronous>, transform_indices = @transform_1, window_bounds = array<i64: 8, 288>}, {pipeline_mode = #tpu.pipeline_mode<synchronous>, transform_indices = @transform_2, window_bounds = array<i64: 1, 32>}, {pipeline_mode = #tpu.pipeline_mode<synchronous>, transform_indices = @transform_3, window_bounds = array<i64: 32, 288>}, {pipeline_mode = #tpu.pipeline_mode<synchronous>, transform_indices = @transform_4, window_bounds = array<i64: 1, 32>}, {transform_indices = @transform_5, window_bounds = array<i64: 1, 192, 32>}]} {
    %c0 = arith.constant 0 : index
    %c0_0 = arith.constant 0 : index
    %c0_1 = arith.constant 0 : index
    %0 = vector.load %arg1[%c0, %c0_0, %c0_1] : memref<1x272x8xbf16, #tpu.memory_space<vmem>>, vector<1x272x8xbf16>
    %1 = vector.shape_cast %0 : vector<1x272x8xbf16> to vector<272x8xbf16>
    %c0_2 = arith.constant 0 : index
    %c0_3 = arith.constant 0 : index
    %2 = vector.load %arg2[%c0_2, %c0_3] : memref<8x288xbf16, #tpu.memory_space<vmem>>, vector<8x288xbf16>
    %cst = arith.constant dense<0.000000e+00> : vector<272x288xf32>
    %3 = tpu.matmul %1, %2, %cst {dimension_numbers = #tpu.dot_dimension_numbers<[1], [0], [0], [1], [0, 0, 1, 1], [], []>} : vector<272x8xbf16>, vector<8x288xbf16>, vector<272x288xf32> -> vector<272x288xf32>
    %cst_4 = arith.constant 0.000000e+00 : f32
    %4 = vector.broadcast %cst_4 : f32 to vector<232x32xf32>
    %5 = vector.extract_strided_slice %3 {offsets = [0, 0], sizes = [232, 32], strides = [1, 1]} : vector<272x288xf32> to vector<232x32xf32>
    %6 = arith.addf %4, %5 : vector<232x32xf32>
    %7 = vector.extract_strided_slice %3 {offsets = [1, 32], sizes = [232, 32], strides = [1, 1]} : vector<272x288xf32> to vector<232x32xf32>
    %8 = arith.addf %6, %7 : vector<232x32xf32>
    %9 = vector.extract_strided_slice %3 {offsets = [2, 64], sizes = [232, 32], strides = [1, 1]} : vector<272x288xf32> to vector<232x32xf32>
    %10 = arith.addf %8, %9 : vector<232x32xf32>
    %11 = vector.extract_strided_slice %3 {offsets = [16, 96], sizes = [232, 32], strides = [1, 1]} : vector<272x288xf32> to vector<232x32xf32>
    %12 = arith.addf %10, %11 : vector<232x32xf32>
    %13 = vector.extract_strided_slice %3 {offsets = [17, 128], sizes = [232, 32], strides = [1, 1]} : vector<272x288xf32> to vector<232x32xf32>
    %14 = arith.addf %12, %13 : vector<232x32xf32>
    %15 = vector.extract_strided_slice %3 {offsets = [18, 160], sizes = [232, 32], strides = [1, 1]} : vector<272x288xf32> to vector<232x32xf32>
    %16 = arith.addf %14, %15 : vector<232x32xf32>
    %17 = vector.extract_strided_slice %3 {offsets = [32, 192], sizes = [232, 32], strides = [1, 1]} : vector<272x288xf32> to vector<232x32xf32>
    %18 = arith.addf %16, %17 : vector<232x32xf32>
    %19 = vector.extract_strided_slice %3 {offsets = [33, 224], sizes = [232, 32], strides = [1, 1]} : vector<272x288xf32> to vector<232x32xf32>
    %20 = arith.addf %18, %19 : vector<232x32xf32>
    %21 = vector.extract_strided_slice %3 {offsets = [34, 256], sizes = [232, 32], strides = [1, 1]} : vector<272x288xf32> to vector<232x32xf32>
    %22 = arith.addf %20, %21 : vector<232x32xf32>
    %c0_5 = arith.constant 0 : index
    %c0_6 = arith.constant 0 : index
    %23 = vector.load %arg3[%c0_5, %c0_6] : memref<1x32xf32, #tpu.memory_space<vmem>>, vector<1x32xf32>
    %24 = vector.broadcast %23 : vector<1x32xf32> to vector<232x32xf32>
    %25 = arith.addf %22, %24 : vector<232x32xf32>
    %cst_7 = arith.constant 0.000000e+00 : f32
    %26 = vector.broadcast %cst_7 : f32 to vector<232x32xf32>
    %27 = arith.maximumf %25, %26 : vector<232x32xf32>
    %28 = arith.truncf %27 : vector<232x32xf32> to vector<232x32xbf16>
    %c0_8 = arith.constant 0 : index
    %c0_9 = arith.constant 0 : index
    %29 = vector.load %arg4[%c0_8, %c0_9] : memref<32x288xbf16, #tpu.memory_space<vmem>>, vector<32x288xbf16>
    %cst_10 = arith.constant dense<0.000000e+00> : vector<232x288xf32>
    %30 = tpu.matmul %28, %29, %cst_10 {dimension_numbers = #tpu.dot_dimension_numbers<[1], [0], [0], [1], [0, 0, 1, 1], [], []>} : vector<232x32xbf16>, vector<32x288xbf16>, vector<232x288xf32> -> vector<232x288xf32>
    %cst_11 = arith.constant 0.000000e+00 : f32
    %31 = vector.broadcast %cst_11 : f32 to vector<192x32xf32>
    %32 = vector.extract_strided_slice %30 {offsets = [0, 0], sizes = [192, 32], strides = [1, 1]} : vector<232x288xf32> to vector<192x32xf32>
    %33 = arith.addf %31, %32 : vector<192x32xf32>
    %34 = vector.extract_strided_slice %30 {offsets = [1, 32], sizes = [192, 32], strides = [1, 1]} : vector<232x288xf32> to vector<192x32xf32>
    %35 = arith.addf %33, %34 : vector<192x32xf32>
    %36 = vector.extract_strided_slice %30 {offsets = [2, 64], sizes = [192, 32], strides = [1, 1]} : vector<232x288xf32> to vector<192x32xf32>
    %37 = arith.addf %35, %36 : vector<192x32xf32>
    %38 = vector.extract_strided_slice %30 {offsets = [16, 96], sizes = [192, 32], strides = [1, 1]} : vector<232x288xf32> to vector<192x32xf32>
    %39 = arith.addf %37, %38 : vector<192x32xf32>
    %40 = vector.extract_strided_slice %30 {offsets = [17, 128], sizes = [192, 32], strides = [1, 1]} : vector<232x288xf32> to vector<192x32xf32>
    %41 = arith.addf %39, %40 : vector<192x32xf32>
    %42 = vector.extract_strided_slice %30 {offsets = [18, 160], sizes = [192, 32], strides = [1, 1]} : vector<232x288xf32> to vector<192x32xf32>
    %43 = arith.addf %41, %42 : vector<192x32xf32>
    %44 = vector.extract_strided_slice %30 {offsets = [32, 192], sizes = [192, 32], strides = [1, 1]} : vector<232x288xf32> to vector<192x32xf32>
    %45 = arith.addf %43, %44 : vector<192x32xf32>
    %46 = vector.extract_strided_slice %30 {offsets = [33, 224], sizes = [192, 32], strides = [1, 1]} : vector<232x288xf32> to vector<192x32xf32>
    %47 = arith.addf %45, %46 : vector<192x32xf32>
    %48 = vector.extract_strided_slice %30 {offsets = [34, 256], sizes = [192, 32], strides = [1, 1]} : vector<232x288xf32> to vector<192x32xf32>
    %49 = arith.addf %47, %48 : vector<192x32xf32>
    %c0_12 = arith.constant 0 : index
    %c0_13 = arith.constant 0 : index
    %50 = vector.load %arg5[%c0_12, %c0_13] : memref<1x32xf32, #tpu.memory_space<vmem>>, vector<1x32xf32>
    %51 = vector.broadcast %50 : vector<1x32xf32> to vector<192x32xf32>
    %52 = arith.addf %49, %51 : vector<192x32xf32>
    %cst_14 = arith.constant 0.000000e+00 : f32
    %53 = vector.broadcast %cst_14 : f32 to vector<192x32xf32>
    %54 = arith.maximumf %52, %53 : vector<192x32xf32>
    %c0_15 = arith.constant 0 : index
    %c0_16 = arith.constant 0 : index
    %c0_17 = arith.constant 0 : index
    %55 = vector.load %arg6[%c0_15, %c0_16, %c0_17] : memref<1x192x32xf32, #tpu.memory_space<vmem>>, vector<1x192x32xf32>
    %56 = vector.shape_cast %55 : vector<1x192x32xf32> to vector<192x32xf32>
    %57 = vector.shape_cast %54 : vector<192x32xf32> to vector<1x192x32xf32>
    tpu.vector_store %arg6[%c0_15, %c0_16, %c0_17], %57 {strides = array<i32>} : memref<1x192x32xf32, #tpu.memory_space<vmem>>, vector<1x192x32xf32>,
    return
  }
  func.func @transform_0(%arg0: i32) -> (i32, i32, i32) {
    %c0_i32 = arith.constant 0 : i32
    %c0_i32_0 = arith.constant 0 : i32
    %c0_i32_1 = arith.constant 0 : i32
    return %arg0, %c0_i32, %c0_i32_0 : i32, i32, i32
  }
  func.func @transform_1(%arg0: i32) -> (i32, i32) {
    %c0_i32 = arith.constant 0 : i32
    %c0_i32_0 = arith.constant 0 : i32
    %c0_i32_1 = arith.constant 0 : i32
    return %c0_i32, %c0_i32_0 : i32, i32
  }
  func.func @transform_2(%arg0: i32) -> (i32, i32) {
    %c0_i32 = arith.constant 0 : i32
    %c0_i32_0 = arith.constant 0 : i32
    %c0_i32_1 = arith.constant 0 : i32
    return %c0_i32, %c0_i32_0 : i32, i32
  }
  func.func @transform_3(%arg0: i32) -> (i32, i32) {
    %c0_i32 = arith.constant 0 : i32
    %c0_i32_0 = arith.constant 0 : i32
    %c0_i32_1 = arith.constant 0 : i32
    return %c0_i32, %c0_i32_0 : i32, i32
  }
  func.func @transform_4(%arg0: i32) -> (i32, i32) {
    %c0_i32 = arith.constant 0 : i32
    %c0_i32_0 = arith.constant 0 : i32
    %c0_i32_1 = arith.constant 0 : i32
    return %c0_i32, %c0_i32_0 : i32, i32
  }
  func.func @transform_5(%arg0: i32) -> (i32, i32, i32) {
    %c0_i32 = arith.constant 0 : i32
    %c0_i32_0 = arith.constant 0 : i32
    %c0_i32_1 = arith.constant 0 : i32
    return %arg0, %c0_i32, %c0_i32_0 : i32, i32, i32
  }
}

</mosaic_0001>

<bundles_post_ra>
// kernel: down_conv_block.1
= control target key start
LH: loop header
LB: loop body
LE: loop exit
PB: predicated region body
PF: predicated region fallthrough
CT: control target
= control target key end

     0   :  { %s4023_s18 = smov 0   ;;  %s6666_s0 = inlined_call_operand.vmem [shape: bf16[2,272,8], index: 0, kind: input, shape index: {}]   ;;  %s6667_s1 = inlined_call_operand.vmem [shape: bf16[8,288], index: 1, kind: input, shape index: {}]   ;;  %s6668_s2 = inlined_call_operand.vmem [shape: f32[1,32], index: 2, kind: input, shape index: {}]   ;;  %s6669_s3 = inlined_call_operand.vmem [shape: bf16[32,288], index: 3, kind: input, shape index: {}]   ;;  %s6670_s4 = inlined_call_operand.vmem [shape: f32[1,32], index: 4, kind: input, shape index: {}]   ;;  %s6671_s5 = inlined_call_operand.vmem [shape: f32[2,192,32], index: 5, kind: output, shape index: {}]  }
   0x1 LB: > { %s3662_s19 = sadd.s32 4294967295, %s3985_s18   ;;  %p3666_p0 = scmp.ge.s32.totalorder %s3985_s18, 1  ;;  %s3985_s18 = sphi %s4023_s18, %s15_s18  }
   0x2   : > { %p187_p1 = scmp.lt.s32.totalorder %s3985_s18, 3 }
   0x4   : > { %p188_p2 = pnand %p3666_p0, %p187_p1 }
   0x6   : > { %191 = sbr.rel (%p188_p2) target bundleno = 1032 (0x408), region = 40 }
   0xb   : > { %v260_v0 = vld [vmem:[%s6667_s1] sm:$0xff]  ;;  %vm407_vm0 = vcmask 1043456   ;;  %p215_p3 = scmp.lt.s32.totalorder %s3662_s19, 1  ;;  %v6674_v3 = vmov 0   ;;  %v6672_v4 = vmov 0.0   ;;  %vm3989_vm1 = vmmov 0  }
   0xc   : > { %v3687_v1 = vcombine.high %v260_v0, %v260_v0  ;;  %v3686_v2 = vcombine.low %v260_v0, %v260_v0  ;;  %449 = vmatprep.mubr.bf16.mxu0 %v6674_v3  ;;  %3799 = vmatprep.subr.bf16.mxu1 %v6672_v4  ;;  %v3960_v5 = vld [vmem:[%s6667_s1 + $0x8] ss:$0 sps:$4 sm:$0xff]   ;;  %vm355_vm2 = vcmask 64512   ;;  %v3966_v22 = vld [vmem:[%s6669_s3 + $0x18] ss:$12 sps:$4 sm:$0xff]   ;;  %vm1015_vm3 = vcmask 1045504  }
   0xd   : > { %s6931_s19 = smov (!%p215_p3, %s3662_s19), 1  ;;  %3801 = vmatprep.mubr.msk.bf16.mxu1 %vm3989_vm1, %v6672_v4  ;;  %v415_v7 = vsel %vm407_vm0, %v3960_v5, 0  ;;  %v3968_v23 = vld [vmem:[%s6669_s3 + $0x1c] ss:$12 sps:$4 sm:$0xff]   ;;  %vm839_vm4 = vcmask 1046528   ;;  %s3990_s7 = smov 64  }
   0xe   : > { %3689 = vmatprep.subr.msk.bf16.mxu0 %vm407_vm0, %v3687_v1  ;;  %v409_v6 = vsel %vm407_vm0, %v3686_v2, 0  ;;  %s3933_s24 = smul.u32 136, %s6931_s19  ;;  %3800 = vmatpush3.bf16.msra.mxu1 %v415_v7  ;;  %s3991_s8 = smov 96   ;;  %v3972_v47 = vld [vmem:[%s6669_s3] ss:$12 sps:$4 sm:$0xff]   ;;  %vm2135_vm5 = vcmask 261120  }
   0xf   : > { %432 = vmatpush1.bf16.msra.mxu0 %v409_v6  ;;  %3869 = vmatprep.subr.bf16.mxu1 %v6672_v4  ;;  %s3992_s9 = smov 32   ;;  %v3974_v48 = vld [vmem:[%s6669_s3 + $0x4] ss:$12 sps:$4 sm:$0xff]  }
  0x10   : > { %s4048_s27 = scalar_lea.vmem %s6666_s0, %s3933_s24  ;;  %2193 = vmatprep.subr.bf16.mxu0 %v3968_v23  ;;  %s3934_s24 = smul.u32 192, %s6931_s19 }
  0x11   : > { %v3951_v8 = vld [vmem:[%s4048_s27] sm:$0xff]   ;;  %v3952_v9 = vld [vmem:[%s4048_s27 + $0x8] sm:$0xff]   ;;  %v3953_v10 = vld [vmem:[%s4048_s27 + $0x10] sm:$0xff]  }
  0x12   : > { %3690 = vmatmul.mubr.msk.bf16.vlgmr.msra.gmra.mxu0 %vm355_vm2, %v3951_v8  ;;  %3802 = vmatmul.mubr.msk.bf16.vlgmr.msra.gmra.mxu1 %vm355_vm2, %v3951_v8  ;;  %v3954_v11 = vld [vmem:[%s4048_s27 + $0x18] sm:$0xff]   ;;  %v3955_v12 = vld [vmem:[%s4048_s27 + $0x20] sm:$0xff]   ;;  %v3956_v13 = vld [vmem:[%s4048_s27 + $0x28] sm:$0xff]   ;;  %s6052_s28 = scalar_lea.vmem %s6671_s5, %s3934_s24 }
  0x13   : > { %457 = vmatprep.mubr.bf16.mxu0 %v6674_v3  ;;  %3805 = vmatprep.mubr.msk.bf16.mxu1 %vm3989_vm1, %v6672_v4  ;;  %v3957_v14 = vld [vmem:[%s4048_s27 + $0x30] sm:$0xff]   ;;  %v3958_v15 = vld [vmem:[%s4048_s27 + $0x38] sm:$0xff]   ;;  %v3959_v16 = vld [vmem:[%s4048_s27 + $0x40] sm:$0xff]  }
  0x14   : > { %v3961_v17 = vld [vmem:[%s4048_s27 + $0x48] sm:$0xff]   ;;  %v3962_v18 = vld [vmem:[%s4048_s27 + $0x50] sm:$0xff]   ;;  %v3963_v19 = vld [vmem:[%s4048_s27 + $0x58] sm:$0xff]   ;;  %2194 = vmatpush1.bf16.msra.mxu0 %v3966_v22 }
  0x15   : > { %v3964_v20 = vld [vmem:[%s4048_s27 + $0x60] sm:$0xff]   ;;  %v3965_v21 = vld [vmem:[%s4048_s27 + $0x68] sm:$0xff]   ;;  %v3969_v24 = vld [vmem:[%s4048_s27 + $0x70] sm:$0xff]   ;;  %2195 = vmatprep.subr.bf16.mxu0 %v3974_v48 }
  0x16   : > { %v3970_v25 = vld [vmem:[%s4048_s27 + $0x78] sm:$0xff]   ;;  %v3971_v40 = vld [vmem:[%s4048_s27 + $0x80] sm:$0xff]  }
  0x18   : > { %2196 = vmatpush1.bf16.msra.mxu0 %v3972_v47 }
  0x1a   : > { %3691 = vmatmul.mubr.msk.bf16.gmra.mxu0 %vm355_vm2, %v3952_v9  ;;  %3806 = vmatmul.mubr.msk.bf16.gmra.mxu1 %vm355_vm2, %v3952_v9 }
  0x1b   : > { %467 = vmatprep.mubr.bf16.mxu0 %v6674_v3  ;;  %3809 = vmatprep.mubr.msk.bf16.mxu1 %vm3989_vm1, %v6672_v4 }
  0x22   : > { %3692 = vmatmul.mubr.msk.bf16.gmra.mxu0 %vm355_vm2, %v3953_v10  ;;  %3810 = vmatmul.mubr.msk.bf16.gmra.mxu1 %vm355_vm2, %v3953_v10 }
  0x23   : > { %477 = vmatprep.mubr.bf16.mxu0 %v6674_v3  ;;  %3813 = vmatprep.mubr.msk.bf16.mxu1 %vm3989_vm1, %v6672_v4 }
  0x2a   : > { %3693 = vmatmul.mubr.msk.bf16.gmra.mxu0 %vm355_vm2, %v3954_v11  ;;  %3814 = vmatmul.mubr.msk.bf16.gmra.mxu1 %vm355_vm2, %v3954_v11 }
  0x2b   : > { %487 = vmatprep.mubr.bf16.mxu0 %v6674_v3  ;;  %3817 = vmatprep.mubr.msk.bf16.mxu1 %vm3989_vm1, %v6672_v4 }
  0x32   : > { %3694 = vmatmul.mubr.msk.bf16.gmra.mxu0 %vm355_vm2, %v3955_v12  ;;  %3818 = vmatmul.mubr.msk.bf16.gmra.mxu1 %vm355_vm2, %v3955_v12 }
  0x33   : > { %497 = vmatprep.mubr.bf16.mxu0 %v6674_v3  ;;  %3821 = vmatprep.mubr.msk.bf16.mxu1 %vm3989_vm1, %v6672_v4 }
  0x3a   : > { %3695 = vmatmul.mubr.msk.bf16.gmra.mxu0 %vm355_vm2, %v3956_v13  ;;  %3822 = vmatmul.mubr.msk.bf16.gmra.mxu1 %vm355_vm2, %v3956_v13 }
  0x3b   : > { %507 = vmatprep.mubr.bf16.mxu0 %v6674_v3  ;;  %3825 = vmatprep.mubr.msk.bf16.mxu1 %vm3989_vm1, %v6672_v4 }
  0x42   : > { %3696 = vmatmul.mubr.msk.bf16.gmra.mxu0 %vm355_vm2, %v3957_v14  ;;  %3826 = vmatmul.mubr.msk.bf16.gmra.mxu1 %vm355_vm2, %v3957_v14 }
  0x43   : > { %517 = vmatprep.mubr.bf16.mxu0 %v6674_v3  ;;  %3829 = vmatprep.mubr.msk.bf16.mxu1 %vm3989_vm1, %v6672_v4 }
  0x4a   : > { %3697 = vmatmul.mubr.msk.bf16.gmra.mxu0 %vm355_vm2, %v3958_v15  ;;  %3830 = vmatmul.mubr.msk.bf16.gmra.mxu1 %vm355_vm2, %v3958_v15 }
  0x4b   : > { %527 = vmatprep.mubr.bf16.mxu0 %v6674_v3  ;;  %3833 = vmatprep.mubr.msk.bf16.mxu1 %vm3989_vm1, %v6672_v4 }
  0x52   : > { %3698 = vmatmul.mubr.msk.bf16.gmra.mxu0 %vm355_vm2, %v3959_v16  ;;  %3834 = vmatmul.mubr.msk.bf16.gmra.mxu1 %vm355_vm2, %v3959_v16 }
  0x53   : > { %537 = vmatprep.mubr.bf16.mxu0 %v6674_v3  ;;  %3837 = vmatprep.mubr.msk.bf16.mxu1 %vm3989_vm1, %v6672_v4 }
  0x5a   : > { %3699 = vmatmul.mubr.msk.bf16.gmra.mxu0 %vm355_vm2, %v3961_v17  ;;  %3838 = vmatmul.mubr.msk.bf16.gmra.mxu1 %vm355_vm2, %v3961_v17 }
  0x5b   : > { %547 = vmatprep.mubr.bf16.mxu0 %v6674_v3  ;;  %3841 = vmatprep.mubr.msk.bf16.mxu1 %vm3989_vm1, %v6672_v4 }
  0x62   : > { %3700 = vmatmul.mubr.msk.bf16.gmra.mxu0 %vm355_vm2, %v3962_v18  ;;  %3842 = vmatmul.mubr.msk.bf16.gmra.mxu1 %vm355_vm2, %v3962_v18 }
  0x63   : > { %557 = vmatprep.mubr.bf16.mxu0 %v6674_v3  ;;  %3845 = vmatprep.mubr.msk.bf16.mxu1 %vm3989_vm1, %v6672_v4 }
  0x6a   : > { %3701 = vmatmul.mubr.msk.bf16.gmra.mxu0 %vm355_vm2, %v3963_v19  ;;  %3846 = vmatmul.mubr.msk.bf16.gmra.mxu1 %vm355_vm2, %v3963_v19 }
  0x6b   : > { %567 = vmatprep.mubr.bf16.mxu0 %v6674_v3  ;;  %3849 = vmatprep.mubr.msk.bf16.mxu1 %vm3989_vm1, %v6672_v4 }
  0x72   : > { %3702 = vmatmul.mubr.msk.bf16.gmra.mxu0 %vm355_vm2, %v3964_v20  ;;  %3850 = vmatmul.mubr.msk.bf16.gmra.mxu1 %vm355_vm2, %v3964_v20 }
  0x73   : > { %577 = vmatprep.mubr.bf16.mxu0 %v6674_v3  ;;  %3853 = vmatprep.mubr.msk.bf16.mxu1 %vm3989_vm1, %v6672_v4 }
  0x7a   : > { %3703 = vmatmul.mubr.msk.bf16.gmra.mxu0 %vm355_vm2, %v3965_v21  ;;  %3854 = vmatmul.mubr.msk.bf16.gmra.mxu1 %vm355_vm2, %v3965_v21 }
  0x7b   : > { %587 = vmatprep.mubr.bf16.mxu0 %v6674_v3  ;;  %3857 = vmatprep.mubr.msk.bf16.mxu1 %vm3989_vm1, %v6672_v4 }
  0x82   : > { %3704 = vmatmul.mubr.msk.bf16.gmra.mxu0 %vm355_vm2, %v3969_v24  ;;  %3858 = vmatmul.mubr.msk.bf16.gmra.mxu1 %vm355_vm2, %v3969_v24 }
  0x83   : > { %597 = vmatprep.mubr.bf16.mxu0 %v6674_v3  ;;  %3861 = vmatprep.mubr.msk.bf16.mxu1 %vm3989_vm1, %v6672_v4 }
  0x8a   : > { %3705 = vmatmul.mubr.msk.bf16.gmra.mxu0 %vm355_vm2, %v3970_v25  ;;  %3862 = vmatmul.mubr.msk.bf16.gmra.mxu1 %vm355_vm2, %v3970_v25 }
  0x8b   : > { %606 = vmatprep.mubr.bf16.mxu0 %v6674_v3  ;;  %3865 = vmatprep.mubr.msk.bf16.mxu1 %vm3989_vm1, %v6672_v4 }
  0x92   : > { %3706 = vmatmul.mubr.msk.bf16.gmra.mxu0 %vm355_vm2, %v3971_v40  ;;  %3866 = vmatmul.mubr.msk.bf16.gmra.mxu1 %vm355_vm2, %v3971_v40  ;;  %v3975_v40 = vld [vmem:[%s6669_s3 + $0x20] ss:$12 sps:$4 sm:$0xff]  }
  0x93   : > { %2213 = vmatprep.mubr.bf16.mxu0 %v6674_v3  ;;  %3873 = vmatprep.mubr.msk.bf16.mxu1 %vm3989_vm1, %v6672_v4 }
  0x94   : > { %3870 = vmatpush3.bf16.msra.mxu1 %v3975_v40 }
  0x95   : > { %3871 = vmatprep.subr.bf16.mxu1 %v6672_v4 }
  0xd2   : > { %v4152_v26 = vpop.f32.mrf.mxu0  ;;  %v649_v27 = vpop.f32.mrf.mxu1 }
  0xd3   : > { %v840_v32 = vrot.slane %v4152_v26, 1  ;;  %v1016_v33 = vrot.slane %v4152_v26, 2 }
  0xd4   : > { %v453_v28 = vpop.f32.mrf.mxu0  ;;  %v3803_v29 = vpop.f32.mrf.mxu1 }
  0xd6   : > { %v4154_v30 = vpop.f32.mrf.mxu0  ;;  %v651_v31 = vpop.f32.mrf.mxu1 }
  0xd7   : > { %v841_v34 = vrot.slane %v4154_v30, 1  ;;  %v1017_v35 = vrot.slane %v4154_v30, 2 }
  0xd8   : > { %v456_v36 = vpop.f32.mrf.mxu0  ;;  %v3804_v37 = vpop.f32.mrf.mxu1 }
  0xd9   : > { %v1018_v38 = vsel %vm1015_vm3, %v1016_v33, %v1017_v35  ;;  %v842_v39 = vsel %vm839_vm4, %v840_v32, %v841_v34 }
  0xda   : > { %1075 = vrot.lane.b32.xlu1 %v1018_v38, %s3990_s7  ;;  %899 = vrot.lane.b32.xlu0 %v842_v39, %s3991_s8  ;;  %v4165_v41 = vpop.f32.mrf.mxu0  ;;  %v655_v42 = vpop.f32.mrf.mxu1 }
  0xdb   : > { %v843_v45 = vrot.slane %v4165_v41, 1  ;;  %v1019_v53 = vrot.slane %v4165_v41, 2 }
  0xdc   : > { %v4169_v43 = vpop.f32.mrf.mxu0  ;;  %v3807_v44 = vpop.f32.mrf.mxu1 }
  0xdd   : > { %v844_v54 = vsel %vm839_vm4, %v841_v34, %v843_v45  ;;  %v1020_v59 = vsel %vm1015_vm3, %v1017_v35, %v1019_v53  ;;  %v1455_v63 = vrot.slane %v4169_v43, 2 }
  0xde   : > { %1192 = vrot.lane.b32.xlu0 %v4165_v41, %s3992_s9  ;;  %v4177_v46 = vpop.f32.mrf.mxu0  ;;  %v657_v49 = vpop.f32.mrf.mxu1 }
  0xdf   : > { %v845_v50 = vrot.slane %v4177_v46, 1  ;;  %1194 = vrot.lane.b32.xlu1 %v4177_v46, %s3992_s9  ;;  %v1021_v56 = vrot.slane %v4177_v46, 2 }
  0xe0   : > { %v4188_v51 = vpop.f32.mrf.mxu0  ;;  %v3808_v52 = vpop.f32.mrf.mxu1 }
  0xe1   : > { %v846_v55 = vsel %vm839_vm4, %v843_v45, %v845_v50  ;;  %v1456_v60 = vrot.slane %v4188_v51, 2  ;;  %v1022_v62 = vsel %vm1015_vm3, %v1019_v53, %v1021_v56 }
  0xe2   : > { %901 = vrot.lane.b32.xlu0 %v844_v54, %s3991_s8  ;;  %v4195_v57 = vpop.f32.mrf.mxu0  ;;  %v661_v11 = vpop.f32.mrf.mxu1 }
  0xe3   : > { %903 = vrot.lane.b32.xlu1 %v846_v55, %s3991_s8  ;;  %v1023_v1 = vrot.slane %v4195_v57, 2  ;;  %v1457_v5 = vsel %vm1015_vm3, %v1455_v63, %v1456_v60  ;;  %v847_v9 = vrot.slane %v4195_v57, 1  ;;  %v1898_v17 = vrot.slane %v661_v11, 2 }
  0xe4   : > { %v4198_v58 = vpop.f32.mrf.mxu0  ;;  %v3811_v14 = vpop.f32.mrf.mxu1 }
  0xe5   : > { %v1458_v7 = vrot.slane %v4198_v58, 2  ;;  %v1024_v8 = vsel %vm1015_vm3, %v1021_v56, %v1023_v1  ;;  %v848_v15 = vsel %vm839_vm4, %v845_v50, %v847_v9  ;;  %v6676_v44 = vrot.slane %v4198_v58, 1  ;;  %v3976_v50 = vld [vmem:[%s6669_s3 + $0x8] ss:$12 sps:$4 sm:$0xff]  }
  0xe6   : > { %1077 = vrot.lane.b32.xlu0 %v1020_v59, %s3990_s7  ;;  %v4203_v61 = vpop.f32.mrf.mxu0  ;;  %v664_v18 = vpop.f32.mrf.mxu1  ;;  %3872 = vmatpush3.bf16.msra.mxu1 %v3976_v50 }
  0xe7   : > { %1079 = vrot.lane.b32.xlu1 %v1022_v62, %s3990_s7  ;;  %v1459_v13 = vsel %vm1015_vm3, %v1456_v60, %v1458_v7  ;;  %v1899_v20 = vrot.slane %v664_v18, 2  ;;  %v849_v21 = vrot.slane %v4203_v61, 1  ;;  %v1025_v23 = vrot.slane %v4203_v61, 2 }
  0xe8   : > { %v4208_v0 = vpop.f32.mrf.mxu0  ;;  %v3812_v22 = vpop.f32.mrf.mxu1 }
  0xe9   : > { %v4244_v25 = vsel %vm1015_vm3, %v1898_v17, %v1899_v20  ;;  %v850_v28 = vsel %vm839_vm4, %v847_v9, %v849_v21  ;;  %v1460_v29 = vrot.slane %v4208_v0, 2  ;;  %v1026_v31 = vsel %vm1015_vm3, %v1023_v1, %v1025_v23 }
  0xea   : > { %1196 = vrot.lane.b32.xlu0 %v4195_v57, %s3992_s9  ;;  %v4213_v2 = vpop.f32.mrf.mxu0  ;;  %v669_v33 = vpop.f32.mrf.mxu1  ;;  %v1343_v37 = vrot.slane %v4208_v0, 1 }
  0xeb   : > { %1514 = vrot.lane.b32.xlu1 %v1457_v5, %s3991_s8  ;;  %v1901_v34 = vrot.slane %v669_v33, 2  ;;  %v1027_v35 = vrot.slane %v4213_v2, 2  ;;  %v1461_v38 = vsel %vm1015_vm3, %v1458_v7, %v1460_v29  ;;  %v851_v55 = vrot.slane %v4213_v2, 1 }
  0xec   : > { %v4217_v6 = vpop.f32.mrf.mxu0  ;;  %v3815_v36 = vpop.f32.mrf.mxu1  ;;  %v4281_v49 = vsel %vm839_vm4, %v6676_v44, %v1343_v37 }
  0xed   : > { %v4263_v39 = vsel %vm1015_vm3, %v1899_v20, %v1901_v34  ;;  %v1462_v45 = vrot.slane %v4217_v6, 2  ;;  %v1028_v47 = vsel %vm1015_vm3, %v1025_v23, %v1027_v35  ;;  %v1345_v52 = vrot.slane %v4217_v6, 1 }
  0xee   : > { %1081 = vrot.lane.b32.xlu0 %v1024_v8, %s3990_s7  ;;  %v4223_v10 = vpop.f32.mrf.mxu0  ;;  %v852_v60 = vsel %vm839_vm4, %v849_v21, %v851_v55  ;;  %v672_v62 = vpop.f32.mrf.mxu1 }
  0xef   : > { %1631 = vrot.lane.b32.xlu1 %v4198_v58, %s3990_s7  ;;  %v1463_v53 = vsel %vm1015_vm3, %v1460_v29, %v1462_v45  ;;  %v4297_v56 = vsel %vm839_vm4, %v1343_v37, %v1345_v52  ;;  %v853_v63 = vrot.slane %v4223_v10, 1  ;;  %v1029_v1 = vrot.slane %v4223_v10, 2 }
  0xf0   : > { %v4227_v12 = vpop.f32.mrf.mxu0  ;;  %v1903_v5 = vrot.slane %v672_v62, 2 }
  0xf1   : > { %v854_v9 = vsel %vm839_vm4, %v851_v55, %v853_v63  ;;  %v1464_v11 = vrot.slane %v4227_v12, 2  ;;  %v1347_v18 = vrot.slane %v4227_v12, 1 }
  0xf2   : > { %1516 = vrot.lane.b32.xlu0 %v1459_v13, %s3991_s8  ;;  %v4232_v16 = vpop.f32.mrf.mxu0  ;;  %v4316_v8 = vsel %vm1015_vm3, %v1901_v34, %v1903_v5  ;;  %v1030_v13 = vsel %vm1015_vm3, %v1027_v35, %v1029_v1 }
  0xf3   : > { %6749 = vst [vmem:[#allocation2_spill] sm:$0xff] %v4232_v16  ;;  %905 = vrot.lane.b32.xlu1 %v848_v15, %s3991_s8  ;;  %v1031_v17 = vrot.slane %v4232_v16, 2  ;;  %v1465_v20 = vsel %vm1015_vm3, %v1462_v45, %v1464_v11  ;;  %v855_v40 = vrot.slane %v4232_v16, 1 }
  0xf4   : > { %v4235_v19 = vpop.f32.mrf.mxu0 }
  0xf5   : > { %v1466_v29 = vrot.slane %v4235_v19, 2  ;;  %v1349_v35 = vrot.slane %v4235_v19, 1 }
  0xf6   : > { %1633 = vrot.lane.b32.xlu0 %v4208_v0, %s3990_s7  ;;  %v4241_v24 = vpop.f32.mrf.mxu0 }
  0xf7   : > { %6750 = vst [vmem:[#allocation3_spill] sm:$0xff] %v4241_v24  ;;  %1198 = vrot.lane.b32.xlu1 %v4203_v61, %s3992_s9  ;;  %v1467_v36 = vsel %vm1015_vm3, %v1464_v11, %v1466_v29 }
  0xf8   : > { %v4248_v27 = vpop.f32.mrf.mxu0 }
  0xfa   : > { %907 = vrot.lane.b32.xlu0 %v850_v28, %s3991_s8  ;;  %v4255_v32 = vpop.f32.mrf.mxu0 }
  0xfb   : > { %1083 = vrot.lane.b32.xlu1 %v1026_v31, %s3990_s7  ;;  %6751 = vst [vmem:[#allocation4_spill] sm:$0xff] %v4255_v32  ;;  %v1032_v31 = vsel %vm1015_vm3, %v1029_v1, %v1031_v17  ;;  %v857_v1 = vrot.slane %v4241_v24, 1 }
  0xfc   : > { %v4269_v42 = vpop.f32.mrf.mxu0 }
  0xfe   : > { %1200 = vrot.lane.b32.xlu0 %v4213_v2, %s3992_s9  ;;  %v4274_v48 = vpop.f32.mrf.mxu0 }
  0xff   : > { %1518 = vrot.lane.b32.xlu1 %v1461_v38, %s3991_s8  ;;  %6752 = vst [vmem:[#allocation5_spill] sm:$0xff] %v4274_v48 }
 0x100   : > { %v4290_v54 = vpop.f32.mrf.mxu0 }
 0x102   : > { %1085 = vrot.lane.b32.xlu0 %v1028_v47, %s3990_s7  ;;  %v4299_v59 = vpop.f32.mrf.mxu0 }
 0x103   : > { %1752 = vrot.lane.b32.xlu1 %v4281_v49, %s3992_s9  ;;  %6753 = vst [vmem:[#allocation6_spill] sm:$0xff] %v4299_v59 }
 0x104   : > { %v4306_v0 = vpop.f32.mrf.mxu0 }
 0x106   : > { %1520 = vrot.lane.b32.xlu0 %v1463_v53, %s3991_s8  ;;  %v4313_v7 = vpop.f32.mrf.mxu0 }
 0x107   : > { %1635 = vrot.lane.b32.xlu1 %v4217_v6, %s3990_s7  ;;  %v3816_v6 = vpop.f32.mrf.mxu1  ;;  %6754 = vst [vmem:[#allocation7_spill] sm:$0xff] %v4313_v7 }
 0x108   : > { %v4323_v14 = vpop.f32.mrf.mxu0  ;;  %v1033_v6 = vrot.slane %v4241_v24, 2 }
 0x109   : > { %v677_v15 = vpop.f32.mrf.mxu1 }
 0x10a   : > { %1754 = vrot.lane.b32.xlu0 %v4297_v56, %s3992_s9  ;;  %v1905_v21 = vrot.slane %v677_v15, 2  ;;  %v4331_v23 = vpop.f32.mrf.mxu0  ;;  %v1034_v15 = vsel %vm1015_vm3, %v1031_v17, %v1033_v6 }
 0x10b   : > { %909 = vrot.lane.b32.xlu1 %v852_v60, %s3991_s8  ;;  %v3819_v22 = vpop.f32.mrf.mxu1  ;;  %6755 = vst [vmem:[#allocation8_spill] sm:$0xff] %v4331_v23  ;;  %v856_v60 = vsel %vm839_vm4, %v853_v63, %v855_v40 }
 0x10c   : > { %v4334_v28 = vsel %vm1015_vm3, %v1903_v5, %v1905_v21  ;;  %v4344_v33 = vpop.f32.mrf.mxu0 }
 0x10d   : > { %v680_v34 = vpop.f32.mrf.mxu1 }
 0x10e   : > { %1637 = vrot.lane.b32.xlu0 %v4227_v12, %s3990_s7  ;;  %v4340_v12 = vsel %vm839_vm4, %v1345_v52, %v1347_v18  ;;  %v4348_v37 = vpop.f32.mrf.mxu0  ;;  %v1907_v45 = vrot.slane %v680_v34, 2  ;;  %v4355_v52 = vsel %vm839_vm4, %v1347_v18, %v1349_v35 }
 0x10f   : > { %1202 = vrot.lane.b32.xlu1 %v4223_v10, %s3992_s9  ;;  %6756 = vst [vmem:[#allocation9_spill] sm:$0xff] %v4348_v37  ;;  %v3820_v38 = vpop.f32.mrf.mxu1 }
 0x110   : > { %v4357_v53 = vpop.f32.mrf.mxu0  ;;  %v4364_v62 = vsel %vm1015_vm3, %v1905_v21, %v1907_v45 }
 0x111   : > { %v685_v47 = vpop.f32.mrf.mxu1 }
 0x112   : > { %911 = vrot.lane.b32.xlu0 %v854_v9, %s3991_s8  ;;  %v1909_v50 = vrot.slane %v685_v47, 2  ;;  %v4370_v5 = vpop.f32.mrf.mxu0  ;;  %v858_v9 = vsel %vm839_vm4, %v855_v40, %v857_v1 }
 0x113   : > { %1087 = vrot.lane.b32.xlu1 %v1030_v13, %s3990_s7  ;;  %v3823_v55 = vpop.f32.mrf.mxu1  ;;  %v1468_v13 = vrot.slane %v4248_v27, 2 }
 0x114   : > { %v4378_v11 = vpop.f32.mrf.mxu0  ;;  %v1470_v55 = vrot.slane %v4269_v42, 2 }
 0x115   : > { %v688_v63 = vpop.f32.mrf.mxu1  ;;  %v1469_v38 = vsel %vm1015_vm3, %v1466_v29, %v1468_v13 }
 0x116   : > { %1204 = vrot.lane.b32.xlu0 %v4232_v16, %s3992_s9  ;;  %v1911_v21 = vrot.slane %v688_v63, 2  ;;  %v1471_v63 = vsel %vm1015_vm3, %v1468_v13, %v1470_v55 }
 0x117   : > { %1522 = vrot.lane.b32.xlu1 %v1465_v20, %s3991_s8  ;;  %v3824_v18 = vpop.f32.mrf.mxu1  ;;  %v4384_v20 = vpop.f32.mrf.mxu0 }
 0x119   : > { %v693_v22 = vpop.f32.mrf.mxu1  ;;  %v4392_v17 = vpop.f32.mrf.mxu0 }
 0x11a   : > { %1089 = vrot.lane.b32.xlu0 %v1032_v31, %s3990_s7  ;;  %v1035_v31 = vrot.slane %v4255_v32, 2  ;;  %v1913_v34 = vrot.slane %v693_v22, 2 }
 0x11b   : > { %1756 = vrot.lane.b32.xlu1 %v4340_v12, %s3992_s9  ;;  %v3827_v40 = vpop.f32.mrf.mxu1  ;;  %v4408_v29 = vpop.f32.mrf.mxu0 }
 0x11c   : > { %v4398_v47 = vsel %vm1015_vm3, %v1911_v21, %v1913_v34  ;;  %6760 = vst [vmem:[#allocation13_spill] sm:$0xff] %v4408_v29 }
 0x11d   : > { %6758 = vst [vmem:[#allocation11_spill] sm:$0xff] %v4398_v47  ;;  %v696_v13 = vpop.f32.mrf.mxu1  ;;  %v1041_v47 = vrot.slane %v4313_v7, 2 }
 0x11e   : > { %1524 = vrot.lane.b32.xlu0 %v1467_v36, %s3991_s8  ;;  %v1351_v36 = vrot.slane %v4248_v27, 1 }
 0x11f   : > { %1639 = vrot.lane.b32.xlu1 %v4235_v19, %s3990_s7  ;;  %v4367_v19 = vsel %vm1015_vm3, %v1907_v45, %v1909_v50  ;;  %v4395_v45 = vsel %vm1015_vm3, %v1909_v50, %v1911_v21  ;;  %v1353_v50 = vrot.slane %v4269_v42, 1  ;;  %v861_v21 = vrot.slane %v4274_v48, 1 }
 0x120   : > { %6757 = vst [vmem:[#allocation10_spill] sm:$0xff] %v4395_v45 }
 0x122   : > { %1758 = vrot.lane.b32.xlu0 %v4355_v52, %s3992_s9 }
 0x123   : > { %913 = vrot.lane.b32.xlu1 %v856_v60, %s3991_s8  ;;  %v4404_v60 = vsel %vm839_vm4, %v1349_v35, %v1351_v36  ;;  %v4419_v35 = vsel %vm839_vm4, %v1351_v36, %v1353_v50  ;;  %v3828_v36 = vpop.f32.mrf.mxu1 }
 0x124   : > { %6759 = vst [vmem:[#allocation12_spill] sm:$0xff] %v4404_v60  ;;  %6761 = vst [vmem:[#allocation14_spill] sm:$0xff] %v4419_v35 }
 0x125   : > { %v701_v40 = vpop.f32.mrf.mxu1 }
 0x126   : > { %1641 = vrot.lane.b32.xlu0 %v4248_v27, %s3990_s7  ;;  %v1036_v27 = vsel %vm1015_vm3, %v1033_v6, %v1035_v31  ;;  %v4416_v6 = vpop.f32.mrf.mxu0 }
 0x127   : > { %1206 = vrot.lane.b32.xlu1 %v4241_v24, %s3992_s9  ;;  %v3831_v3 = vpop.f32.mrf.mxu1 }
 0x12a   : > { %915 = vrot.lane.b32.xlu0 %v858_v9, %s3991_s8  ;;  %v859_v9 = vrot.slane %v4255_v32, 1 }
 0x12b   : > { %1091 = vrot.lane.b32.xlu1 %v1034_v15, %s3990_s7  ;;  %v4421_v15 = vpop.f32.mrf.mxu0 }
 0x12c   : > { %6762 = vst [vmem:[#allocation15_spill] sm:$0xff] %v4421_v15  ;;  %v860_v18 = vsel %vm839_vm4, %v857_v1, %v859_v9  ;;  %v862_v1 = vsel %vm839_vm4, %v859_v9, %v861_v21  ;;  %v1039_v9 = vrot.slane %v4299_v59, 2 }
 0x12d   : > { %v4428_v22 = vpop.f32.mrf.mxu0 }
 0x12e   : > { %1208 = vrot.lane.b32.xlu0 %v4255_v32, %s3992_s9  ;;  %v863_v32 = vrot.slane %v4299_v59, 1 }
 0x12f   : > { %1526 = vrot.lane.b32.xlu1 %v1469_v38, %s3991_s8  ;;  %v1915_v38 = vrot.slane %v696_v13, 2 }
 0x131   : > { %v4443_v36 = vsel %vm1015_vm3, %v1913_v34, %v1915_v38 }
 0x132   : > { %1093 = vrot.lane.b32.xlu0 %v1036_v27, %s3990_s7  ;;  %v4436_v27 = vpop.f32.mrf.mxu0  ;;  %6764 = vst [vmem:[#allocation17_spill] sm:$0xff] %v4443_v36 }
 0x133   : > { %1760 = vrot.lane.b32.xlu1 %v4404_v60, %s3992_s9  ;;  %6763 = vst [vmem:[#allocation16_spill] sm:$0xff] %v4436_v27 }
 0x134   : > { %v4449_v44 = vpop.f32.mrf.mxu0 }
 0x136   : > { %1528 = vrot.lane.b32.xlu0 %v1471_v63, %s3991_s8  ;;  %v1917_v63 = vrot.slane %v701_v40, 2  ;;  %v1472_v40 = vrot.slane %v4290_v54, 2  ;;  %v4459_v3 = vpop.f32.mrf.mxu0 }
 0x137   : > { %1643 = vrot.lane.b32.xlu1 %v4269_v42, %s3990_s7  ;;  %v1037_v42 = vrot.slane %v4274_v48, 2  ;;  %6767 = vst [vmem:[#allocation20_spill] sm:$0xff] %v4459_v3 }
 0x138   : > { %v4446_v13 = vsel %vm1015_vm3, %v1915_v38, %v1917_v63  ;;  %v1473_v38 = vsel %vm1015_vm3, %v1470_v55, %v1472_v40 }
 0x139   : > { %v1038_v4 = vsel %vm1015_vm3, %v1035_v31, %v1037_v42  ;;  %6765 = vst [vmem:[#allocation18_spill] sm:$0xff] %v4446_v13  ;;  %v1040_v34 = vsel %vm1015_vm3, %v1037_v42, %v1039_v9 }
 0x13a   : > { %1762 = vrot.lane.b32.xlu0 %v4419_v35, %s3992_s9 }
 0x13b   : > { %917 = vrot.lane.b32.xlu1 %v860_v18, %s3991_s8  ;;  %v1355_v18 = vrot.slane %v4290_v54, 1 }
 0x13d   : > { %v4455_v31 = vsel %vm839_vm4, %v1353_v50, %v1355_v18 }
 0x13e   : > { %1645 = vrot.lane.b32.xlu0 %v4290_v54, %s3990_s7  ;;  %6766 = vst [vmem:[#allocation19_spill] sm:$0xff] %v4455_v31  ;;  %v4466_v54 = vpop.f32.mrf.mxu0 }
 0x13f   : > { %1210 = vrot.lane.b32.xlu1 %v4274_v48, %s3992_s9  ;;  %6768 = vst [vmem:[#allocation21_spill] sm:$0xff] %v4466_v54  ;;  %v1474_v48 = vrot.slane %v4306_v0, 2 }
 0x140   : > { %v4479_v55 = vpop.f32.mrf.mxu0 }
 0x141   : > { %6770 = vst [vmem:[#allocation23_spill] sm:$0xff] %v4479_v55  ;;  %v1359_v55 = vrot.slane %v4323_v14, 1 }
 0x142   : > { %919 = vrot.lane.b32.xlu0 %v862_v1, %s3991_s8 }
 0x143   : > { %1095 = vrot.lane.b32.xlu1 %v1038_v4, %s3990_s7  ;;  %v1357_v4 = vrot.slane %v4306_v0, 1 }
 0x145   : > { %v4472_v13 = vsel %vm839_vm4, %v1355_v18, %v1357_v4  ;;  %v864_v18 = vsel %vm839_vm4, %v861_v21, %v863_v32 }
 0x146   : > { %1212 = vrot.lane.b32.xlu0 %v4299_v59, %s3992_s9  ;;  %6769 = vst [vmem:[#allocation22_spill] sm:$0xff] %v4472_v13  ;;  %v4489_v59 = vpop.f32.mrf.mxu0 }
 0x147   : > { %1764 = vrot.lane.b32.xlu1 %v4455_v31, %s3992_s9  ;;  %6771 = vst [vmem:[#allocation24_spill] sm:$0xff] %v4489_v59 }
 0x148   : > { %v4494_v24 = vpop.f32.mrf.mxu0 }
 0x149   : > { %6772 = vst [vmem:[#allocation25_spill] sm:$0xff] %v4494_v24 }
 0x14a   : > { %1097 = vrot.lane.b32.xlu0 %v1040_v34, %s3990_s7  ;;  %v4506_v45 = vpop.f32.mrf.mxu0 }
 0x14b   : > { %1530 = vrot.lane.b32.xlu1 %v1473_v38, %s3991_s8  ;;  %v1475_v38 = vsel %vm1015_vm3, %v1472_v40, %v1474_v48  ;;  %6773 = vst [vmem:[#allocation26_spill] sm:$0xff] %v4506_v45  ;;  %v1043_v45 = vrot.slane %v4331_v23, 2 }
 0x14c   : > { %v4468_v1 = vpop.permute.xlu1 %1075  ;;  %v900_v50 = vpop.permute.xlu0 %899 }
 0x14d   : > { %v4524_v60 = vpop.f32.mrf.mxu0 }
 0x14e   : > { %1766 = vrot.lane.b32.xlu0 %v4472_v13, %s3992_s9  ;;  %v704_v13 = vpop.f32.mrf.mxu1  ;;  %6776 = vst [vmem:[#allocation29_spill] sm:$0xff] %v4524_v60 }
 0x14f   : > { %1647 = vrot.lane.b32.xlu1 %v4306_v0, %s3990_s7  ;;  %v865_v0 = vrot.slane %v4313_v7, 1 }
 0x150   : > { %v4481_v42 = vpop.permute.xlu0 %1192  ;;  %v3832_v40 = vpop.f32.mrf.mxu1 }
 0x151   : > { %v4483_v34 = vpop.permute.xlu1 %1194  ;;  %v866_v16 = vsel %vm839_vm4, %v863_v32, %v865_v0  ;;  %v1042_v40 = vsel %vm1015_vm3, %v1039_v9, %v1041_v47 }
 0x152   : > { %1532 = vrot.lane.b32.xlu0 %v1475_v38, %s3991_s8  ;;  %v1919_v38 = vrot.slane %v704_v13, 2 }
 0x153   : > { %921 = vrot.lane.b32.xlu1 %v864_v18, %s3991_s8  ;;  %v4501_v18 = vpop.f32.mrf.mxu1 }
 0x154   : > { %v902_v36 = vpop.permute.xlu0 %901  ;;  %v6692_v24 = vrot.slane %v4501_v18, 2  ;;  %v4514_v13 = vsel %vm1015_vm3, %v1917_v63, %v1919_v38  ;;  %v6786_v3 = vrot.slane %v4501_v18, 2 }
 0x155   : > { %v4492_v31 = vpop.permute.xlu1 %903  ;;  %v3835_v35 = vpop.f32.mrf.mxu1  ;;  %6774 = vst [vmem:[#allocation27_spill] sm:$0xff] %v4514_v13  ;;  %v987_v60 = vadd.f32 %v902_v36, %v4154_v30 }
 0x156   : > { %1649 = vrot.lane.b32.xlu0 %v4323_v14, %s3990_s7  ;;  %v4519_v32 = vsel %vm1015_vm3, %v1919_v38, %v6692_v24  ;;  %v4530_v35 = vsel %vm839_vm4, %v1357_v4, %v1359_v55  ;;  %v4538_v24 = vpop.f32.mrf.mxu0 }
 0x157   : > { %1214 = vrot.lane.b32.xlu1 %v4313_v7, %s3992_s9  ;;  %6775 = vst [vmem:[#allocation28_spill] sm:$0xff] %v4519_v32  ;;  %6777 = vst [vmem:[#allocation30_spill] sm:$0xff] %v4530_v35  ;;  %v986_v32 = vadd.f32 %v900_v50, %v4152_v26 }
 0x158   : > { %v1078_v21 = vpop.permute.xlu0 %1077  ;;  %6778 = vst [vmem:[#allocation31_spill] sm:$0xff] %v4538_v24  ;;  %v4543_v4 = vpop.f32.mrf.mxu0 }
 0x159   : > { %v4503_v59 = vpop.permute.xlu1 %1079  ;;  %6779 = vst [vmem:[#allocation32_spill] sm:$0xff] %v4543_v4  ;;  %v1338_v4 = vrot.slane %v4169_v43, 1 }
 0x15a   : > { %923 = vrot.lane.b32.xlu0 %v866_v16, %s3991_s8  ;;  %v1476_v16 = vrot.slane %v4323_v14, 2  ;;  %v4561_v26 = vpop.f32.mrf.mxu0 }
 0x15b   : > { %1099 = vrot.lane.b32.xlu1 %v1042_v40, %s3990_s7  ;;  %v1044_v40 = vsel %vm1015_vm3, %v1041_v47, %v1043_v45  ;;  %v6780_v47 = vrot.slane %v4344_v33, 1  ;;  %6782 = vst [vmem:[#allocation34_spill] sm:$0xff] %v4561_v26 }
 0x15c   : > { %v4521_v7 = vpop.permute.xlu0 %1196  ;;  %v1477_v14 = vsel %vm1015_vm3, %v1474_v48, %v1476_v16  ;;  %v1162_v48 = vadd.f32 %v4468_v1, %v986_v32  ;;  %v712_v32 = vpop.f32.mrf.mxu1 }
 0x15d   : > { %v1515_v54 = vpop.permute.xlu1 %1514  ;;  %v4554_v24 = vsel %vm839_vm4, %v1359_v55, %v6780_v47  ;;  %v1923_v36 = vrot.slane %v712_v32, 2 }
 0x15e   : > { %1216 = vrot.lane.b32.xlu0 %v4331_v23, %s3992_s9  ;;  %6781 = vst [vmem:[#allocation33_spill] sm:$0xff] %v4554_v24  ;;  %v1279_v26 = vadd.f32 %v4481_v42, %v1162_v48 }
 0x15f   : > { %1768 = vrot.lane.b32.xlu1 %v4530_v35, %s3992_s9  ;;  %v6700_v35 = vrot.slane %v4344_v33, 2 }
 0x160   : > { %v4534_v63 = vpop.permute.xlu0 %1081 }
 0x161   : > { %v1632_v38 = vpop.permute.xlu1 %1631  ;;  %v1479_v55 = vsel %vm1015_vm3, %v1476_v16, %v6700_v35 }
 0x162   : > { %1101 = vrot.lane.b32.xlu0 %v1044_v40, %s3990_s7  ;;  %v867_v40 = vrot.slane %v4331_v23, 1  ;;  %v1339_v23 = vrot.slane %v4188_v51, 1  ;;  %v3836_v51 = vpop.f32.mrf.mxu1 }
 0x163   : > { %1534 = vrot.lane.b32.xlu1 %v1477_v14, %s3991_s8 }
 0x164   : > { %v4546_v13 = vpop.permute.xlu0 %1516  ;;  %v868_v47 = vsel %vm839_vm4, %v865_v0, %v867_v40  ;;  %v1045_v0 = vrot.slane %v4348_v37, 2  ;;  %v1340_v42 = vsel %vm839_vm4, %v1338_v4, %v1339_v23  ;;  %v4593_v35 = vpop.f32.mrf.mxu1 }
 0x165   : > { %v4549_v9 = vpop.permute.xlu1 %905  ;;  %v1426_v43 = vadd.f32 %v1340_v42, %v1279_v26 }
 0x166   : > { %1770 = vrot.lane.b32.xlu0 %v4554_v24, %s3992_s9  ;;  %v4573_v24 = vpop.f32.mrf.mxu0  ;;  %v1046_v26 = vsel %vm1015_vm3, %v1043_v45, %v1045_v0  ;;  %v3839_v32 = vpop.f32.mrf.mxu1  ;;  %v6706_v45 = vrot.slane %v4370_v5, 2 }
 0x167   : > { %1651 = vrot.lane.b32.xlu1 %v4344_v33, %s3990_s7  ;;  %6783 = vst [vmem:[#allocation35_spill] sm:$0xff] %v4573_v24  ;;  %v6785_v24 = vrot.slane %v4348_v37, 1  ;;  %v1601_v4 = vadd.f32 %v1515_v54, %v1426_v43 }
 0x168   : > { %v1634_v50 = vpop.permute.xlu0 %1633  ;;  %v4589_v48 = vpop.f32.mrf.mxu0 }
 0x169   : > { %v4564_v14 = vpop.permute.xlu1 %1198  ;;  %6784 = vst [vmem:[#allocation36_spill] sm:$0xff] %v4589_v48  ;;  %v870_v51 = vsel %vm839_vm4, %v867_v40, %v6785_v24  ;;  %v4611_v24 = vsel %vm1015_vm3, %v6786_v3, %v1923_v36  ;;  %v1718_v40 = vadd.f32 %v1632_v38, %v1601_v4  ;;  %v6788_v3 = vrot.slane %v4344_v33, 1 }
 0x16a   : > { %1536 = vrot.lane.b32.xlu0 %v1479_v55, %s3991_s8  ;;  %v4604_v42 = vpop.f32.mrf.mxu0 }
 0x16b   : > { %925 = vrot.lane.b32.xlu1 %v868_v47, %s3991_s8  ;;  %v1163_v47 = vadd.f32 %v1078_v21, %v987_v60  ;;  %v6705_v60 = vrot.slane %v4593_v35, 2  ;;  %v1363_v21 = vrot.slane %v4357_v53, 1 }
 0x16c   : > { %v4576_v1 = vpop.permute.xlu0 %907  ;;  %v4632_v38 = vpop.f32.mrf.mxu0 }
 0x16d   : > { %v4581_v55 = vpop.permute.xlu1 %1083  ;;  %v1280_v48 = vadd.f32 %v4483_v34, %v1163_v47  ;;  %v4616_v54 = vsel %vm1015_vm3, %v1923_v36, %v6705_v60  ;;  %v1480_v34 = vrot.slane %v4357_v53, 2  ;;  %v6787_v47 = vrot.slane %v4198_v58, 1 }
 0x16e   : > { %1653 = vrot.lane.b32.xlu0 %v4357_v53, %s3990_s7  ;;  %v4630_v36 = vsel %vm839_vm4, %v6788_v3, %v1363_v21  ;;  %v6707_v3 = vrot.slane %v4378_v11, 2 }
 0x16f   : > { %1218 = vrot.lane.b32.xlu1 %v4348_v37, %s3992_s9  ;;  %v1342_v18 = vsel %vm839_vm4, %v1339_v23, %v6787_v47  ;;  %v6704_v23 = vrot.slane %v4378_v11, 1 }
 0x170   : > { %v4591_v30 = vpop.permute.xlu0 %1200  ;;  %v1427_v4 = vadd.f32 %v1342_v18, %v1280_v48  ;;  %v6789_v48 = vrot.slane %v4344_v33, 2  ;;  %v4650_v18 = vpop.f32.mrf.mxu0 }
 0x171   : > { %v4595_v16 = vpop.permute.xlu1 %1518  ;;  %v4664_v33 = vsel %vm839_vm4, %v1363_v21, %v6704_v23 }
 0x172   : > { %927 = vrot.lane.b32.xlu0 %v870_v51, %s3991_s8  ;;  %v1602_v32 = vadd.f32 %v4546_v13, %v1427_v4  ;;  %v1481_v47 = vsel %vm1015_vm3, %v6789_v48, %v1480_v34  ;;  %v4656_v13 = vld [vmem:[%s6668_s2] ss:$0 sm:$0xff] }
 0x173   : > { %1103 = vrot.lane.b32.xlu1 %v1046_v26, %s3990_s7 }
 0x174   : > { %v4618_v43 = vpop.permute.xlu0 %1085 }
 0x175   : > { %v1753_v51 = vpop.permute.xlu1 %1752 }
 0x176   : > { %v1839_v26 = vadd.f32 %v1753_v51, %v1718_v40  ;;  %1220 = vrot.lane.b32.xlu0 %v4370_v5, %s3992_s9  ;;  %v1048_v51 = vsel %vm1015_vm3, %v1045_v0, %v6706_v45  ;;  %v720_v45 = vpop.f32.mrf.mxu1 }
 0x177   : > { %1772 = vrot.lane.b32.xlu1 %v4630_v36, %s3992_s9 }
 0x178   : > { %v1986_v53 = vadd.f32 %v4244_v25, %v1839_v26  ;;  %v4637_v58 = vpop.permute.xlu0 %1520  ;;  %v1719_v25 = vadd.f32 %v1634_v50, %v1602_v32  ;;  %v871_v50 = vrot.slane %v4370_v5, 1  ;;  %v4669_v32 = vpop.f32.mrf.mxu0 }
 0x179   : > { %v4641_v40 = vpop.permute.xlu1 %1635 }
 0x17a   : > { %1105 = vrot.lane.b32.xlu0 %v1048_v51, %s3990_s7  ;;  %v988_v51 = vadd.f32 %v4492_v31, %v4165_v41  ;;  %v2022_v48 = vadd.f32 %v4656_v13, %v1986_v53  ;;  %v4679_v21 = vpop.f32.mrf.mxu0  ;;  %v1483_v41 = vsel %vm1015_vm3, %v1480_v34, %v6707_v3 }
 0x17b   : > { %1538 = vrot.lane.b32.xlu1 %v1481_v47, %s3991_s8  ;;  %6790 = vst [vmem:[#allocation37_spill] sm:$0xff] %v4679_v21 }
 0x17c   : > { %v1755_v26 = vpop.permute.xlu0 %1754  ;;  %v4692_v53 = vpop.f32.mrf.mxu0 }
 0x17d   : > { %v1840_v0 = vadd.f32 %v1755_v26, %v1719_v25  ;;  %v4659_v4 = vpop.permute.xlu1 %909  ;;  %v1164_v26 = vadd.f32 %v4503_v59, %v988_v51  ;;  %6792 = vst [vmem:[#allocation38_spill] sm:$0xff] %v4692_v53  ;;  %v2051_v59 = vmax.f32 %v2022_v48, 0.0  ;;  %v1049_v53 = vrot.slane %v4384_v20, 2 }
 0x17e   : > { %1774 = vrot.lane.b32.xlu0 %v4664_v33, %s3992_s9  ;;  %v6795_v48 = vmov 0  }
 0x17f   : > { %v1987_v47 = vadd.f32 %v4263_v39, %v1840_v0  ;;  %1655 = vrot.lane.b32.xlu1 %v4378_v11, %s3990_s7  ;;  %v6791_v39 = vrot.slane %v4348_v37, 1  ;;  %v989_v0 = vadd.f32 %v4549_v9, %v4177_v46  ;;  %v1281_v34 = vadd.f32 %v4521_v7, %v1164_v26  ;;  %v3840_v46 = vpop.f32.mrf.mxu1 }
 0x180   : > { %v4677_v25 = vpop.permute.xlu0 %1637 }
 0x181   : > { %v2023_v23 = vadd.f32 %v4656_v13, %v1987_v47  ;;  %v4683_v60 = vpop.permute.xlu1 %1202  ;;  %v872_v31 = vsel %vm839_vm4, %v6791_v39, %v871_v50  ;;  %v4703_v39 = vpop.f32.mrf.mxu0  ;;  %v1165_v9 = vadd.f32 %v4534_v63, %v989_v0  ;;  %v1927_v0 = vrot.slane %v720_v45, 2 }
 0x182   : > { %1540 = vrot.lane.b32.xlu0 %v1483_v41, %s3991_s8  ;;  %v6712_v41 = vrot.slane %v4384_v20, 1  ;;  %6793 = vst [vmem:[#allocation39_spill] sm:$0xff] %v4703_v39  ;;  %v4718_v26 = vpop.f32.mrf.mxu1  ;;  %v6797_v39 = vrot.slane %v4370_v5, 2 }
 0x183   : > { %v2052_v51 = vmax.f32 %v2023_v23, 0.0  ;;  %929 = vrot.lane.b32.xlu1 %v872_v31, %s3991_s8  ;;  %v4711_v7 = vpop.f32.mrf.mxu0  ;;  %v1428_v31 = vadd.f32 %v4281_v49, %v1281_v34  ;;  %v1282_v37 = vadd.f32 %v4564_v14, %v1165_v9 }
 0x184   : > { %v4697_v47 = vpop.permute.xlu0 %911  ;;  %6794 = vst [vmem:[#allocation40_spill] sm:$0xff] %v4711_v7  ;;  %v874_v63 = vsel %vm839_vm4, %v871_v50, %v6712_v41  ;;  %v1367_v7 = vrot.slane %v4392_v17, 1  ;;  %v1050_v49 = vsel %vm1015_vm3, %v6797_v39, %v1049_v53  ;;  %v3843_v34 = vpop.f32.mrf.mxu1  ;;  %v6798_v41 = vrot.slane %v4593_v35, 2 }
 0x185   : > { %v2080_v3 = vpack.c.bf16 %v2052_v51, %v2051_v59  ;;  %v4701_v21 = vpop.permute.xlu1 %1087  ;;  %v6713_v51 = vrot.slane %v4718_v26, 2  ;;  %v603_v46 = vpop.f32.mrf.mxu0  ;;  %v1603_v50 = vadd.f32 %v4595_v16, %v1428_v31  ;;  %v6714_v39 = vrot.slane %v4408_v29, 2 }
 0x186   : > { %1657 = vrot.lane.b32.xlu0 %v4392_v17, %s3990_s7  ;;  %v4739_v45 = vsel %vm1015_vm3, %v6798_v41, %v1927_v0  ;;  %v1484_v35 = vrot.slane %v4392_v17, 2  ;;  %v1429_v16 = vadd.f32 %v4297_v56, %v1282_v37  ;;  %v6799_v31 = vrot.slane %v4378_v11, 1 }
 0x187   : > { %3731 = vmatmul.mubr.msk.bf16.vlgmr.msra.gmra.mxu0 %vm2135_vm5, %v2080_v3  ;;  %3874 = vmatmul.mubr.msk.bf16.vlgmr.msra.gmra.mxu1 %vm2135_vm5, %v2080_v3  ;;  %v6796_v3 = vmov 0.0   ;;  %v4744_v46 = vsel %vm1015_vm3, %v1927_v0, %v6713_v51  ;;  %v1720_v14 = vadd.f32 %v4641_v40, %v1603_v50  ;;  %v6716_v40 = vrot.slane %v4416_v6, 1 }
 0x188   : > { %1222 = vrot.lane.b32.xlu1 %v4384_v20, %s3992_s9  ;;  %v4715_v23 = vpop.permute.xlu0 %1204  ;;  %2221 = vmatprep.mubr.bf16.mxu0 %v6795_v48  ;;  %v4758_v0 = vsel %vm839_vm4, %v6799_v31, %v1367_v7  ;;  %v1604_v34 = vadd.f32 %v4637_v58, %v1429_v16  ;;  %v1052_v56 = vsel %vm1015_vm3, %v1049_v53, %v6714_v39  ;;  %v728_v31 = vpop.f32.mrf.mxu1  ;;  %v6715_v51 = vrot.slane %v4416_v6, 2 }
 0x189   : > { %v4721_v59 = vpop.permute.xlu1 %1522  ;;  %3877 = vmatprep.mubr.msk.bf16.mxu1 %vm3989_vm1, %v6796_v3  ;;  %v990_v16 = vadd.f32 %v4576_v1, %v4195_v57 }
 0x18a   : > { %931 = vrot.lane.b32.xlu0 %v874_v63, %s3991_s8  ;;  %v1721_v37 = vadd.f32 %v4677_v25, %v1604_v34  ;;  %v875_v25 = vrot.slane %v4408_v29, 1 }
 0x18c   : > { %1107 = vrot.lane.b32.xlu1 %v1050_v49, %s3990_s7  ;;  %v4747_v63 = vpop.permute.xlu0 %1089 }
 0x18d   : > { %v1757_v9 = vpop.permute.xlu1 %1756 }
 0x18e   : > { %1224 = vrot.lane.b32.xlu0 %v4408_v29, %s3992_s9  ;;  %v1841_v41 = vadd.f32 %v1757_v9, %v1720_v14  ;;  %v6800_v14 = vrot.slane %v4378_v11, 2  ;;  %v3844_v11 = vpop.f32.mrf.mxu1 }
 0x190   : > { %1776 = vrot.lane.b32.xlu1 %v4758_v0, %s3992_s9  ;;  %v4762_v49 = vpop.permute.xlu0 %1524  ;;  %v1988_v17 = vadd.f32 %v4316_v8, %v1841_v41  ;;  %v1485_v9 = vsel %vm1015_vm3, %v6800_v14, %v1484_v35  ;;  %v4786_v8 = vsel %vm839_vm4, %v1367_v7, %v6716_v40  ;;  %v4793_v1 = vpop.f32.mrf.mxu1  ;;  %v1166_v7 = vadd.f32 %v4581_v55, %v990_v16 }
 0x191   : > { %v4766_v50 = vpop.permute.xlu1 %1639  ;;  %v1487_v14 = vsel %vm1015_vm3, %v1484_v35, %v6715_v51  ;;  %v6801_v55 = vrot.slane %v4384_v20, 1 }
 0x192   : > { %1109 = vrot.lane.b32.xlu0 %v1052_v56, %s3990_s7  ;;  %v2024_v41 = vadd.f32 %v4656_v13, %v1988_v17  ;;  %v3847_v17 = vpop.f32.mrf.mxu1  ;;  %v1283_v35 = vadd.f32 %v4591_v30, %v1166_v7  ;;  %v6803_v30 = vrot.slane %v4718_v26, 2 }
 0x193   : > { %v876_v16 = vsel %vm839_vm4, %v6801_v55, %v875_v25  ;;  %v1931_v55 = vrot.slane %v728_v31, 2 }
 0x194   : > { %1542 = vrot.lane.b32.xlu1 %v1485_v9, %s3991_s8  ;;  %v1759_v58 = vpop.permute.xlu0 %1758  ;;  %v991_v9 = vadd.f32 %v4659_v4, %v4203_v61  ;;  %v1053_v4 = vrot.slane %v4421_v15, 2 }
 0x195   : > { %v1842_v53 = vadd.f32 %v1759_v58, %v1721_v37  ;;  %v4781_v39 = vpop.permute.xlu1 %913  ;;  %v2053_v58 = vmax.f32 %v2024_v41, 0.0 }
 0x196   : > { %1778 = vrot.lane.b32.xlu0 %v4786_v8, %s3992_s9 }
 0x197   : > { %v1989_v57 = vadd.f32 %v4334_v28, %v1842_v53  ;;  %v4807_v28 = vpop.f32.mrf.mxu0 }
 0x198   : > { %1659 = vrot.lane.b32.xlu1 %v4416_v6, %s3990_s7  ;;  %v4797_v34 = vpop.permute.xlu0 %1641 }
 0x199   : > { %v2025_v56 = vadd.f32 %v4656_v13, %v1989_v57  ;;  %v4801_v37 = vpop.permute.xlu1 %1206  ;;  %v4817_v57 = vpop.f32.mrf.mxu1 }
 0x19a   : > { %1544 = vrot.lane.b32.xlu0 %v1487_v14, %s3991_s8  ;;  %v6717_v14 = vrot.slane %v4421_v15, 1  ;;  %v608_v61 = vpop.f32.mrf.mxu0 }
 0x19b   : > { %v2054_v53 = vmax.f32 %v2025_v56, 0.0  ;;  %v3848_v41 = vpop.f32.mrf.mxu1  ;;  %v1167_v56 = vadd.f32 %v4618_v43, %v991_v9  ;;  %v1430_v43 = vadd.f32 %v4340_v12, %v1283_v35  ;;  %v6802_v61 = vrot.slane %v4408_v29, 2 }
 0x19c   : > { %933 = vrot.lane.b32.xlu1 %v876_v16, %s3991_s8  ;;  %v4815_v11 = vpop.permute.xlu0 %915  ;;  %v4830_v7 = vpop.f32.mrf.mxu0  ;;  %v1371_v16 = vrot.slane %v4428_v22, 1  ;;  %v6827_v29 = vrot.slane %v4449_v44, 2 }
 0x19d   : > { %v4821_v17 = vpop.permute.xlu1 %1091  ;;  %v2081_v51 = vpack.c.bf16 %v2054_v53, %v2053_v58  ;;  %v4837_v53 = vpop.f32.mrf.mxu1  ;;  %v1054_v41 = vsel %vm1015_vm3, %v6802_v61, %v1053_v4  ;;  %v1284_v12 = vadd.f32 %v4683_v60, %v1167_v56  ;;  %v1605_v35 = vadd.f32 %v4721_v59, %v1430_v43 }
 0x19e   : > { %1661 = vrot.lane.b32.xlu0 %v4428_v22, %s3990_s7  ;;  %v611_v31 = vpop.f32.mrf.mxu0  ;;  %v6718_v60 = vrot.slane %v4436_v27, 2  ;;  %v1488_v56 = vrot.slane %v4428_v22, 2  ;;  %v6807_v43 = vrot.slane %v4416_v6, 1  ;;  %v6720_v22 = vrot.slane %v4449_v44, 1 }
 0x19f   : > { %3732 = vmatmul.mubr.msk.bf16.gmra.mxu0 %vm2135_vm5, %v2081_v51  ;;  %3878 = vmatmul.mubr.msk.bf16.gmra.mxu1 %vm2135_vm5, %v2081_v51  ;;  %v878_v51 = vsel %vm839_vm4, %v875_v25, %v6717_v14  ;;  %v3851_v40 = vpop.f32.mrf.mxu1  ;;  %v4857_v25 = vsel %vm1015_vm3, %v6803_v30, %v1931_v55  ;;  %v6805_v31 = vrot.slane %v4793_v1, 2  ;;  %v1722_v59 = vadd.f32 %v4766_v50, %v1605_v35 }
 0x1a0   : > { %1226 = vrot.lane.b32.xlu1 %v4421_v15, %s3992_s9  ;;  %v4834_v58 = vpop.permute.xlu0 %1208  ;;  %2231 = vmatprep.mubr.bf16.mxu0 %v6795_v48  ;;  %6804 = vst [vmem:[#allocation41_spill] sm:$0xff] %v4857_v25  ;;  %v992_v35 = vadd.f32 %v4697_v47, %v4213_v2 }
 0x1a1   : > { %v4840_v9 = vpop.permute.xlu1 %1526  ;;  %3881 = vmatprep.mubr.msk.bf16.mxu1 %vm3989_vm1, %v6796_v3  ;;  %v4862_v14 = vsel %vm1015_vm3, %v1931_v55, %v6805_v31  ;;  %v4867_v61 = vpop.f32.mrf.mxu1  ;;  %v1431_v55 = vadd.f32 %v4355_v52, %v1284_v12 }
 0x1a2   : > { %935 = vrot.lane.b32.xlu0 %v878_v51, %s3991_s8  ;;  %6806 = vst [vmem:[#allocation42_spill] sm:$0xff] %v4862_v14  ;;  %v6808_v14 = vrot.slane %v4416_v6, 2 }
 0x1a3   : > { %v3852_v26 = vpop.f32.mrf.mxu1  ;;  %v1606_v52 = vadd.f32 %v4762_v49, %v1431_v55  ;;  %v1168_v55 = vadd.f32 %v4701_v21, %v992_v35 }
 0x1a4   : > { %1111 = vrot.lane.b32.xlu1 %v1054_v41, %s3990_s7  ;;  %v4865_v51 = vpop.permute.xlu0 %1093  ;;  %v4878_v41 = vsel %vm839_vm4, %v6807_v43, %v1371_v16  ;;  %v1489_v2 = vsel %vm1015_vm3, %v6808_v14, %v1488_v56  ;;  %v993_v14 = vadd.f32 %v4781_v39, %v4223_v10 }
 0x1a5   : > { %v1761_v40 = vpop.permute.xlu1 %1760  ;;  %v4884_v50 = vpop.f32.mrf.mxu1  ;;  %v1723_v26 = vadd.f32 %v4797_v34, %v1606_v52  ;;  %v879_v34 = vrot.slane %v4436_v27, 1 }
 0x1a6   : > { %1228 = vrot.lane.b32.xlu0 %v4436_v27, %s3992_s9  ;;  %v1843_v30 = vadd.f32 %v1761_v40, %v1722_v59  ;;  %v1056_v59 = vsel %vm1015_vm3, %v1053_v4, %v6718_v60  ;;  %v6719_v4 = vrot.slane %v4449_v44, 2 }
 0x1a7   : > { %v3855_v40 = vpop.f32.mrf.mxu1 }
 0x1a8   : > { %1780 = vrot.lane.b32.xlu1 %v4878_v41, %s3992_s9  ;;  %v4882_v31 = vpop.permute.xlu0 %1528  ;;  %v1990_v43 = vadd.f32 %v4364_v62, %v1843_v30  ;;  %v4909_v62 = vsel %vm839_vm4, %v1371_v16, %v6720_v22  ;;  %v1285_v16 = vadd.f32 %v4715_v23, %v1168_v55  ;;  %v1491_v10 = vsel %vm1015_vm3, %v1488_v56, %v6719_v4  ;;  %v6811_v56 = vld [vmem:[#allocation12_spill] sm:$0xff] }
 0x1a9   : > { %v1644_v12 = vpop.permute.xlu1 %1643  ;;  %v4900_v49 = vpop.f32.mrf.mxu1 }
 0x1aa   : > { %1113 = vrot.lane.b32.xlu0 %v1056_v59, %s3990_s7  ;;  %v2026_v21 = vadd.f32 %v4656_v13, %v1990_v43  ;;  %v1432_v4 = vadd.f32 %v6811_v56, %v1285_v16 }
 0x1ab   : > { %v3856_v6 = vpop.f32.mrf.mxu1 }
 0x1ac   : > { %1546 = vrot.lane.b32.xlu1 %v1489_v2, %s3991_s8  ;;  %v1763_v47 = vpop.permute.xlu0 %1762  ;;  %v6809_v2 = vrot.slane %v4421_v15, 1  ;;  %v6810_v6 = vld [vmem:[#allocation20_spill] sm:$0xff] }
 0x1ad   : > { %v1844_v60 = vadd.f32 %v1763_v47, %v1723_v26  ;;  %v4904_v59 = vpop.permute.xlu1 %917  ;;  %v4920_v52 = vpop.f32.mrf.mxu1 }
 0x1ae   : > { %1782 = vrot.lane.b32.xlu0 %v4909_v62, %s3992_s9  ;;  %v880_v47 = vsel %vm839_vm4, %v6809_v2, %v879_v34  ;;  %v1607_v2 = vadd.f32 %v4840_v9, %v1432_v4  ;;  %v6813_v4 = vrot.slane %v4436_v27, 2 }
 0x1af   : > { %v1991_v30 = vadd.f32 %v4367_v19, %v1844_v60  ;;  %v3859_v39 = vpop.f32.mrf.mxu1  ;;  %v1169_v19 = vadd.f32 %v4747_v63, %v993_v14  ;;  %v2055_v60 = vmax.f32 %v2026_v21, 0.0  ;;  %v1057_v63 = vrot.slane %v6810_v6, 2  ;;  %v6812_v14 = vld [vmem:[#allocation21_spill] sm:$0xff] }
 0x1b0   : > { %1663 = vrot.lane.b32.xlu1 %v4449_v44, %s3990_s7  ;;  %v1646_v35 = vpop.permute.xlu0 %1645 }
 0x1b1   : > { %v2027_v40 = vadd.f32 %v4656_v13, %v1991_v30  ;;  %v4924_v26 = vpop.permute.xlu1 %1210  ;;  %v4937_v55 = vpop.f32.mrf.mxu1  ;;  %v6721_v30 = vrot.slane %v6810_v6, 1  ;;  %v1058_v56 = vsel %vm1015_vm3, %v6813_v4, %v1057_v63  ;;  %v6819_v4 = vld [vmem:[#allocation23_spill] sm:$0xff] }
 0x1b2   : > { %1548 = vrot.lane.b32.xlu0 %v1491_v10, %s3991_s8 }
 0x1b3   : > { %v2056_v43 = vmax.f32 %v2027_v40, 0.0  ;;  %v3860_v21 = vpop.f32.mrf.mxu1  ;;  %v1286_v40 = vadd.f32 %v4801_v37, %v1169_v19  ;;  %v1724_v37 = vadd.f32 %v1644_v12, %v1607_v2  ;;  %v882_v9 = vsel %vm839_vm4, %v879_v34, %v6721_v30 }
 0x1b4   : > { %937 = vrot.lane.b32.xlu1 %v880_v47, %s3991_s8  ;;  %v4935_v23 = vpop.permute.xlu0 %919  ;;  %v1935_v47 = vrot.slane %v4817_v57, 2  ;;  %v1375_v57 = vrot.slane %v6812_v14, 1  ;;  %v6814_v21 = vld [vmem:[#allocation14_spill] sm:$0xff]  ;;  %v6815_v2 = vrot.slane %v4793_v1, 2  ;;  %v6817_v34 = vrot.slane %v4837_v53, 2 }
 0x1b5   : > { %v4941_v10 = vpop.permute.xlu1 %1095  ;;  %v2082_v39 = vpack.c.bf16 %v2056_v43, %v2055_v60  ;;  %v4957_v43 = vpop.f32.mrf.mxu1  ;;  %v1433_v22 = vadd.f32 %v6814_v21, %v1286_v40 }
 0x1b6   : > { %1665 = vrot.lane.b32.xlu0 %v6812_v14, %s3990_s7  ;;  %v4973_v16 = vsel %vm1015_vm3, %v6815_v2, %v1935_v47  ;;  %v4978_v30 = vsel %vm1015_vm3, %v1935_v47, %v6817_v34  ;;  %v6820_v47 = vld [vmem:[#allocation10_spill] sm:$0xff] }
 0x1b7   : > { %3733 = vmatmul.mubr.msk.bf16.gmra.mxu0 %vm2135_vm5, %v2082_v39  ;;  %3882 = vmatmul.mubr.msk.bf16.gmra.mxu1 %vm2135_vm5, %v2082_v39  ;;  %v3863_v39 = vpop.f32.mrf.mxu1  ;;  %6816 = vst [vmem:[#allocation12_spill] sm:$0xff] %v4973_v16  ;;  %6818 = vst [vmem:[#allocation21_spill] sm:$0xff] %v4978_v30  ;;  %v1608_v40 = vadd.f32 %v4882_v31, %v1433_v22  ;;  %v6823_v22 = vld [vmem:[#allocation2_spill] sm:$0xff] }
 0x1b8   : > { %1230 = vrot.lane.b32.xlu1 %v6810_v6, %s3992_s9  ;;  %v4954_v60 = vpop.permute.xlu0 %1212  ;;  %2241 = vmatprep.mubr.bf16.mxu0 %v6795_v48  ;;  %v994_v30 = vadd.f32 %v4815_v11, %v6823_v22 }
 0x1b9   : > { %v1765_v19 = vpop.permute.xlu1 %1764  ;;  %3885 = vmatprep.mubr.msk.bf16.mxu1 %vm3989_vm1, %v6796_v3  ;;  %v4983_v27 = vpop.f32.mrf.mxu1  ;;  %v1725_v21 = vadd.f32 %v1646_v35, %v1608_v40 }
 0x1ba   : > { %939 = vrot.lane.b32.xlu0 %v882_v9, %s3991_s8  ;;  %v1845_v12 = vadd.f32 %v1765_v19, %v1724_v37  ;;  %v1492_v19 = vrot.slane %v6812_v14, 2 }
 0x1bb   : > { %v3864_v1 = vpop.f32.mrf.mxu1 }
 0x1bc   : > { %1115 = vrot.lane.b32.xlu1 %v1058_v56, %s3990_s7  ;;  %v4981_v9 = vpop.permute.xlu0 %1097  ;;  %v1992_v2 = vadd.f32 %v6820_v47, %v1845_v12  ;;  %v6821_v56 = vrot.slane %v4449_v44, 1  ;;  %v6824_v1 = vld [vmem:[#allocation24_spill] sm:$0xff]  ;;  %v6825_v12 = vrot.slane %v6819_v4, 2  ;;  %v1493_v25 = vsel %vm1015_vm3, %v6827_v29, %v1492_v19 }
 0x1bd   : > { %v1531_v37 = vpop.permute.xlu1 %1530  ;;  %v4998_v31 = vpop.f32.mrf.mxu1  ;;  %v6727_v16 = vrot.slane %v6824_v1, 1  ;;  %v883_v29 = vrot.slane %v6819_v4, 1 }
 0x1be   : > { %1232 = vrot.lane.b32.xlu0 %v6819_v4, %s3992_s9  ;;  %v4994_v34 = vsel %vm839_vm4, %v6821_v56, %v1375_v57  ;;  %v1060_v40 = vsel %vm1015_vm3, %v1057_v63, %v6825_v12  ;;  %v2028_v56 = vadd.f32 %v4656_v13, %v1992_v2  ;;  %v6726_v63 = vrot.slane %v6824_v1, 2 }
 0x1bf   : > { %6822 = vst [vmem:[#allocation14_spill] sm:$0xff] %v4994_v34  ;;  %v3867_v47 = vpop.f32.mrf.mxu1  ;;  %v5023_v2 = vsel %vm839_vm4, %v1375_v57, %v6727_v16 }
 0x1c0   : > { %1784 = vrot.lane.b32.xlu1 %v4994_v34, %s3992_s9  ;;  %v1767_v39 = vpop.permute.xlu0 %1766  ;;  %v6826_v34 = vld [vmem:[#allocation11_spill] sm:$0xff]  ;;  %v1495_v57 = vsel %vm1015_vm3, %v1492_v19, %v6726_v63  ;;  %v6830_v19 = vld [vmem:[#allocation25_spill] sm:$0xff] }
 0x1c1   : > { %v1846_v14 = vadd.f32 %v1767_v39, %v1725_v21  ;;  %v1648_v35 = vpop.permute.xlu1 %1647  ;;  %v5013_v39 = vpop.f32.mrf.mxu1  ;;  %v1170_v21 = vadd.f32 %v4821_v17, %v994_v30  ;;  %v2057_v30 = vmax.f32 %v2028_v56, 0.0 }
 0x1c2   : > { %1117 = vrot.lane.b32.xlu0 %v1060_v40, %s3990_s7 }
 0x1c3   : > { %v1993_v15 = vadd.f32 %v6826_v34, %v1846_v14  ;;  %v3868_v44 = vpop.f32.mrf.mxu1  ;;  %v1287_v14 = vadd.f32 %v4834_v58, %v1170_v21  ;;  %v6728_v21 = vrot.slane %v6830_v19, 1 }
 0x1c4   : > { %1550 = vrot.lane.b32.xlu1 %v1493_v25, %s3991_s8  ;;  %v1533_v11 = vpop.permute.xlu0 %1532  ;;  %v6828_v25 = vld [vmem:[#allocation3_spill] sm:$0xff] }
 0x1c5   : > { %v2029_v22 = vadd.f32 %v4656_v13, %v1993_v15  ;;  %v5018_v12 = vpop.permute.xlu1 %921  ;;  %v995_v17 = vadd.f32 %v4904_v59, %v6828_v25  ;;  %v6829_v59 = vrot.slane %v6810_v6, 1  ;;  %v886_v63 = vsel %vm839_vm4, %v883_v29, %v6728_v21  ;;  %v6839_v21 = vld [vmem:[#allocation29_spill] sm:$0xff] }
 0x1c6   : > { %1786 = vrot.lane.b32.xlu0 %v5023_v2, %s3992_s9 }
 0x1c7   : > { %v2058_v34 = vmax.f32 %v2029_v22, 0.0  ;;  %v1171_v44 = vadd.f32 %v4865_v51, %v995_v17  ;;  %v884_v56 = vsel %vm839_vm4, %v6829_v59, %v883_v29  ;;  %v6831_v22 = vld [vmem:[#allocation19_spill] sm:$0xff]  ;;  %v1061_v51 = vrot.slane %v6830_v19, 2  ;;  %v6832_v17 = vld [vmem:[#allocation26_spill] sm:$0xff] }
 0x1c8   : > { %1667 = vrot.lane.b32.xlu1 %v6824_v1, %s3990_s7  ;;  %v1650_v15 = vpop.permute.xlu0 %1649  ;;  %v1434_v25 = vadd.f32 %v6831_v22, %v1287_v14  ;;  %v1379_v16 = vrot.slane %v6832_v17, 1  ;;  %v6835_v59 = vrot.slane %v4837_v53, 2  ;;  %v1496_v53 = vrot.slane %v6832_v17, 2 }
 0x1c9   : > { %v5033_v40 = vpop.permute.xlu1 %1214  ;;  %v2083_v47 = vpack.c.bf16 %v2058_v34, %v2057_v30  ;;  %v1288_v34 = vadd.f32 %v4924_v26, %v1171_v44  ;;  %v6833_v26 = vrot.slane %v6819_v4, 2 }
 0x1ca   : > { %1552 = vrot.lane.b32.xlu0 %v1495_v57, %s3991_s8  ;;  %v1609_v57 = vadd.f32 %v1531_v37, %v1434_v25  ;;  %v6834_v37 = vld [vmem:[#allocation22_spill] sm:$0xff] }
 0x1cb   : > { %3734 = vmatmul.mubr.msk.bf16.gmra.mxu0 %vm2135_vm5, %v2083_v47  ;;  %3886 = vmatmul.mubr.msk.bf16.gmra.mxu1 %vm2135_vm5, %v2083_v47  ;;  %v1939_v47 = vrot.slane %v4867_v61, 2  ;;  %v1062_v61 = vsel %vm1015_vm3, %v6833_v26, %v1061_v51  ;;  %v1435_v44 = vadd.f32 %v6834_v37, %v1288_v34  ;;  %v6842_v37 = vld [vmem:[#allocation4_spill] sm:$0xff] }
 0x1cc   : > { %941 = vrot.lane.b32.xlu1 %v884_v56, %s3991_s8  ;;  %v5046_v58 = vpop.permute.xlu0 %923  ;;  %2251 = vmatprep.mubr.bf16.mxu0 %v6795_v48  ;;  %v1726_v56 = vadd.f32 %v1648_v35, %v1609_v57  ;;  %v6837_v57 = vrot.slane %v4884_v50, 2 }
 0x1cd   : > { %v5051_v30 = vpop.permute.xlu1 %1099  ;;  %3889 = vmatprep.mubr.msk.bf16.mxu1 %vm3989_vm1, %v6796_v3  ;;  %v5077_v35 = vsel %vm1015_vm3, %v6835_v59, %v1939_v47  ;;  %v1610_v26 = vadd.f32 %v1533_v11, %v1435_v44  ;;  %v6840_v59 = vld [vmem:[#allocation17_spill] sm:$0xff]  ;;  %v996_v11 = vadd.f32 %v4935_v23, %v6842_v37  ;;  %v6843_v44 = vld [vmem:[#allocation31_spill] sm:$0xff] }
 0x1ce   : > { %1669 = vrot.lane.b32.xlu0 %v6832_v17, %s3990_s7  ;;  %6836 = vst [vmem:[#allocation10_spill] sm:$0xff] %v5077_v35  ;;  %v5082_v29 = vsel %vm1015_vm3, %v1939_v47, %v6837_v57  ;;  %v6732_v57 = vrot.slane %v6843_v44, 1 }
 0x1cf   : > { %6838 = vst [vmem:[#allocation2_spill] sm:$0xff] %v5082_v29  ;;  %v1727_v34 = vadd.f32 %v1650_v15, %v1610_v26  ;;  %v6844_v15 = vrot.slane %v6839_v21, 2  ;;  %v6845_v26 = vld [vmem:[#allocation18_spill] sm:$0xff] }
 0x1d0   : > { %1234 = vrot.lane.b32.xlu1 %v6830_v19, %s3992_s9  ;;  %v5063_v14 = vpop.permute.xlu0 %1216 }
 0x1d1   : > { %v1769_v22 = vpop.permute.xlu1 %1768  ;;  %v1064_v17 = vsel %vm1015_vm3, %v1061_v51, %v6844_v15 }
 0x1d2   : > { %943 = vrot.lane.b32.xlu0 %v886_v63, %s3991_s8  ;;  %v1847_v25 = vadd.f32 %v1769_v22, %v1726_v56  ;;  %v6841_v22 = vrot.slane %v6824_v1, 1 }
 0x1d4   : > { %1119 = vrot.lane.b32.xlu1 %v1062_v61, %s3990_s7  ;;  %v5085_v63 = vpop.permute.xlu0 %1101  ;;  %v1994_v56 = vadd.f32 %v6840_v59, %v1847_v25  ;;  %v5095_v47 = vsel %vm839_vm4, %v6841_v22, %v1379_v16  ;;  %v6846_v22 = vrot.slane %v6824_v1, 2  ;;  %v6847_v1 = vld [vmem:[#allocation5_spill] sm:$0xff] }
 0x1d5   : > { %v1535_v6 = vpop.permute.xlu1 %1534 }
 0x1d6   : > { %1236 = vrot.lane.b32.xlu0 %v6839_v21, %s3992_s9  ;;  %v2030_v25 = vadd.f32 %v4656_v13, %v1994_v56  ;;  %v1497_v35 = vsel %vm1015_vm3, %v6846_v22, %v1496_v53  ;;  %v5120_v56 = vsel %vm839_vm4, %v1379_v16, %v6732_v57 }
 0x1d8   : > { %1788 = vrot.lane.b32.xlu1 %v5095_v47, %s3992_s9  ;;  %v1771_v61 = vpop.permute.xlu0 %1770 }
 0x1d9   : > { %v1848_v4 = vadd.f32 %v1771_v61, %v1727_v34  ;;  %v1652_v29 = vpop.permute.xlu1 %1651  ;;  %v1172_v34 = vadd.f32 %v4941_v10, %v996_v11  ;;  %v6731_v61 = vrot.slane %v6843_v44, 2  ;;  %v2059_v10 = vmax.f32 %v2030_v25, 0.0 }
 0x1da   : > { %1121 = vrot.lane.b32.xlu0 %v1064_v17, %s3990_s7 }
 0x1db   : > { %v1995_v59 = vadd.f32 %v6845_v26, %v1848_v4  ;;  %v887_v4 = vrot.slane %v6839_v21, 1  ;;  %v1289_v17 = vadd.f32 %v4954_v60, %v1172_v34  ;;  %v1499_v16 = vsel %vm1015_vm3, %v1496_v53, %v6731_v61  ;;  %v6849_v53 = vld [vmem:[#allocation32_spill] sm:$0xff] }
 0x1dc   : > { %1554 = vrot.lane.b32.xlu1 %v1497_v35, %s3991_s8  ;;  %v1537_v23 = vpop.permute.xlu0 %1536  ;;  %v997_v35 = vadd.f32 %v5018_v12, %v6847_v1  ;;  %v6848_v12 = vrot.slane %v6830_v19, 1  ;;  %v6733_v34 = vrot.slane %v6849_v53, 1 }
 0x1dd   : > { %v2031_v37 = vadd.f32 %v4656_v13, %v1995_v59  ;;  %v5115_v51 = vpop.permute.xlu1 %925 }
 0x1de   : > { %1790 = vrot.lane.b32.xlu0 %v5120_v56, %s3992_s9  ;;  %v1173_v22 = vadd.f32 %v4981_v9, %v997_v35  ;;  %v888_v25 = vsel %vm839_vm4, %v6848_v12, %v887_v4  ;;  %v1065_v9 = vrot.slane %v6849_v53, 2  ;;  %v6851_v35 = vld [vmem:[#allocation34_spill] sm:$0xff]  ;;  %v890_v61 = vsel %vm839_vm4, %v887_v4, %v6733_v34  ;;  %v6858_v34 = vld [vmem:[#allocation35_spill] sm:$0xff] }
 0x1df   : > { %v2060_v11 = vmax.f32 %v2031_v37, 0.0  ;;  %v6850_v37 = vld [vmem:[#allocation30_spill] sm:$0xff]  ;;  %v1383_v57 = vrot.slane %v6851_v35, 1  ;;  %v6854_v12 = vrot.slane %v4884_v50, 2  ;;  %v1500_v50 = vrot.slane %v6851_v35, 2 }
 0x1e0   : > { %1671 = vrot.lane.b32.xlu1 %v6843_v44, %s3990_s7  ;;  %v1654_v15 = vpop.permute.xlu0 %1653  ;;  %v1436_v1 = vadd.f32 %v6850_v37, %v1289_v17 }
 0x1e1   : > { %v5130_v26 = vpop.permute.xlu1 %1218  ;;  %v2084_v59 = vpack.c.bf16 %v2060_v11, %v2059_v10  ;;  %v1290_v11 = vadd.f32 %v5033_v40, %v1173_v22  ;;  %v6853_v40 = vld [vmem:[#allocation33_spill] sm:$0xff] }
 0x1e2   : > { %1556 = vrot.lane.b32.xlu0 %v1499_v16, %s3991_s8  ;;  %v1611_v16 = vadd.f32 %v1535_v6, %v1436_v1  ;;  %v6852_v6 = vrot.slane %v6839_v21, 2 }
 0x1e3   : > { %3735 = vmatmul.mubr.msk.bf16.gmra.mxu0 %vm2135_vm5, %v2084_v59  ;;  %3890 = vmatmul.mubr.msk.bf16.gmra.mxu1 %vm2135_vm5, %v2084_v59  ;;  %v1943_v59 = vrot.slane %v4900_v49, 2  ;;  %v1437_v22 = vadd.f32 %v6853_v40, %v1290_v11  ;;  %v6861_v40 = vld [vmem:[#allocation6_spill] sm:$0xff] }
 0x1e4   : > { %945 = vrot.lane.b32.xlu1 %v888_v25, %s3991_s8  ;;  %v5143_v60 = vpop.permute.xlu0 %927  ;;  %2261 = vmatprep.mubr.bf16.mxu0 %v6795_v48  ;;  %v1728_v25 = vadd.f32 %v1652_v29, %v1611_v16  ;;  %v1066_v49 = vsel %vm1015_vm3, %v6852_v6, %v1065_v9  ;;  %v6856_v16 = vrot.slane %v4920_v52, 2 }
 0x1e5   : > { %v5148_v10 = vpop.permute.xlu1 %1103  ;;  %3893 = vmatprep.mubr.msk.bf16.mxu1 %vm3989_vm1, %v6796_v3  ;;  %v5174_v29 = vsel %vm1015_vm3, %v6854_v12, %v1943_v59  ;;  %v1612_v6 = vadd.f32 %v1537_v23, %v1437_v22  ;;  %v6859_v12 = vld [vmem:[#allocation27_spill] sm:$0xff]  ;;  %v998_v23 = vadd.f32 %v5046_v58, %v6861_v40  ;;  %v6862_v22 = vld [vmem:[#allocation36_spill] sm:$0xff] }
 0x1e6   : > { %1673 = vrot.lane.b32.xlu0 %v6851_v35, %s3990_s7  ;;  %6855 = vst [vmem:[#allocation24_spill] sm:$0xff] %v5174_v29  ;;  %v5179_v4 = vsel %vm1015_vm3, %v1943_v59, %v6856_v16  ;;  %v1385_v16 = vrot.slane %v6862_v22, 1 }
 0x1e7   : > { %6857 = vst [vmem:[#allocation11_spill] sm:$0xff] %v5179_v4  ;;  %v1729_v11 = vadd.f32 %v1654_v15, %v1612_v6  ;;  %v6863_v15 = vrot.slane %v6858_v34, 2  ;;  %v6864_v6 = vld [vmem:[#allocation28_spill] sm:$0xff] }
 0x1e8   : > { %1238 = vrot.lane.b32.xlu1 %v6849_v53, %s3992_s9  ;;  %v5160_v17 = vpop.permute.xlu0 %1220 }
 0x1e9   : > { %v1773_v37 = vpop.permute.xlu1 %1772  ;;  %v1068_v35 = vsel %vm1015_vm3, %v1065_v9, %v6863_v15 }
 0x1ea   : > { %947 = vrot.lane.b32.xlu0 %v890_v61, %s3991_s8  ;;  %v1849_v1 = vadd.f32 %v1773_v37, %v1728_v25  ;;  %v6860_v37 = vrot.slane %v6843_v44, 1 }
 0x1ec   : > { %1123 = vrot.lane.b32.xlu1 %v1066_v49, %s3990_s7  ;;  %v5182_v61 = vpop.permute.xlu0 %1105  ;;  %v1996_v25 = vadd.f32 %v6859_v12, %v1849_v1  ;;  %v5192_v59 = vsel %vm839_vm4, %v6860_v37, %v1383_v57  ;;  %v6865_v37 = vrot.slane %v6843_v44, 2  ;;  %v6866_v44 = vld [vmem:[#allocation7_spill] sm:$0xff] }
 0x1ed   : > { %v1539_v19 = vpop.permute.xlu1 %1538 }
 0x1ee   : > { %1240 = vrot.lane.b32.xlu0 %v6858_v34, %s3992_s9  ;;  %v2032_v1 = vadd.f32 %v4656_v13, %v1996_v25  ;;  %v1501_v29 = vsel %vm1015_vm3, %v6865_v37, %v1500_v50  ;;  %v5217_v25 = vsel %vm839_vm4, %v1383_v57, %v1385_v16 }
 0x1f0   : > { %1792 = vrot.lane.b32.xlu1 %v5192_v59, %s3992_s9  ;;  %v1775_v49 = vpop.permute.xlu0 %1774 }
 0x1f1   : > { %v1850_v21 = vadd.f32 %v1775_v49, %v1729_v11  ;;  %v1656_v4 = vpop.permute.xlu1 %1655  ;;  %v1174_v11 = vadd.f32 %v5051_v30, %v998_v23  ;;  %v1502_v49 = vrot.slane %v6862_v22, 2  ;;  %v2061_v30 = vmax.f32 %v2032_v1, 0.0 }
 0x1f2   : > { %1125 = vrot.lane.b32.xlu0 %v1068_v35, %s3990_s7 }
 0x1f3   : > { %v1997_v12 = vadd.f32 %v6864_v6, %v1850_v21  ;;  %v891_v21 = vrot.slane %v6858_v34, 1  ;;  %v1291_v35 = vadd.f32 %v5063_v14, %v1174_v11  ;;  %v1503_v57 = vsel %vm1015_vm3, %v1500_v50, %v1502_v49 }
 0x1f4   : > { %1558 = vrot.lane.b32.xlu1 %v1501_v29, %s3991_s8  ;;  %v1541_v58 = vpop.permute.xlu0 %1540  ;;  %v999_v29 = vadd.f32 %v5115_v51, %v6866_v44  ;;  %v6867_v51 = vrot.slane %v6849_v53, 1  ;;  %v893_v50 = vrot.slane %v4604_v42, 1 }
 0x1f5   : > { %v2033_v40 = vadd.f32 %v4656_v13, %v1997_v12  ;;  %v5212_v9 = vpop.permute.xlu1 %929  ;;  %v1438_v11 = vadd.f32 %v4630_v36, %v1291_v35 }
 0x1f6   : > { %1794 = vrot.lane.b32.xlu0 %v5217_v25, %s3992_s9  ;;  %v1175_v37 = vadd.f32 %v5085_v63, %v999_v29  ;;  %v892_v1 = vsel %vm839_vm4, %v6867_v51, %v891_v21  ;;  %v1069_v63 = vrot.slane %v4604_v42, 2 }
 0x1f7   : > { %v2062_v23 = vmax.f32 %v2033_v40, 0.0  ;;  %v1613_v29 = vadd.f32 %v1539_v19, %v1438_v11  ;;  %v6868_v19 = vrot.slane %v6858_v34, 2 }
 0x1f8   : > { %1675 = vrot.lane.b32.xlu1 %v6862_v22, %s3990_s7  ;;  %v1658_v15 = vpop.permute.xlu0 %1657  ;;  %v1292_v44 = vadd.f32 %v5130_v26, %v1175_v37  ;;  %v6871_v22 = vld [vmem:[#allocation9_spill] sm:$0xff] }
 0x1f9   : > { %v2085_v6 = vpack.c.bf16 %v2062_v23, %v2061_v30  ;;  %v1947_v30 = vrot.slane %v4937_v55, 2  ;;  %v1949_v23 = vrot.slane %v4957_v43, 2  ;;  %v1730_v35 = vadd.f32 %v1656_v4, %v1613_v29 }
 0x1fa   : > { %v5230_v12 = vpop.permute.xlu1 %1222  ;;  %1560 = vrot.lane.b32.xlu0 %v1503_v57, %s3991_s8  ;;  %v894_v57 = vsel %vm839_vm4, %v891_v21, %v893_v50  ;;  %v1070_v55 = vsel %vm1015_vm3, %v6868_v19, %v1069_v63  ;;  %v1439_v26 = vadd.f32 %v4664_v33, %v1292_v44  ;;  %v1071_v29 = vrot.slane %v4650_v18, 2 }
 0x1fb   : > { %3736 = vmatmul.mubr.msk.bf16.gmra.mxu0 %vm2135_vm5, %v2085_v6  ;;  %3894 = vmatmul.mubr.msk.bf16.gmra.mxu1 %vm2135_vm5, %v2085_v6  ;;  %v1387_v6 = vrot.slane %v4632_v38, 1  ;;  %v5276_v21 = vsel %vm1015_vm3, %v1947_v30, %v1949_v23  ;;  %v1504_v33 = vrot.slane %v4632_v38, 2 }
 0x1fc   : > { %949 = vrot.lane.b32.xlu1 %v892_v1, %s3991_s8  ;;  %v5240_v14 = vpop.permute.xlu0 %931  ;;  %2271 = vmatprep.mubr.bf16.mxu0 %v6795_v48  ;;  %v6869_v1 = vrot.slane %v4920_v52, 2 }
 0x1fd   : > { %3897 = vmatprep.mubr.msk.bf16.mxu1 %vm3989_vm1, %v6796_v3 }
 0x1fe   : > { %v5248_v40 = vpop.permute.xlu1 %1107  ;;  %1677 = vrot.lane.b32.xlu0 %v4632_v38, %s3990_s7  ;;  %v5271_v4 = vsel %vm1015_vm3, %v6869_v1, %v1947_v30  ;;  %v5289_v30 = vsel %vm839_vm4, %v1385_v16, %v1387_v6  ;;  %v1072_v38 = vsel %vm1015_vm3, %v1069_v63, %v1071_v29 }
 0x200   : > { %1242 = vrot.lane.b32.xlu1 %v4604_v42, %s3992_s9  ;;  %v5257_v36 = vpop.permute.xlu0 %1224 }
 0x202   : > { %v1777_v51 = vpop.permute.xlu1 %1776  ;;  %951 = vrot.lane.b32.xlu0 %v894_v57, %s3991_s8  ;;  %v1614_v57 = vadd.f32 %v1541_v58, %v1439_v26 }
 0x203   : > { %v1851_v37 = vadd.f32 %v1777_v51, %v1730_v35  ;;  %v6870_v51 = vld [vmem:[#allocation8_spill] sm:$0xff] }
 0x204   : > { %1127 = vrot.lane.b32.xlu1 %v1070_v55, %s3990_s7  ;;  %v5279_v11 = vpop.permute.xlu0 %1109  ;;  %v1731_v52 = vadd.f32 %v1658_v15, %v1614_v57  ;;  %v1000_v58 = vadd.f32 %v5143_v60, %v6870_v51  ;;  %v1389_v55 = vrot.slane %v4669_v32, 1  ;;  %v1506_v57 = vrot.slane %v4669_v32, 2 }
 0x205   : > { %v1998_v44 = vadd.f32 %v4611_v24, %v1851_v37  ;;  %v1505_v37 = vsel %vm1015_vm3, %v1502_v49, %v1504_v33  ;;  %v1001_v49 = vadd.f32 %v5212_v9, %v6871_v22  ;;  %v1951_v22 = vrot.slane %v4983_v27, 2 }
 0x206   : > { %v1543_v19 = vpop.permute.xlu1 %1542  ;;  %1244 = vrot.lane.b32.xlu0 %v4650_v18, %s3992_s9  ;;  %v1176_v1 = vadd.f32 %v5148_v10, %v1000_v58 }
 0x207   : > { %v2034_v16 = vadd.f32 %v4656_v13, %v1998_v44  ;;  %v1177_v9 = vadd.f32 %v5182_v61, %v1001_v49  ;;  %v1953_v49 = vrot.slane %v4998_v31, 2  ;;  %v5366_v31 = vsel %vm1015_vm3, %v1949_v23, %v1951_v22 }
 0x208   : > { %1796 = vrot.lane.b32.xlu1 %v5289_v30, %s3992_s9  ;;  %v1779_v35 = vpop.permute.xlu0 %1778  ;;  %v1293_v51 = vadd.f32 %v5160_v17, %v1176_v1 }
 0x209   : > { %v1852_v26 = vadd.f32 %v1779_v35, %v1731_v52  ;;  %v5312_v52 = vsel %vm839_vm4, %v1387_v6, %v1389_v55  ;;  %v2063_v10 = vmax.f32 %v2034_v16, 0.0  ;;  %v6872_v6 = vld [vmem:[#allocation37_spill] sm:$0xff] }
 0x20a   : > { %v1660_v24 = vpop.permute.xlu1 %1659  ;;  %1129 = vrot.lane.b32.xlu0 %v1072_v38, %s3990_s7  ;;  %v897_v58 = vrot.slane %v6872_v6, 1  ;;  %v1073_v61 = vrot.slane %v6872_v6, 2 }
 0x20b   : > { %v1999_v15 = vadd.f32 %v4616_v54, %v1852_v26  ;;  %v895_v54 = vrot.slane %v4650_v18, 1  ;;  %v1507_v26 = vsel %vm1015_vm3, %v1504_v33, %v1506_v57  ;;  %v1440_v33 = vadd.f32 %v4758_v0, %v1293_v51 }
 0x20c   : > { %1562 = vrot.lane.b32.xlu1 %v1505_v37, %s3991_s8  ;;  %v1545_v60 = vpop.permute.xlu0 %1544 }
 0x20d   : > { %v2035_v63 = vadd.f32 %v4656_v13, %v1999_v15  ;;  %v896_v17 = vsel %vm839_vm4, %v893_v50, %v895_v54  ;;  %v898_v37 = vsel %vm839_vm4, %v895_v54, %v897_v58  ;;  %v1294_v50 = vadd.f32 %v5230_v12, %v1177_v9  ;;  %v6874_v58 = vld [vmem:[#allocation39_spill] sm:$0xff] }
 0x20e   : > { %v5314_v44 = vpop.permute.xlu1 %933  ;;  %1798 = vrot.lane.b32.xlu0 %v5312_v52, %s3992_s9  ;;  %v1074_v12 = vsel %vm1015_vm3, %v1071_v29, %v1073_v61 }
 0x20f   : > { %v2064_v35 = vmax.f32 %v2035_v63, 0.0  ;;  %v1615_v63 = vadd.f32 %v1543_v19, %v1440_v33  ;;  %v1441_v27 = vadd.f32 %v4786_v8, %v1294_v50 }
 0x210   : > { %1679 = vrot.lane.b32.xlu1 %v4669_v32, %s3990_s7  ;;  %v1662_v13 = vpop.permute.xlu0 %1661 }
 0x211   : > { %v2086_v38 = vpack.c.bf16 %v2064_v35, %v2063_v10  ;;  %v1732_v54 = vadd.f32 %v1660_v24, %v1615_v63  ;;  %v6873_v10 = vld [vmem:[#allocation38_spill] sm:$0xff]  ;;  %v5369_v24 = vsel %vm1015_vm3, %v1951_v22, %v1953_v49  ;;  %v1616_v9 = vadd.f32 %v1545_v60, %v1441_v27 }
 0x212   : > { %v5328_v15 = vpop.permute.xlu1 %1226  ;;  %1564 = vrot.lane.b32.xlu0 %v1507_v26, %s3991_s8  ;;  %v1391_v35 = vrot.slane %v6873_v10, 1  ;;  %v6875_v26 = vld [vmem:[#allocation40_spill] sm:$0xff]  ;;  %v1508_v8 = vrot.slane %v6873_v10, 2  ;;  %v1002_v60 = vadd.f32 %v5240_v14, %v4370_v5  ;;  %v1748_v27 = vrot.slane %v4830_v7, 1 }
 0x213   : > { %3737 = vmatmul.mubr.msk.bf16.gmra.mxu0 %vm2135_vm5, %v2086_v38  ;;  %3898 = vmatmul.mubr.msk.bf16.gmra.mxu1 %vm2135_vm5, %v2086_v38  ;;  %v1393_v38 = vrot.slane %v6875_v26, 1  ;;  %v1733_v43 = vadd.f32 %v1662_v13, %v1616_v9 }
 0x214   : > { %953 = vrot.lane.b32.xlu1 %v896_v17, %s3991_s8  ;;  %v5338_v16 = vpop.permute.xlu0 %935  ;;  %2281 = vmatprep.mubr.bf16.mxu0 %v6795_v48  ;;  %v5382_v29 = vsel %vm839_vm4, %v1389_v55, %v1391_v35  ;;  %v1509_v5 = vsel %vm1015_vm3, %v1506_v57, %v1508_v8  ;;  %v1178_v22 = vadd.f32 %v5248_v40, %v1002_v60  ;;  %v1395_v57 = vrot.slane %v4807_v28, 1 }
 0x215   : > { %3901 = vmatprep.mubr.msk.bf16.mxu1 %vm3989_vm1, %v6796_v3  ;;  %v5390_v50 = vsel %vm839_vm4, %v1391_v35, %v1393_v38  ;;  %v1955_v35 = vrot.slane %v5013_v39, 2 }
 0x216   : > { %v5346_v1 = vpop.permute.xlu1 %1111  ;;  %955 = vrot.lane.b32.xlu0 %v898_v37, %s3991_s8  ;;  %v1510_v37 = vrot.slane %v6875_v26, 2 }
 0x217   : > { %v5418_v39 = vsel %vm1015_vm3, %v1953_v49, %v1955_v35 }
 0x218   : > { %1246 = vrot.lane.b32.xlu1 %v6872_v6, %s3992_s9  ;;  %v5354_v0 = vpop.permute.xlu0 %1228 }
 0x21a   : > { %v1781_v51 = vpop.permute.xlu1 %1780  ;;  %1248 = vrot.lane.b32.xlu0 %v6874_v58, %s3992_s9 }
 0x21b   : > { %v1853_v19 = vadd.f32 %v1781_v51, %v1732_v54 }
 0x21c   : > { %1131 = vrot.lane.b32.xlu1 %v1074_v12, %s3990_s7  ;;  %v5372_v6 = vpop.permute.xlu0 %1113  ;;  %v1295_v12 = vadd.f32 %v5257_v36, %v1178_v22  ;;  %v5427_v36 = vsel %vm839_vm4, %v1393_v38, %v1395_v57 }
 0x21d   : > { %v2000_v23 = vadd.f32 %v4739_v45, %v1853_v19  ;;  %v5397_v45 = vld [vmem:[%s6668_s2] ss:$0 sm:$0xff] }
 0x21e   : > { %v1547_v17 = vpop.permute.xlu1 %1546  ;;  %1681 = vrot.lane.b32.xlu0 %v6873_v10, %s3990_s7  ;;  %v1511_v10 = vsel %vm1015_vm3, %v1508_v8, %v1510_v37  ;;  %v1512_v8 = vrot.slane %v4807_v28, 2 }
 0x21f   : > { %v2036_v55 = vadd.f32 %v5397_v45, %v2000_v23 }
 0x220   : > { %1800 = vrot.lane.b32.xlu1 %v5382_v29, %s3992_s9  ;;  %v1783_v33 = vpop.permute.xlu0 %1782 }
 0x221   : > { %v1854_v61 = vadd.f32 %v1783_v33, %v1733_v43  ;;  %v2065_v32 = vmax.f32 %v2036_v55, 0.0  ;;  %v1513_v33 = vsel %vm1015_vm3, %v1510_v37, %v1512_v8 }
 0x222   : > { %v1664_v13 = vpop.permute.xlu1 %1663  ;;  %1802 = vrot.lane.b32.xlu0 %v5390_v50, %s3992_s9 }
 0x223   : > { %v2001_v63 = vadd.f32 %v4744_v46, %v1854_v61  ;;  %v1003_v46 = vadd.f32 %v5314_v44, %v4384_v20  ;;  %v612_v20 = vpop.f32.mrf.mxu0 }
 0x224   : > { %1566 = vrot.lane.b32.xlu1 %v1509_v5, %s3991_s8  ;;  %v1549_v14 = vpop.permute.xlu0 %1548  ;;  %v1750_v43 = vrot.slane %v612_v20, 1  ;;  %v6879_v20 = vld [vmem:[#allocation15_spill] sm:$0xff] }
 0x225   : > { %v2037_v54 = vadd.f32 %v5397_v45, %v2001_v63  ;;  %v1179_v44 = vadd.f32 %v5279_v11, %v1003_v46  ;;  %v1749_v11 = vsel %vm839_vm4, %v1395_v57, %v1748_v27 }
 0x226   : > { %v938_v51 = vpop.permute.xlu1 %937  ;;  %1568 = vrot.lane.b32.xlu0 %v1511_v10, %s3991_s8  ;;  %v1751_v61 = vsel %vm839_vm4, %v1748_v27, %v1750_v43 }
 0x227   : > { %v2066_v58 = vmax.f32 %v2037_v54, 0.0  ;;  %v1296_v38 = vadd.f32 %v5328_v15, %v1179_v44  ;;  %v6876_v54 = vld [vmem:[#allocation41_spill] sm:$0xff] }
 0x228   : > { %1683 = vrot.lane.b32.xlu1 %v6875_v26, %s3990_s7  ;;  %v1666_v40 = vpop.permute.xlu0 %1665  ;;  %v1442_v26 = vadd.f32 %v4878_v41, %v1295_v12 }
 0x229   : > { %v2087_v19 = vpack.c.bf16 %v2066_v58, %v2065_v32  ;;  %v1443_v63 = vadd.f32 %v4909_v62, %v1296_v38  ;;  %v6878_v58 = vld [vmem:[#allocation42_spill] sm:$0xff] }
 0x22a   : > { %v1231_v9 = vpop.permute.xlu1 %1230  ;;  %1685 = vrot.lane.b32.xlu0 %v4807_v28, %s3990_s7  ;;  %v1617_v23 = vadd.f32 %v1547_v17, %v1442_v26 }
 0x22b   : > { %3738 = vmatmul.mubr.msk.bf16.gmra.mxu0 %vm2135_vm5, %v2087_v19  ;;  %3902 = vmatmul.mubr.msk.bf16.gmra.mxu1 %vm2135_vm5, %v2087_v19  ;;  %v1618_v15 = vadd.f32 %v1549_v14, %v1443_v63 }
 0x22c   : > { %1804 = vrot.lane.b32.xlu1 %v5427_v36, %s3992_s9  ;;  %v5431_v49 = vpop.permute.xlu0 %939  ;;  %2291 = vmatprep.mubr.bf16.mxu0 %v6795_v48  ;;  %v1734_v41 = vadd.f32 %v1664_v13, %v1617_v23  ;;  %v6877_v13 = vld [vmem:[#allocation13_spill] sm:$0xff] }
 0x22d   : > { %3905 = vmatprep.mubr.msk.bf16.mxu1 %vm3989_vm1, %v6796_v3  ;;  %v1735_v37 = vadd.f32 %v1666_v40, %v1618_v15  ;;  %v1004_v46 = vadd.f32 %v5338_v16, %v6877_v13  ;;  %v1005_v40 = vadd.f32 %v938_v51, %v6879_v20 }
 0x22e   : > { %v5438_v28 = vpop.permute.xlu1 %1115  ;;  %1806 = vrot.lane.b32.xlu0 %v1749_v11, %s3992_s9 }
 0x22f   : > { %v1180_v27 = vadd.f32 %v5346_v1, %v1004_v46  ;;  %v1181_v38 = vadd.f32 %v5372_v6, %v1005_v40  ;;  %v6880_v1 = vld [vmem:[#allocation14_spill] sm:$0xff] }
 0x230   : > { %1570 = vrot.lane.b32.xlu1 %v1513_v33, %s3991_s8  ;;  %v5444_v60 = vpop.permute.xlu0 %1232 }
 0x231   : > { %v1297_v11 = vadd.f32 %v5354_v0, %v1180_v27  ;;  %v1298_v0 = vadd.f32 %v1231_v9, %v1181_v38 }
 0x232   : > { %v1785_v55 = vpop.permute.xlu1 %1784  ;;  %1687 = vrot.lane.b32.xlu0 %v4830_v7, %s3990_s7 }
 0x233   : > { %v1855_v5 = vadd.f32 %v1785_v55, %v1734_v41  ;;  %v1444_v51 = vadd.f32 %v6880_v1, %v1297_v11 }
 0x234   : > { %v5450_v22 = vpop.permute.xlu0 %1117  ;;  %1808 = vrot.lane.b32.xlu1 %v1751_v61, %s3992_s9 }
 0x235   : > { %v2002_v10 = vadd.f32 %v6876_v54, %v1855_v5  ;;  %v1445_v54 = vadd.f32 %v5023_v2, %v1298_v0  ;;  %v6881_v2 = vld [vmem:[#allocation12_spill] sm:$0xff] }
 0x236   : > { %v1551_v17 = vpop.permute.xlu1 %1550 }
 0x237   : > { %v2038_v7 = vadd.f32 %v5397_v45, %v2002_v10  ;;  %v1619_v41 = vadd.f32 %v1551_v17, %v1444_v51  ;;  %v6883_v51 = vld [vmem:[#allocation21_spill] sm:$0xff] }
 0x238   : > { %v1787_v35 = vpop.permute.xlu0 %1786 }
 0x239   : > { %v1856_v32 = vadd.f32 %v1787_v35, %v1735_v37  ;;  %v2067_v44 = vmax.f32 %v2038_v7, 0.0 }
 0x23a   : > { %v1668_v57 = vpop.permute.xlu1 %1667 }
 0x23b   : > { %v2003_v62 = vadd.f32 %v6878_v58, %v1856_v32  ;;  %v1736_v63 = vadd.f32 %v1668_v57, %v1619_v41 }
 0x23c   : > { %v1553_v12 = vpop.permute.xlu0 %1552 }
 0x23d   : > { %v2039_v19 = vadd.f32 %v5397_v45, %v2003_v62  ;;  %v1620_v32 = vadd.f32 %v1553_v12, %v1445_v54 }
 0x23e   : > { %v942_v14 = vpop.permute.xlu1 %941 }
 0x23f   : > { %v2068_v8 = vmax.f32 %v2039_v19, 0.0 }
 0x240   : > { %v1670_v26 = vpop.permute.xlu0 %1669 }
 0x241   : > { %v2088_v16 = vpack.c.bf16 %v2068_v8, %v2067_v44  ;;  %v1737_v19 = vadd.f32 %v1670_v26, %v1620_v32  ;;  %v6882_v8 = vld [vmem:[#allocation16_spill] sm:$0xff] }
 0x242   : > { %v1235_v43 = vpop.permute.xlu1 %1234  ;;  %v1006_v11 = vadd.f32 %v5431_v49, %v6882_v8  ;;  %v6884_v49 = vld [vmem:[#allocation20_spill] sm:$0xff] }
 0x243   : > { %3739 = vmatmul.mubr.msk.bf16.gmra.mxu0 %vm2135_vm5, %v2088_v16  ;;  %3906 = vmatmul.mubr.msk.bf16.gmra.mxu1 %vm2135_vm5, %v2088_v16 }
 0x244   : > { %v5465_v23 = vpop.permute.xlu0 %943  ;;  %2301 = vmatprep.mubr.bf16.mxu0 %v6795_v48  ;;  %3909 = vmatprep.mubr.msk.bf16.mxu1 %vm3989_vm1, %v6796_v3  ;;  %v1182_v41 = vadd.f32 %v5438_v28, %v1006_v11 }
 0x246   : > { %v5471_v33 = vpop.permute.xlu1 %1119 }
 0x247   : > { %v5473_v61 = vpop.f32.mrf.mxu0  ;;  %v2391_v6 = vpop.f32.mrf.mxu1 }
 0x248   : > { %v5475_v55 = vpop.permute.xlu0 %1236  ;;  %v2554_v46 = vrot.slane %v5473_v61, 1  ;;  %v2699_v40 = vrot.slane %v5473_v61, 2 }
 0x249   : > { %v3875_v5 = vpop.f32.mrf.mxu1  ;;  %v2217_v15 = vpop.f32.mrf.mxu0 }
 0x24a   : > { %v1789_v37 = vpop.permute.xlu1 %1788  ;;  %v1007_v5 = vadd.f32 %v942_v14, %v6884_v49 }
 0x24b   : > { %v1857_v10 = vadd.f32 %v1789_v37, %v1736_v63  ;;  %v5478_v35 = vpop.f32.mrf.mxu0  ;;  %v2393_v13 = vpop.f32.mrf.mxu1 }
 0x24c   : > { %v2555_v9 = vrot.slane %v5478_v35, 1  ;;  %v5482_v17 = vpop.permute.xlu0 %1121  ;;  %v2700_v57 = vrot.slane %v5478_v35, 2  ;;  %v1183_v32 = vadd.f32 %v5450_v22, %v1007_v5 }
 0x24d   : > { %v3876_v7 = vpop.f32.mrf.mxu1  ;;  %v2220_v58 = vpop.f32.mrf.mxu0  ;;  %v2004_v20 = vadd.f32 %v6881_v2, %v1857_v10  ;;  %v1299_v10 = vadd.f32 %v5444_v60, %v1182_v41 }
 0x24e   : > { %v1555_v62 = vpop.permute.xlu1 %1554  ;;  %v2556_v27 = vsel %vm839_vm4, %v2554_v46, %v2555_v9  ;;  %v2701_v38 = vsel %vm1015_vm3, %v2699_v40, %v2700_v57  ;;  %v1300_v60 = vadd.f32 %v1235_v43, %v1183_v32 }
 0x24f   : > { %2603 = vrot.lane.b32.xlu0 %v2556_v27, %s3991_s8  ;;  %v2040_v1 = vadd.f32 %v5397_v45, %v2004_v20  ;;  %v1446_v14 = vadd.f32 %v5095_v47, %v1299_v10  ;;  %v6885_v10 = vld [vmem:[#allocation10_spill] sm:$0xff] }
 0x250   : > { %v1791_v44 = vpop.permute.xlu0 %1790 }
 0x251   : > { %v1858_v16 = vadd.f32 %v1791_v44, %v1737_v19  ;;  %v2069_v15 = vmax.f32 %v2040_v1, 0.0  ;;  %v1621_v58 = vadd.f32 %v1555_v62, %v1446_v14  ;;  %v1447_v62 = vadd.f32 %v5120_v56, %v1300_v60  ;;  %v6886_v14 = vld [vmem:[#allocation23_spill] sm:$0xff] }
 0x252   : > { %v1672_v12 = vpop.permute.xlu1 %1671  ;;  %v1008_v60 = vadd.f32 %v5465_v23, %v6886_v14 }
 0x253   : > { %v2005_v26 = vadd.f32 %v6883_v51, %v1858_v16  ;;  %2748 = vrot.lane.b32.xlu0 %v2701_v38, %s3990_s7  ;;  %v1738_v20 = vadd.f32 %v1672_v12, %v1621_v58 }
 0x254   : > { %v1557_v0 = vpop.permute.xlu0 %1556 }
 0x255   : > { %v2041_v6 = vadd.f32 %v5397_v45, %v2005_v26  ;;  %v1622_v12 = vadd.f32 %v1557_v0, %v1447_v62  ;;  %v6888_v62 = vld [vmem:[#allocation25_spill] sm:$0xff] }
 0x256   : > { %v5499_v63 = vpop.permute.xlu1 %945 }
 0x257   : > { %v2070_v37 = vmax.f32 %v2041_v6, 0.0 }
 0x258   : > { %v1674_v54 = vpop.permute.xlu0 %1673 }
 0x259   : > { %v2089_v13 = vpack.c.bf16 %v2070_v37, %v2069_v15  ;;  %v1739_v37 = vadd.f32 %v1674_v54, %v1622_v12 }
 0x25a   : > { %v5503_v46 = vpop.permute.xlu1 %1238 }
 0x25b   : > { %3740 = vmatmul.mubr.msk.bf16.gmra.mxu0 %vm2135_vm5, %v2089_v13  ;;  %3910 = vmatmul.mubr.msk.bf16.gmra.mxu1 %vm2135_vm5, %v2089_v13 }
 0x25c   : > { %v5508_v28 = vpop.permute.xlu0 %947  ;;  %2311 = vmatprep.mubr.bf16.mxu0 %v6795_v48  ;;  %3913 = vmatprep.mubr.msk.bf16.mxu1 %vm3989_vm1, %v6796_v3 }
 0x25e   : > { %v5514_v7 = vpop.permute.xlu1 %1123 }
 0x25f   : > { %v5516_v27 = vpop.f32.mrf.mxu0  ;;  %v2397_v22 = vpop.f32.mrf.mxu1 }
 0x260   : > { %v2557_v19 = vrot.slane %v5516_v27, 1  ;;  %v5519_v2 = vpop.permute.xlu0 %1240  ;;  %2845 = vrot.lane.b32.xlu0 %v5516_v27, %s3992_s9  ;;  %v2702_v47 = vrot.slane %v5516_v27, 2 }
 0x261   : > { %v3879_v40 = vpop.f32.mrf.mxu1  ;;  %v5523_v44 = vpop.f32.mrf.mxu0 }
 0x262   : > { %v1793_v8 = vpop.permute.xlu1 %1792  ;;  %v2558_v43 = vsel %vm839_vm4, %v2555_v9, %v2557_v19  ;;  %v2966_v26 = vrot.slane %v5523_v44, 1  ;;  %v2703_v15 = vsel %vm1015_vm3, %v2700_v57, %v2702_v47 }
 0x263   : > { %v1859_v11 = vadd.f32 %v1793_v8, %v1738_v20  ;;  %v5528_v16 = vpop.f32.mrf.mxu0  ;;  %v2399_v38 = vpop.f32.mrf.mxu1  ;;  %2605 = vrot.lane.b32.xlu1 %v2558_v43, %s3991_s8  ;;  %v1184_v8 = vadd.f32 %v5471_v33, %v1008_v60 }
 0x264   : > { %v2559_v1 = vrot.slane %v5528_v16, 1  ;;  %v5532_v51 = vpop.permute.xlu0 %1125  ;;  %v2704_v9 = vrot.slane %v5528_v16, 2 }
 0x265   : > { %v3880_v41 = vpop.f32.mrf.mxu1  ;;  %v5535_v6 = vpop.f32.mrf.mxu0  ;;  %v2006_v13 = vadd.f32 %v6885_v10, %v1859_v11  ;;  %v1009_v11 = vadd.f32 %v5499_v63, %v6888_v62 }
 0x266   : > { %v1559_v49 = vpop.permute.xlu1 %1558  ;;  %v2967_v56 = vrot.slane %v5535_v6, 1  ;;  %v2560_v5 = vsel %vm839_vm4, %v2557_v19, %v2559_v1  ;;  %v2705_v57 = vsel %vm1015_vm3, %v2702_v47, %v2704_v9  ;;  %v6887_v19 = vld [vmem:[#allocation2_spill] sm:$0xff] }
 0x267   : > { %2607 = vrot.lane.b32.xlu0 %v2560_v5, %s3991_s8  ;;  %2750 = vrot.lane.b32.xlu1 %v2703_v15, %s3990_s7  ;;  %v2042_v54 = vadd.f32 %v5397_v45, %v2006_v13  ;;  %v1185_v15 = vadd.f32 %v5482_v17, %v1009_v11  ;;  %v3064_v17 = vrot.slane %v5535_v6, 2 }
 0x268   : > { %v1795_v0 = vpop.permute.xlu0 %1794  ;;  %v5549_v32 = vsel %vm839_vm4, %v2966_v26, %v2967_v56  ;;  %v1301_v26 = vadd.f32 %v5475_v55, %v1184_v8 }
 0x269   : > { %v1860_v58 = vadd.f32 %v1795_v0, %v1739_v37  ;;  %v2071_v38 = vmax.f32 %v2042_v54, 0.0  ;;  %v1302_v55 = vadd.f32 %v5503_v46, %v1185_v15 }
 0x26a   : > { %v1676_v22 = vpop.permute.xlu1 %1675  ;;  %v1448_v63 = vadd.f32 %v5192_v59, %v1301_v26 }
 0x26b   : > { %v2007_v20 = vadd.f32 %v6887_v19, %v1860_v58  ;;  %2752 = vrot.lane.b32.xlu0 %v2705_v57, %s3990_s7  ;;  %2847 = vrot.lane.b32.xlu1 %v5528_v16, %s3992_s9  ;;  %v3063_v58 = vrot.slane %v5523_v44, 2  ;;  %v1449_v8 = vadd.f32 %v5217_v25, %v1302_v55  ;;  %v6889_v55 = vld [vmem:[#allocation24_spill] sm:$0xff] }
 0x26c   : > { %v1561_v40 = vpop.permute.xlu0 %1560  ;;  %v1623_v10 = vadd.f32 %v1559_v49, %v1448_v63 }
 0x26d   : > { %v2043_v23 = vadd.f32 %v5397_v45, %v2007_v20  ;;  %v3065_v44 = vsel %vm1015_vm3, %v3063_v58, %v3064_v17 }
 0x26e   : > { %v950_v43 = vpop.permute.xlu1 %949  ;;  %v1740_v59 = vadd.f32 %v1676_v22, %v1623_v10 }
 0x26f   : > { %v2072_v47 = vmax.f32 %v2043_v23, 0.0 }
 0x270   : > { %v1678_v12 = vpop.permute.xlu0 %1677 }
 0x271   : > { %v2090_v41 = vpack.c.bf16 %v2072_v47, %v2071_v38  ;;  %v1624_v47 = vadd.f32 %v1561_v40, %v1449_v8  ;;  %v6891_v8 = vld [vmem:[#allocation11_spill] sm:$0xff] }
 0x272   : > { %v5566_v5 = vpop.permute.xlu1 %1242 }
 0x273   : > { %3741 = vmatmul.mubr.msk.bf16.gmra.mxu0 %vm2135_vm5, %v2090_v41  ;;  %3914 = vmatmul.mubr.msk.bf16.gmra.mxu1 %vm2135_vm5, %v2090_v41  ;;  %v1741_v63 = vadd.f32 %v1678_v12, %v1624_v47  ;;  %v1011_v12 = vadd.f32 %v950_v43, %v6849_v53 }
 0x274   : > { %v5571_v33 = vpop.permute.xlu0 %951  ;;  %2321 = vmatprep.mubr.bf16.mxu0 %v6795_v48  ;;  %3917 = vmatprep.mubr.msk.bf16.mxu1 %vm3989_vm1, %v6796_v3 }
 0x275   : > { %v1187_v43 = vadd.f32 %v5532_v51, %v1011_v12 }
 0x276   : > { %v5577_v37 = vpop.permute.xlu1 %1127 }
 0x277   : > { %v5581_v13 = vpop.f32.mrf.mxu0  ;;  %v2403_v0 = vpop.f32.mrf.mxu1 }
 0x278   : > { %v2561_v14 = vrot.slane %v5581_v13, 1  ;;  %v5584_v60 = vpop.permute.xlu0 %1244  ;;  %2849 = vrot.lane.b32.xlu0 %v5581_v13, %s3992_s9  ;;  %v2706_v46 = vrot.slane %v5581_v13, 2  ;;  %v3431_v26 = vrot.slane %v2403_v0, 2 }
 0x279   : > { %v3883_v57 = vpop.f32.mrf.mxu1  ;;  %v5589_v54 = vpop.f32.mrf.mxu0 }
 0x27a   : > { %v1797_v49 = vpop.permute.xlu1 %1796  ;;  %v2969_v19 = vrot.slane %v5589_v54, 1  ;;  %v2562_v20 = vsel %vm839_vm4, %v2559_v1, %v2561_v14  ;;  %v2707_v15 = vsel %vm1015_vm3, %v2704_v9, %v2706_v46 }
 0x27b   : > { %v1861_v23 = vadd.f32 %v1797_v49, %v1740_v59  ;;  %v5595_v62 = vpop.f32.mrf.mxu1  ;;  %2609 = vrot.lane.b32.xlu1 %v2562_v20, %s3991_s8  ;;  %v5599_v22 = vpop.f32.mrf.mxu0  ;;  %v3066_v59 = vrot.slane %v5589_v54, 2 }
 0x27c   : > { %v3432_v11 = vrot.slane %v5595_v62, 2  ;;  %v5602_v38 = vpop.permute.xlu0 %1129  ;;  %3112 = vrot.lane.b32.xlu0 %v3065_v44, %s3991_s8  ;;  %v5610_v25 = vsel %vm839_vm4, %v2967_v56, %v2969_v19  ;;  %v2563_v58 = vrot.slane %v5599_v22, 1  ;;  %v6890_v56 = vld [vmem:[#allocation29_spill] sm:$0xff]  ;;  %v2708_v20 = vrot.slane %v5599_v22, 2 }
 0x27d   : > { %v3884_v1 = vpop.f32.mrf.mxu1  ;;  %v2008_v10 = vadd.f32 %v6889_v55, %v1861_v23  ;;  %v1010_v0 = vadd.f32 %v5508_v28, %v6890_v56  ;;  %v1304_v56 = vadd.f32 %v5566_v5, %v1187_v43  ;;  %v1012_v5 = vadd.f32 %v5571_v33, %v6858_v34 }
 0x27e   : > { %v1563_v41 = vpop.permute.xlu1 %1562  ;;  %v5621_v40 = vsel %vm1015_vm3, %v3431_v26, %v3432_v11  ;;  %v2564_v44 = vsel %vm839_vm4, %v2561_v14, %v2563_v58  ;;  %v3067_v1 = vsel %vm1015_vm3, %v3064_v17, %v3066_v59  ;;  %v2709_v55 = vsel %vm1015_vm3, %v2706_v46, %v2708_v20 }
 0x27f   : > { %2754 = vrot.lane.b32.xlu1 %v2707_v15, %s3990_s7  ;;  %v2044_v49 = vadd.f32 %v5397_v45, %v2008_v10  ;;  %v1186_v28 = vadd.f32 %v5514_v7, %v1010_v0  ;;  %v5642_v10 = vpop.f32.mrf.mxu0 }
 0x280   : > { %v1799_v6 = vpop.permute.xlu0 %1798  ;;  %3209 = vrot.lane.b32.xlu0 %v5589_v54, %s3990_s7  ;;  %v3068_v0 = vrot.slane %v5642_v10, 2 }
 0x281   : > { %v1862_v9 = vadd.f32 %v1799_v6, %v1741_v63  ;;  %v2073_v15 = vmax.f32 %v2044_v49, 0.0  ;;  %v1303_v7 = vadd.f32 %v5519_v2, %v1186_v28 }
 0x282   : > { %v1680_v57 = vpop.permute.xlu1 %1679 }
 0x283   : > { %v2009_v23 = vadd.f32 %v6891_v8, %v1862_v9  ;;  %2851 = vrot.lane.b32.xlu1 %v5599_v22, %s3992_s9  ;;  %v1450_v49 = vadd.f32 %v5289_v30, %v1303_v7 }
 0x284   : > { %v1565_v47 = vpop.permute.xlu0 %1564  ;;  %2611 = vrot.lane.b32.xlu0 %v2564_v44, %s3991_s8  ;;  %v1451_v44 = vadd.f32 %v5312_v52, %v1304_v56 }
 0x285   : > { %v2045_v53 = vadd.f32 %v5397_v45, %v2009_v23  ;;  %v2971_v23 = vrot.slane %v5642_v10, 1  ;;  %v1625_v34 = vadd.f32 %v1563_v41, %v1450_v49 }
 0x286   : > { %v954_v26 = vpop.permute.xlu1 %953 }
 0x287   : > { %v2074_v63 = vmax.f32 %v2045_v53, 0.0  ;;  %3114 = vrot.lane.b32.xlu1 %v3067_v1, %s3991_s8  ;;  %v1013_v28 = vadd.f32 %v954_v26, %v4604_v42  ;;  %v3069_v1 = vsel %vm1015_vm3, %v3066_v59, %v3068_v0 }
 0x288   : > { %v956_v14 = vpop.permute.xlu0 %955  ;;  %2756 = vrot.lane.b32.xlu0 %v2709_v55, %s3990_s7 }
 0x289   : > { %v2091_v6 = vpack.c.bf16 %v2074_v63, %v2073_v15  ;;  %v1742_v15 = vadd.f32 %v1680_v57, %v1625_v34  ;;  %v1626_v63 = vadd.f32 %v1565_v47, %v1451_v44  ;;  %v1189_v59 = vadd.f32 %v5602_v38, %v1013_v28 }
 0x28a   : > { %v1247_v51 = vpop.permute.xlu1 %1246 }
 0x28b   : > { %v5648_v17 = vpop.f32.mrf.mxu0  ;;  %3742 = vmatmul.mubr.msk.bf16.gmra.mxu0 %vm2135_vm5, %v2091_v6  ;;  %v2411_v9 = vpop.f32.mrf.mxu1  ;;  %3918 = vmatmul.mubr.msk.bf16.gmra.mxu1 %vm2135_vm5, %v2091_v6 }
 0x28c   : > { %v2565_v46 = vrot.slane %v5648_v17, 1  ;;  %v3434_v12 = vrot.slane %v2411_v9, 2  ;;  %3211 = vrot.lane.b32.xlu1 %v5642_v10, %s3990_s7  ;;  %v5655_v2 = vpop.permute.xlu0 %1248  ;;  %2853 = vrot.lane.b32.xlu0 %v5648_v17, %s3992_s9  ;;  %v2710_v30 = vrot.slane %v5648_v17, 2  ;;  %v1306_v9 = vadd.f32 %v1247_v51, %v1189_v59 }
 0x28d   : > { %v3887_v8 = vpop.f32.mrf.mxu1  ;;  %2331 = vmatprep.mubr.bf16.mxu0 %v6795_v48  ;;  %3921 = vmatprep.mubr.msk.bf16.mxu1 %vm3989_vm1, %v6796_v3  ;;  %v5682_v42 = vpop.f32.mrf.mxu0 }
 0x28e   : > { %v1132_v53 = vpop.permute.xlu1 %1131  ;;  %v2566_v43 = vsel %vm839_vm4, %v2563_v58, %v2565_v46  ;;  %v5680_v52 = vsel %vm1015_vm3, %v3432_v11, %v3434_v12  ;;  %v1188_v58 = vadd.f32 %v5577_v37, %v1012_v5  ;;  %v5694_v11 = vsel %vm839_vm4, %v2969_v19, %v2971_v23 }
 0x28f   : > { %v5672_v33 = vpop.f32.mrf.mxu1  ;;  %v2711_v56 = vsel %vm1015_vm3, %v2708_v20, %v2710_v30  ;;  %v5704_v38 = vpop.f32.mrf.mxu0  ;;  %v3070_v20 = vrot.slane %v5682_v42, 2 }
 0x290   : > { %v3436_v26 = vrot.slane %v5672_v33, 2  ;;  %2613 = vrot.lane.b32.xlu1 %v2566_v43, %s3991_s8  ;;  %v1682_v41 = vpop.permute.xlu0 %1681  ;;  %3116 = vrot.lane.b32.xlu0 %v3069_v1, %s3991_s8  ;;  %v1305_v54 = vadd.f32 %v5584_v60, %v1188_v58  ;;  %v2567_v49 = vrot.slane %v5704_v38, 1  ;;  %v1453_v43 = vadd.f32 %v5390_v50, %v1306_v9 }
 0x291   : > { %v3888_v55 = vpop.f32.mrf.mxu1  ;;  %v1743_v7 = vadd.f32 %v1682_v41, %v1626_v63 }
 0x292   : > { %v1801_v62 = vpop.permute.xlu1 %1800  ;;  %v5702_v37 = vsel %vm1015_vm3, %v3434_v12, %v3436_v26  ;;  %v1014_v12 = vadd.f32 %v956_v14, %v4650_v18  ;;  %v1452_v51 = vadd.f32 %v5382_v29, %v1305_v54  ;;  %v2973_v18 = vrot.slane %v5682_v42, 1 }
 0x293   : > { %v1863_v6 = vadd.f32 %v1801_v62, %v1742_v15  ;;  %v2712_v14 = vrot.slane %v5704_v38, 2  ;;  %v2568_v29 = vsel %vm839_vm4, %v2565_v46, %v2567_v49  ;;  %v5743_v62 = vpop.f32.mrf.mxu0 }
 0x294   : > { %2758 = vrot.lane.b32.xlu1 %v2711_v56, %s3990_s7  ;;  %v1803_v57 = vpop.permute.xlu0 %1802  ;;  %3310 = vrot.lane.b32.xlu0 %v5694_v11, %s3992_s9 }
 0x295   : > { %v2010_v19 = vadd.f32 %v5271_v4, %v1863_v6  ;;  %v1864_v47 = vadd.f32 %v1803_v57, %v1743_v7  ;;  %v1190_v4 = vadd.f32 %v1132_v53, %v1014_v12  ;;  %v3072_v57 = vrot.slane %v5743_v62, 2 }
 0x296   : > { %v1567_v5 = vpop.permute.xlu1 %1566 }
 0x297   : > { %v2046_v8 = vadd.f32 %v5397_v45, %v2010_v19  ;;  %v2011_v44 = vadd.f32 %v5276_v21, %v1864_v47  ;;  %v3071_v21 = vsel %vm1015_vm3, %v3068_v0, %v3070_v20  ;;  %v1627_v53 = vadd.f32 %v1567_v5, %v1452_v51 }
 0x298   : > { %2855 = vrot.lane.b32.xlu1 %v5704_v38, %s3992_s9  ;;  %v1569_v28 = vpop.permute.xlu0 %1568  ;;  %3213 = vrot.lane.b32.xlu0 %v5682_v42, %s3990_s7  ;;  %v1307_v50 = vadd.f32 %v5655_v2, %v1190_v4  ;;  %v5741_v0 = vsel %vm839_vm4, %v2971_v23, %v2973_v18  ;;  %v2713_v2 = vsel %vm1015_vm3, %v2710_v30, %v2712_v14 }
 0x299   : > { %v2047_v60 = vadd.f32 %v5397_v45, %v2011_v44  ;;  %v2075_v1 = vmax.f32 %v2046_v8, 0.0  ;;  %v1628_v63 = vadd.f32 %v1569_v28, %v1453_v43  ;;  %v3073_v43 = vsel %vm1015_vm3, %v3070_v20, %v3072_v57 }
 0x29a   : > { %v1684_v34 = vpop.permute.xlu1 %1683  ;;  %v1454_v56 = vadd.f32 %v5427_v36, %v1307_v50 }
 0x29b   : > { %v2076_v41 = vmax.f32 %v2047_v60, 0.0  ;;  %v1744_v55 = vadd.f32 %v1684_v34, %v1627_v53 }
 0x29c   : > { %3118 = vrot.lane.b32.xlu1 %v3071_v21, %s3991_s8  ;;  %v1686_v58 = vpop.permute.xlu0 %1685  ;;  %2615 = vrot.lane.b32.xlu0 %v2568_v29, %s3991_s8 }
 0x29d   : > { %v2092_v15 = vpack.c.bf16 %v2076_v41, %v2075_v1  ;;  %v1745_v46 = vadd.f32 %v1686_v58, %v1628_v63 }
 0x29e   : > { %v1805_v59 = vpop.permute.xlu1 %1804 }
 0x29f   : > { %v1865_v7 = vadd.f32 %v1805_v59, %v1744_v55  ;;  %3743 = vmatmul.mubr.msk.bf16.gmra.mxu0 %vm2135_vm5, %v2092_v15  ;;  %3922 = vmatmul.mubr.msk.bf16.gmra.mxu1 %vm2135_vm5, %v2092_v15 }
 0x2a0   : > { %3312 = vrot.lane.b32.xlu1 %v5741_v0, %s3992_s9  ;;  %v1807_v10 = vpop.permute.xlu0 %1806  ;;  %2760 = vrot.lane.b32.xlu0 %v2713_v2, %s3990_s7 }
 0x2a1   : > { %v2012_v23 = vadd.f32 %v5366_v31, %v1865_v7  ;;  %v1866_v6 = vadd.f32 %v1807_v10, %v1745_v46  ;;  %2341 = vmatprep.mubr.bf16.mxu0 %v6795_v48  ;;  %3925 = vmatprep.mubr.msk.bf16.mxu1 %vm3989_vm1, %v6796_v3 }
 0x2a2   : > { %v1571_v54 = vpop.permute.xlu1 %1570 }
 0x2a3   : > { %v2048_v30 = vadd.f32 %v5397_v45, %v2012_v23  ;;  %v2013_v19 = vadd.f32 %v5369_v24, %v1866_v6  ;;  %v1629_v47 = vadd.f32 %v1571_v54, %v1454_v56  ;;  %v5763_v9 = vpop.f32.mrf.mxu0  ;;  %v2419_v5 = vpop.f32.mrf.mxu1  ;;  %v2975_v24 = vrot.slane %v5743_v62, 1 }
 0x2a4   : > { %v2569_v31 = vrot.slane %v5763_v9, 1  ;;  %v3438_v12 = vrot.slane %v2419_v5, 2  ;;  %3215 = vrot.lane.b32.xlu1 %v5743_v62, %s3990_s7  ;;  %v1688_v36 = vpop.permute.xlu0 %1687  ;;  %2857 = vrot.lane.b32.xlu0 %v5763_v9, %s3992_s9  ;;  %v2714_v4 = vrot.slane %v5763_v9, 2 }
 0x2a5   : > { %v2049_v8 = vadd.f32 %v5397_v45, %v2013_v19  ;;  %v1746_v44 = vadd.f32 %v1688_v36, %v1629_v47  ;;  %v3891_v28 = vpop.f32.mrf.mxu1  ;;  %v2077_v34 = vmax.f32 %v2048_v30, 0.0  ;;  %v2255_v29 = vpop.f32.mrf.mxu0  ;;  %v5788_v20 = vsel %vm839_vm4, %v2973_v18, %v2975_v24 }
 0x2a6   : > { %v1809_v60 = vpop.permute.xlu1 %1808  ;;  %v2570_v51 = vsel %vm839_vm4, %v2567_v49, %v2569_v31  ;;  %v5780_v53 = vsel %vm1015_vm3, %v3436_v26, %v3438_v12  ;;  %v2715_v26 = vsel %vm1015_vm3, %v2712_v14, %v2714_v4  ;;  %v2977_v55 = vrot.slane %v2255_v29, 1 }
 0x2a7   : > { %v2078_v21 = vmax.f32 %v2049_v8, 0.0  ;;  %v1867_v1 = vadd.f32 %v1809_v60, %v1746_v44  ;;  %v2422_v41 = vpop.f32.mrf.mxu1 }
 0x2a8   : > { %v3440_v58 = vrot.slane %v2422_v41, 2  ;;  %2617 = vrot.lane.b32.xlu1 %v2570_v51, %s3991_s8  ;;  %3120 = vrot.lane.b32.xlu0 %v3073_v43, %s3991_s8 }
 0x2a9   : > { %v2093_v49 = vpack.c.bf16 %v2078_v21, %v2077_v34  ;;  %v2014_v50 = vadd.f32 %v5418_v39, %v1867_v1  ;;  %v3892_v15 = vpop.f32.mrf.mxu1  ;;  %v5799_v39 = vpop.f32.mrf.mxu0 }
 0x2aa   : > { %v5797_v63 = vsel %vm1015_vm3, %v3438_v12, %v3440_v58  ;;  %v2571_v18 = vrot.slane %v5799_v39, 1  ;;  %v2716_v59 = vrot.slane %v5799_v39, 2 }
 0x2ab   : > { %v2050_v33 = vadd.f32 %v5397_v45, %v2014_v50  ;;  %3744 = vmatmul.mubr.msk.bf16.gmra.mxu0 %vm2135_vm5, %v2093_v49  ;;  %3926 = vmatmul.mubr.msk.bf16.gmra.mxu1 %vm2135_vm5, %v2093_v49  ;;  %v3074_v45 = vrot.slane %v2255_v29, 2  ;;  %v2259_v7 = vpop.f32.mrf.mxu0 }
 0x2ac   : > { %2762 = vrot.lane.b32.xlu1 %v2715_v26, %s3990_s7  ;;  %3314 = vrot.lane.b32.xlu0 %v5788_v20, %s3992_s9  ;;  %v2717_v46 = vsel %vm1015_vm3, %v2714_v4, %v2716_v59  ;;  %v3076_v2 = vrot.slane %v2259_v7, 2  ;;  %v2979_v30 = vrot.slane %v2259_v7, 1 }
 0x2ad   : > { %v2079_v42 = vmax.f32 %v2050_v33, 0.0  ;;  %2349 = vmatprep.mubr.bf16.mxu0 %v6795_v48  ;;  %3929 = vmatprep.mubr.msk.bf16.mxu1 %vm3989_vm1, %v6796_v3  ;;  %v3075_v62 = vsel %vm1015_vm3, %v3072_v57, %v3074_v45  ;;  %v2572_v48 = vsel %vm839_vm4, %v2569_v31, %v2571_v18  ;;  %v5819_v3 = vsel %vm839_vm4, %v2975_v24, %v2977_v55 }
 0x2ae   : > { %v3077_v5 = vsel %vm1015_vm3, %v3074_v45, %v3076_v2  ;;  %v5844_v24 = vsel %vm839_vm4, %v2977_v55, %v2979_v30 }
 0x2af   : > { %v2094_v14 = vpack.c.bf16 %v2079_v42, %v2079_v42 }
 0x2b0   : > { %2859 = vrot.lane.b32.xlu1 %v5799_v39, %s3992_s9  ;;  %3217 = vrot.lane.b32.xlu0 %v2255_v29, %s3990_s7 }
 0x2b3   : > { %3745 = vmatmul.mubr.msk.bf16.gmra.mxu0 %vm2135_vm5, %v2094_v14  ;;  %3930 = vmatmul.mubr.msk.bf16.gmra.mxu1 %vm2135_vm5, %v2094_v14 }
 0x2b4   : > { %3122 = vrot.lane.b32.xlu1 %v3075_v62, %s3991_s8  ;;  %2619 = vrot.lane.b32.xlu0 %v2572_v48, %s3991_s8 }
 0x2b8   : > { %3316 = vrot.lane.b32.xlu1 %v5819_v3, %s3992_s9  ;;  %2764 = vrot.lane.b32.xlu0 %v2717_v46, %s3990_s7 }
 0x2bb   : > { %v5825_v10 = vpop.f32.mrf.mxu0  ;;  %v2427_v23 = vpop.f32.mrf.mxu1 }
 0x2bc   : > { %6892 = vst [vmem:[#allocation3_spill] sm:$0xff] %v5825_v10  ;;  %v2573_v6 = vrot.slane %v5825_v10, 1  ;;  %v3442_v56 = vrot.slane %v2427_v23, 2  ;;  %3219 = vrot.lane.b32.xlu1 %v2259_v7, %s3990_s7  ;;  %2861 = vrot.lane.b32.xlu0 %v5825_v10, %s3992_s9  ;;  %v2718_v19 = vrot.slane %v5825_v10, 2 }
 0x2bd   : > { %v3895_v57 = vpop.f32.mrf.mxu1  ;;  %v2265_v12 = vpop.f32.mrf.mxu0 }
 0x2be   : > { %v2574_v54 = vsel %vm839_vm4, %v2571_v18, %v2573_v6  ;;  %v5835_v31 = vsel %vm1015_vm3, %v3440_v58, %v3442_v56  ;;  %v2719_v28 = vsel %vm1015_vm3, %v2716_v59, %v2718_v19  ;;  %v3078_v60 = vrot.slane %v2265_v12, 2 }
 0x2bf   : > { %v2430_v47 = vpop.f32.mrf.mxu1  ;;  %v5846_v4 = vpop.f32.mrf.mxu0  ;;  %v2981_v43 = vrot.slane %v2265_v12, 1 }
 0x2c0   : > { %v3444_v36 = vrot.slane %v2430_v47, 2  ;;  %2621 = vrot.lane.b32.xlu1 %v2574_v54, %s3991_s8  ;;  %3124 = vrot.lane.b32.xlu0 %v3077_v5, %s3991_s8  ;;  %6893 = vst [vmem:[#allocation19_spill] sm:$0xff] %v5846_v4  ;;  %v2575_v51 = vrot.slane %v5846_v4, 1  ;;  %v2720_v34 = vrot.slane %v5846_v4, 2  ;;  %v3079_v21 = vsel %vm1015_vm3, %v3076_v2, %v3078_v60 }
 0x2c1   : > { %v3896_v8 = vpop.f32.mrf.mxu1  ;;  %v5861_v41 = vsel %vm839_vm4, %v2979_v30, %v2981_v43  ;;  %v2269_v58 = vpop.f32.mrf.mxu0 }
 0x2c2   : > { %v5840_v44 = vsel %vm1015_vm3, %v3442_v56, %v3444_v36  ;;  %v2576_v1 = vsel %vm839_vm4, %v2573_v6, %v2575_v51  ;;  %v2721_v29 = vsel %vm1015_vm3, %v2718_v19, %v2720_v34  ;;  %v5867_v49 = vpop.permute.xlu0 %2603  ;;  %v3080_v50 = vrot.slane %v2269_v58, 2 }
 0x2c3   : > { %v2983_v14 = vrot.slane %v2269_v58, 1 }
 0x2c4   : > { %2766 = vrot.lane.b32.xlu1 %v2719_v28, %s3990_s7  ;;  %3318 = vrot.lane.b32.xlu0 %v5844_v24, %s3992_s9  ;;  %v3081_v62 = vsel %vm1015_vm3, %v3078_v60, %v3080_v50 }
 0x2c5   : > { %v5890_v57 = vsel %vm839_vm4, %v2981_v43, %v2983_v14 }
 0x2c6   : > { %v5881_v46 = vpop.permute.xlu0 %2748 }
 0x2c8   : > { %2863 = vrot.lane.b32.xlu1 %v5846_v4, %s3992_s9  ;;  %3221 = vrot.lane.b32.xlu0 %v2265_v12, %s3990_s7 }
 0x2cc   : > { %3126 = vrot.lane.b32.xlu1 %v3079_v21, %s3991_s8  ;;  %2623 = vrot.lane.b32.xlu0 %v2576_v1, %s3991_s8 }
 0x2d0   : > { %3320 = vrot.lane.b32.xlu1 %v5861_v41, %s3992_s9  ;;  %2768 = vrot.lane.b32.xlu0 %v2721_v29, %s3990_s7 }
 0x2d2   : > { %v5892_v54 = vpop.permute.xlu0 %2845 }
 0x2d3   : > { %v5869_v15 = vpop.f32.mrf.mxu0  ;;  %v2435_v33 = vpop.f32.mrf.mxu1 }
 0x2d4   : > { %6894 = vst [vmem:[#allocation26_spill] sm:$0xff] %v5869_v15  ;;  %v2577_v26 = vrot.slane %v5869_v15, 1  ;;  %v3446_v42 = vrot.slane %v2435_v33, 2  ;;  %3223 = vrot.lane.b32.xlu1 %v2269_v58, %s3990_s7  ;;  %2865 = vrot.lane.b32.xlu0 %v5869_v15, %s3992_s9  ;;  %v2722_v55 = vrot.slane %v5869_v15, 2 }
 0x2d5   : > { %v3899_v45 = vpop.f32.mrf.mxu1  ;;  %v2275_v7 = vpop.f32.mrf.mxu0 }
 0x2d6   : > { %v2578_v18 = vsel %vm839_vm4, %v2575_v51, %v2577_v26  ;;  %v5879_v48 = vsel %vm1015_vm3, %v3444_v36, %v3446_v42  ;;  %v2723_v56 = vsel %vm1015_vm3, %v2720_v34, %v2722_v55  ;;  %v5899_v19 = vpop.permute.xlu1 %2605  ;;  %v3082_v47 = vrot.slane %v2275_v7, 2 }
 0x2d7   : > { %v2438_v59 = vpop.f32.mrf.mxu1  ;;  %v5894_v30 = vpop.f32.mrf.mxu0  ;;  %v2985_v36 = vrot.slane %v2275_v7, 1 }
 0x2d8   : > { %v3448_v2 = vrot.slane %v2438_v59, 2  ;;  %2625 = vrot.lane.b32.xlu1 %v2578_v18, %s3991_s8  ;;  %3128 = vrot.lane.b32.xlu0 %v3081_v62, %s3991_s8  ;;  %6896 = vst [vmem:[#allocation17_spill] sm:$0xff] %v5894_v30  ;;  %v2579_v5 = vrot.slane %v5894_v30, 1  ;;  %v2724_v8 = vrot.slane %v5894_v30, 2  ;;  %v3083_v28 = vsel %vm1015_vm3, %v3080_v50, %v3082_v47 }
 0x2d9   : > { %v3900_v23 = vpop.f32.mrf.mxu1  ;;  %v5902_v12 = vpop.permute.xlu0 %2607  ;;  %v5917_v34 = vsel %vm839_vm4, %v2983_v14, %v2985_v36 }
 0x2da   : > { %v5886_v6 = vsel %vm1015_vm3, %v3446_v42, %v3448_v2  ;;  %v2580_v60 = vsel %vm839_vm4, %v2577_v26, %v2579_v5  ;;  %v5910_v51 = vpop.permute.xlu1 %2750  ;;  %6897 = vst [vmem:[#allocation4_spill] sm:$0xff] %v5917_v34  ;;  %v2725_v21 = vsel %vm1015_vm3, %v2722_v55, %v2724_v8  ;;  %v2279_v1 = vpop.f32.mrf.mxu0 }
 0x2db   : > { %6895 = vst [vmem:[#allocation22_spill] sm:$0xff] %v5886_v6  ;;  %v3084_v50 = vrot.slane %v2279_v1, 2  ;;  %v2987_v62 = vrot.slane %v2279_v1, 1 }
 0x2dc   : > { %2770 = vrot.lane.b32.xlu1 %v2723_v56, %s3990_s7  ;;  %3322 = vrot.lane.b32.xlu0 %v5890_v57, %s3992_s9 }
 0x2dd   : > { %v5914_v43 = vpop.permute.xlu0 %2752  ;;  %v3085_v56 = vsel %vm1015_vm3, %v3082_v47, %v3084_v50 }
 0x2de   : > { %v5923_v29 = vpop.permute.xlu1 %2847 }
 0x2e0   : > { %2867 = vrot.lane.b32.xlu1 %v5894_v30, %s3992_s9  ;;  %3225 = vrot.lane.b32.xlu0 %v2275_v7, %s3990_s7 }
 0x2e4   : > { %3130 = vrot.lane.b32.xlu1 %v3083_v28, %s3991_s8  ;;  %2627 = vrot.lane.b32.xlu0 %v2580_v60, %s3991_s8 }
 0x2e8   : > { %3324 = vrot.lane.b32.xlu1 %v5917_v34, %s3992_s9  ;;  %2772 = vrot.lane.b32.xlu0 %v2725_v21, %s3990_s7 }
 0x2ea   : > { %v5925_v58 = vpop.permute.xlu0 %2849 }
 0x2eb   : > { %v5927_v33 = vpop.f32.mrf.mxu0  ;;  %v2443_v26 = vpop.f32.mrf.mxu1 }
 0x2ec   : > { %6898 = vst [vmem:[#allocation31_spill] sm:$0xff] %v5927_v33  ;;  %v2581_v42 = vrot.slane %v5927_v33, 1  ;;  %v3450_v45 = vrot.slane %v2443_v26, 2  ;;  %3227 = vrot.lane.b32.xlu1 %v2279_v1, %s3990_s7  ;;  %2869 = vrot.lane.b32.xlu0 %v5927_v33, %s3992_s9  ;;  %v2726_v7 = vrot.slane %v5927_v33, 2  ;;  %v5952_v33 = vsel %vm839_vm4, %v2985_v36, %v2987_v62 }
 0x2ed   : > { %v3903_v18 = vpop.f32.mrf.mxu1  ;;  %v5933_v14 = vpop.permute.xlu1 %2609  ;;  %6900 = vst [vmem:[#allocation5_spill] sm:$0xff] %v5952_v33  ;;  %v2675_v36 = vadd.f32 %v5867_v49, %v5473_v61 }
 0x2ee   : > { %v3113_v55 = vpop.permute.xlu0 %3112  ;;  %v2582_v59 = vsel %vm839_vm4, %v2579_v5, %v2581_v42  ;;  %v5941_v28 = vsel %vm1015_vm3, %v3448_v2, %v3450_v45  ;;  %v5943_v60 = vpop.f32.mrf.mxu0  ;;  %v2727_v18 = vsel %vm1015_vm3, %v2724_v8, %v2726_v7 }
 0x2ef   : > { %v5937_v23 = vpop.f32.mrf.mxu1  ;;  %6899 = vst [vmem:[#allocation18_spill] sm:$0xff] %v5941_v28  ;;  %v2989_v30 = vrot.slane %v5943_v60, 1 }
 0x2f0   : > { %v3452_v21 = vrot.slane %v5937_v23, 2  ;;  %2629 = vrot.lane.b32.xlu1 %v2582_v59, %s3991_s8  ;;  %3132 = vrot.lane.b32.xlu0 %v3085_v56, %s3991_s8  ;;  %v5957_v47 = vpop.f32.mrf.mxu0  ;;  %v3086_v56 = vrot.slane %v5943_v60, 2 }
 0x2f1   : > { %v3904_v26 = vpop.f32.mrf.mxu1  ;;  %v5948_v5 = vpop.permute.xlu1 %2754  ;;  %6902 = vst [vmem:[#allocation30_spill] sm:$0xff] %v5957_v47  ;;  %v2583_v8 = vrot.slane %v5957_v47, 1  ;;  %v2728_v15 = vrot.slane %v5957_v47, 2 }
 0x2f2   : > { %v3210_v1 = vpop.permute.xlu0 %3209  ;;  %v5955_v2 = vsel %vm1015_vm3, %v3450_v45, %v3452_v21  ;;  %v2820_v45 = vadd.f32 %v5881_v46, %v2675_v36  ;;  %v5989_v36 = vsel %vm839_vm4, %v2987_v62, %v2989_v30 }
 0x2f3   : > { %6901 = vst [vmem:[#allocation32_spill] sm:$0xff] %v5955_v2  ;;  %v3087_v2 = vsel %vm1015_vm3, %v3084_v50, %v3086_v56  ;;  %v2584_v61 = vsel %vm839_vm4, %v2581_v42, %v2583_v8  ;;  %6903 = vst [vmem:[#allocation34_spill] sm:$0xff] %v5989_v36 }
 0x2f4   : > { %2774 = vrot.lane.b32.xlu1 %v2727_v18, %s3990_s7  ;;  %3326 = vrot.lane.b32.xlu0 %v5952_v33, %s3992_s9  ;;  %v2917_v49 = vadd.f32 %v5892_v54, %v2820_v45  ;;  %v5992_v33 = vpop.f32.mrf.mxu0 }
 0x2f5   : > { %v5962_v59 = vpop.permute.xlu1 %2851  ;;  %v3088_v45 = vrot.slane %v5992_v33, 2 }
 0x2f6   : > { %v5964_v23 = vpop.permute.xlu0 %2611  ;;  %v3039_v50 = vadd.f32 %v5549_v32, %v2917_v49 }
 0x2f7   : > { %v3089_v34 = vsel %vm1015_vm3, %v3086_v56, %v3088_v45 }
 0x2f8   : > { %2871 = vrot.lane.b32.xlu1 %v5957_v47, %s3992_s9  ;;  %3229 = vrot.lane.b32.xlu0 %v5943_v60, %s3990_s7  ;;  %v2729_v60 = vsel %vm1015_vm3, %v2726_v7, %v2728_v15  ;;  %v2676_v7 = vadd.f32 %v5899_v19, %v5478_v35 }
 0x2f9   : > { %v5975_v26 = vpop.permute.xlu1 %3114 }
 0x2fa   : > { %v5977_v18 = vpop.permute.xlu0 %2756  ;;  %v2821_v49 = vadd.f32 %v5910_v51, %v2676_v7  ;;  %v6030_v51 = vld [vmem:[%s6670_s4] ss:$0 sm:$0xff] }
 0x2fc   : > { %3134 = vrot.lane.b32.xlu1 %v3087_v2, %s3991_s8  ;;  %2631 = vrot.lane.b32.xlu0 %v2584_v61, %s3991_s8  ;;  %v3184_v2 = vadd.f32 %v3113_v55, %v3039_v50 }
 0x2fe   : > { %v3212_v4 = vpop.permute.xlu1 %3211  ;;  %v5986_v46 = vpop.permute.xlu0 %2853  ;;  %v3281_v32 = vadd.f32 %v3210_v1, %v3184_v2 }
 0x300   : > { %3328 = vrot.lane.b32.xlu1 %v5989_v36, %s3992_s9  ;;  %2776 = vrot.lane.b32.xlu0 %v2729_v60, %s3990_s7  ;;  %v2991_v60 = vrot.slane %v5992_v33, 1 }
 0x302   : > { %v5998_v42 = vpop.permute.xlu1 %2613  ;;  %v6000_v54 = vpop.permute.xlu0 %3116 }
 0x303   : > { %v6003_v62 = vpop.f32.mrf.mxu0  ;;  %v2451_v61 = vpop.f32.mrf.mxu1 }
 0x304   : > { %v2585_v47 = vrot.slane %v6003_v62, 1  ;;  %v3454_v36 = vrot.slane %v2451_v61, 2  ;;  %3231 = vrot.lane.b32.xlu1 %v5992_v33, %s3990_s7  ;;  %2873 = vrot.lane.b32.xlu0 %v6003_v62, %s3992_s9  ;;  %v2730_v19 = vrot.slane %v6003_v62, 2 }
 0x305   : > { %v3907_v55 = vpop.f32.mrf.mxu1  ;;  %v6024_v1 = vpop.f32.mrf.mxu0 }
 0x306   : > { %v6014_v50 = vpop.permute.xlu1 %2758  ;;  %v3311_v28 = vpop.permute.xlu0 %3310  ;;  %v2586_v35 = vsel %vm839_vm4, %v2583_v8, %v2585_v47  ;;  %v6022_v6 = vsel %vm1015_vm3, %v3452_v21, %v3454_v36  ;;  %v6042_v55 = vsel %vm839_vm4, %v2989_v30, %v2991_v60 }
 0x307   : > { %v3382_v61 = vadd.f32 %v3311_v28, %v3281_v32  ;;  %v6018_v10 = vpop.f32.mrf.mxu1  ;;  %v2918_v28 = vadd.f32 %v5923_v29, %v2821_v49  ;;  %v2731_v32 = vsel %vm1015_vm3, %v2728_v15, %v2730_v19  ;;  %v3090_v49 = vrot.slane %v6024_v1, 2 }
 0x308   : > { %v6745_v33 = vrot.slane %v6018_v10, 2  ;;  %2633 = vrot.lane.b32.xlu1 %v2586_v35, %s3991_s8  ;;  %3136 = vrot.lane.b32.xlu0 %v3089_v34, %s3991_s8 }
 0x309   : > { %v3504_v56 = vadd.f32 %v5621_v40, %v3382_v61  ;;  %v3908_v21 = vpop.f32.mrf.mxu1  ;;  %v6054_v40 = vpop.f32.mrf.mxu0  ;;  %v3040_v15 = vadd.f32 %v5610_v25, %v2918_v28 }
 0x30a   : > { %v6037_v8 = vpop.permute.xlu1 %2855  ;;  %v3214_v2 = vpop.permute.xlu0 %3213  ;;  %v6047_v35 = vsel %vm1015_vm3, %v3454_v36, %v6745_v33  ;;  %6904 = vst [vmem:[#allocation33_spill] sm:$0xff] %v6054_v40  ;;  %v2587_v61 = vrot.slane %v6054_v40, 1 }
 0x30b   : > { %v3535_v7 = vadd.f32 %v6030_v51, %v3504_v56  ;;  %v3185_v36 = vadd.f32 %v5975_v26, %v3040_v15  ;;  %v2677_v56 = vadd.f32 %v5902_v12, %v5516_v27  ;;  %v2993_v26 = vrot.slane %v6024_v1, 1 }
 0x30c   : > { %2778 = vrot.lane.b32.xlu1 %v2731_v32, %s3990_s7  ;;  %3330 = vrot.lane.b32.xlu0 %v6042_v55, %s3992_s9  ;;  %v2732_v32 = vrot.slane %v6054_v40, 2  ;;  %v2588_v27 = vsel %vm839_vm4, %v2585_v47, %v2587_v61  ;;  %v6093_v47 = vpop.f32.mrf.mxu0 }
 0x30d   : > { %v3559_v30 = vmax.f32 %v3535_v7, 0.0  ;;  %v3282_v25 = vadd.f32 %v3212_v4, %v3185_v36  ;;  %v2822_v28 = vadd.f32 %v5914_v43, %v2677_v56  ;;  %v6090_v56 = vsel %vm839_vm4, %v2991_v60, %v2993_v26 }
 0x30e   : > { %v6060_v34 = vpop.permute.xlu1 %3118  ;;  %v6062_v29 = vpop.permute.xlu0 %2615  ;;  %v3092_v60 = vrot.slane %v6093_v47, 2 }
 0x30f   : > { %3583 = vst.msk [vmem:[%s6052_s28] sm:$0xff] %vm2135_vm5, %v3559_v30  ;;  %v3091_v30 = vsel %vm1015_vm3, %v3088_v45, %v3090_v49  ;;  %v2919_v4 = vadd.f32 %v5925_v58, %v2822_v28  ;;  %v2733_v45 = vsel %vm1015_vm3, %v2730_v19, %v2732_v32 }
 0x310   : > { %2875 = vrot.lane.b32.xlu1 %v6054_v40, %s3992_s9  ;;  %3233 = vrot.lane.b32.xlu0 %v6024_v1, %s3990_s7  ;;  %v3093_v33 = vsel %vm1015_vm3, %v3090_v49, %v3092_v60  ;;  %v6905_v40 = vrot.slane %v6018_v10, 2 }
 0x311   : > { %v3041_v58 = vadd.f32 %v5694_v11, %v2919_v4 }
 0x312   : > { %v3313_v21 = vpop.permute.xlu1 %3312  ;;  %v6077_v7 = vpop.permute.xlu0 %2760 }
 0x313   : > { %v3383_v15 = vadd.f32 %v3313_v21, %v3282_v25  ;;  %v3186_v21 = vadd.f32 %v6000_v54, %v3041_v58 }
 0x314   : > { %3138 = vrot.lane.b32.xlu1 %v3091_v30, %s3991_s8  ;;  %2635 = vrot.lane.b32.xlu0 %v2588_v27, %s3991_s8  ;;  %v2678_v30 = vadd.f32 %v5933_v14, %v5528_v16 }
 0x315   : > { %v3505_v12 = vadd.f32 %v5680_v52, %v3383_v15  ;;  %v3283_v54 = vadd.f32 %v3214_v2, %v3186_v21 }
 0x316   : > { %v3216_v43 = vpop.permute.xlu1 %3215  ;;  %v6086_v1 = vpop.permute.xlu0 %2857 }
 0x317   : > { %v3536_v36 = vadd.f32 %v6030_v51, %v3505_v12  ;;  %v2823_v12 = vadd.f32 %v5948_v5, %v2678_v30 }
 0x318   : > { %3332 = vrot.lane.b32.xlu1 %v6090_v56, %s3992_s9  ;;  %2780 = vrot.lane.b32.xlu0 %v2733_v45, %s3990_s7 }
 0x319   : > { %v3560_v52 = vmax.f32 %v3536_v36, 0.0  ;;  %v2995_v36 = vrot.slane %v6093_v47, 1 }
 0x31a   : > { %v6099_v25 = vpop.permute.xlu1 %2617  ;;  %v6101_v28 = vpop.permute.xlu0 %3120 }
 0x31b   : > { %3584 = vst.msk [vmem:[%s6052_s28 + $0x8] sm:$0xff] %vm2135_vm5, %v3560_v52  ;;  %v6107_v19 = vpop.f32.mrf.mxu0  ;;  %v2459_v15 = vpop.f32.mrf.mxu1 }
 0x31c   : > { %v2589_v27 = vrot.slane %v6107_v19, 1  ;;  %v3458_v11 = vrot.slane %v2459_v15, 2  ;;  %3235 = vrot.lane.b32.xlu1 %v6093_v47, %s3990_s7  ;;  %2877 = vrot.lane.b32.xlu0 %v6107_v19, %s3992_s9  ;;  %v2734_v14 = vrot.slane %v6107_v19, 2 }
 0x31d   : > { %v3911_v4 = vpop.f32.mrf.mxu1  ;;  %v6130_v5 = vpop.f32.mrf.mxu0 }
 0x31e   : > { %v6118_v45 = vpop.permute.xlu1 %2762  ;;  %v3315_v58 = vpop.permute.xlu0 %3314  ;;  %v2590_v16 = vsel %vm839_vm4, %v2587_v61, %v2589_v27  ;;  %v6128_v2 = vsel %vm1015_vm3, %v6905_v40, %v3458_v11  ;;  %v2920_v61 = vadd.f32 %v5962_v59, %v2823_v12  ;;  %v6142_v4 = vsel %vm839_vm4, %v2993_v26, %v2995_v36 }
 0x31f   : > { %v3384_v52 = vadd.f32 %v3315_v58, %v3283_v54  ;;  %v6122_v15 = vpop.f32.mrf.mxu1  ;;  %v2735_v54 = vsel %vm1015_vm3, %v2732_v32, %v2734_v14  ;;  %v6149_v59 = vpop.f32.mrf.mxu0 }
 0x320   : > { %v3460_v47 = vrot.slane %v6122_v15, 2  ;;  %2637 = vrot.lane.b32.xlu1 %v2590_v16, %s3991_s8  ;;  %3140 = vrot.lane.b32.xlu0 %v3093_v33, %s3991_s8  ;;  %v3094_v16 = vrot.slane %v6130_v5, 2 }
 0x321   : > { %v3506_v21 = vadd.f32 %v5702_v37, %v3384_v52  ;;  %v3912_v30 = vpop.f32.mrf.mxu1  ;;  %v3042_v37 = vadd.f32 %v5741_v0, %v2920_v61  ;;  %v2679_v52 = vadd.f32 %v5964_v23, %v5581_v13 }
 0x322   : > { %v6137_v49 = vpop.permute.xlu1 %2859  ;;  %v3218_v10 = vpop.permute.xlu0 %3217  ;;  %v6147_v33 = vsel %vm1015_vm3, %v3458_v11, %v3460_v47  ;;  %v2591_v11 = vrot.slane %v6149_v59, 1 }
 0x323   : > { %v3537_v40 = vadd.f32 %v6030_v51, %v3506_v21  ;;  %v3187_v26 = vadd.f32 %v6060_v34, %v3042_v37  ;;  %v2824_v61 = vadd.f32 %v5977_v18, %v2679_v52  ;;  %v2997_v34 = vrot.slane %v6130_v5, 1 }
 0x324   : > { %2782 = vrot.lane.b32.xlu1 %v2735_v54, %s3990_s7  ;;  %3334 = vrot.lane.b32.xlu0 %v6142_v4, %s3992_s9  ;;  %v3095_v37 = vsel %vm1015_vm3, %v3092_v60, %v3094_v16  ;;  %v2592_v13 = vsel %vm839_vm4, %v2589_v27, %v2591_v11  ;;  %v6188_v27 = vpop.f32.mrf.mxu0 }
 0x325   : > { %v3561_v12 = vmax.f32 %v3537_v40, 0.0  ;;  %v3284_v0 = vadd.f32 %v3216_v43, %v3187_v26  ;;  %v2736_v40 = vrot.slane %v6149_v59, 2  ;;  %v2921_v23 = vadd.f32 %v5986_v46, %v2824_v61 }
 0x326   : > { %v6155_v58 = vpop.permute.xlu1 %3122  ;;  %v6157_v32 = vpop.permute.xlu0 %2619  ;;  %v6185_v26 = vsel %vm839_vm4, %v2995_v36, %v2997_v34  ;;  %v3096_v36 = vrot.slane %v6188_v27, 2 }
 0x327   : > { %3585 = vst.msk [vmem:[%s6052_s28 + $0x10] sm:$0xff] %vm2135_vm5, %v3561_v12  ;;  %v2737_v60 = vsel %vm1015_vm3, %v2734_v14, %v2736_v40  ;;  %v3043_v46 = vadd.f32 %v5788_v20, %v2921_v23 }
 0x328   : > { %2879 = vrot.lane.b32.xlu1 %v6149_v59, %s3992_s9  ;;  %3237 = vrot.lane.b32.xlu0 %v6130_v5, %s3990_s7 }
 0x329   : > { %v3188_v61 = vadd.f32 %v6101_v28, %v3043_v46 }
 0x32a   : > { %v3317_v21 = vpop.permute.xlu1 %3316  ;;  %v6172_v30 = vpop.permute.xlu0 %2764 }
 0x32b   : > { %v3385_v54 = vadd.f32 %v3317_v21, %v3284_v0  ;;  %v3285_v28 = vadd.f32 %v3218_v10, %v3188_v61 }
 0x32c   : > { %3142 = vrot.lane.b32.xlu1 %v3095_v37, %s3991_s8  ;;  %2639 = vrot.lane.b32.xlu0 %v2592_v13, %s3991_s8 }
 0x32d   : > { %v3507_v18 = vadd.f32 %v5780_v53, %v3385_v54  ;;  %v2680_v54 = vadd.f32 %v5998_v42, %v5599_v22 }
 0x32e   : > { %v3220_v43 = vpop.permute.xlu1 %3219  ;;  %v6181_v5 = vpop.permute.xlu0 %2861 }
 0x32f   : > { %v3538_v12 = vadd.f32 %v6030_v51, %v3507_v18  ;;  %v2825_v23 = vadd.f32 %v6014_v50, %v2680_v54  ;;  %v2999_v18 = vrot.slane %v6188_v27, 1 }
 0x330   : > { %3336 = vrot.lane.b32.xlu1 %v6185_v26, %s3992_s9  ;;  %2784 = vrot.lane.b32.xlu0 %v2737_v60, %s3990_s7 }
 0x331   : > { %v3562_v53 = vmax.f32 %v3538_v12, 0.0 }
 0x332   : > { %v6194_v52 = vpop.permute.xlu1 %2621  ;;  %v6196_v0 = vpop.permute.xlu0 %3124 }
 0x333   : > { %3586 = vst.msk [vmem:[%s6052_s28 + $0x18] sm:$0xff] %vm2135_vm5, %v3562_v53  ;;  %v6202_v14 = vpop.f32.mrf.mxu0  ;;  %v2467_v21 = vpop.f32.mrf.mxu1 }
 0x334   : > { %v2593_v37 = vrot.slane %v6202_v14, 1  ;;  %v3462_v20 = vrot.slane %v2467_v21, 2  ;;  %3239 = vrot.lane.b32.xlu1 %v6188_v27, %s3990_s7  ;;  %2881 = vrot.lane.b32.xlu0 %v6202_v14, %s3992_s9  ;;  %v2738_v42 = vrot.slane %v6202_v14, 2  ;;  %v3097_v21 = vsel %vm1015_vm3, %v3094_v16, %v3096_v36 }
 0x335   : > { %v3915_v13 = vpop.f32.mrf.mxu1  ;;  %v6225_v50 = vpop.f32.mrf.mxu0 }
 0x336   : > { %v6213_v12 = vpop.permute.xlu1 %2766  ;;  %v3319_v60 = vpop.permute.xlu0 %3318  ;;  %v2594_v22 = vsel %vm839_vm4, %v2591_v11, %v2593_v37  ;;  %v6223_v10 = vsel %vm1015_vm3, %v3460_v47, %v3462_v20  ;;  %v2922_v11 = vadd.f32 %v6037_v8, %v2825_v23  ;;  %v6237_v13 = vsel %vm839_vm4, %v2997_v34, %v2999_v18 }
 0x337   : > { %v3386_v46 = vadd.f32 %v3319_v60, %v3285_v28  ;;  %v6217_v53 = vpop.f32.mrf.mxu1  ;;  %v2739_v28 = vsel %vm1015_vm3, %v2736_v40, %v2738_v42  ;;  %v6244_v8 = vpop.f32.mrf.mxu0 }
 0x338   : > { %v3464_v27 = vrot.slane %v6217_v53, 2  ;;  %2641 = vrot.lane.b32.xlu1 %v2594_v22, %s3991_s8  ;;  %3144 = vrot.lane.b32.xlu0 %v3097_v21, %s3991_s8  ;;  %v2681_v21 = vadd.f32 %v6062_v29, %v5648_v17 }
 0x339   : > { %v3508_v61 = vadd.f32 %v5797_v63, %v3386_v46  ;;  %v3916_v54 = vpop.f32.mrf.mxu1  ;;  %v3044_v63 = vadd.f32 %v5819_v3, %v2922_v11  ;;  %v3098_v46 = vrot.slane %v6225_v50, 2 }
 0x33a   : > { %v6232_v16 = vpop.permute.xlu1 %2863  ;;  %v3222_v15 = vpop.permute.xlu0 %3221  ;;  %v6242_v60 = vsel %vm1015_vm3, %v3462_v20, %v3464_v27  ;;  %v2595_v20 = vrot.slane %v6244_v8, 1  ;;  %v2826_v11 = vadd.f32 %v6077_v7, %v2681_v21 }
 0x33b   : > { %v3539_v47 = vadd.f32 %v6030_v51, %v3508_v61  ;;  %v3189_v34 = vadd.f32 %v6155_v58, %v3044_v63  ;;  %v3001_v58 = vrot.slane %v6225_v50, 1  ;;  %v3099_v63 = vsel %vm1015_vm3, %v3096_v36, %v3098_v46 }
 0x33c   : > { %2786 = vrot.lane.b32.xlu1 %v2739_v28, %s3990_s7  ;;  %3338 = vrot.lane.b32.xlu0 %v6237_v13, %s3992_s9  ;;  %v2596_v17 = vsel %vm839_vm4, %v2593_v37, %v2595_v20  ;;  %v2923_v29 = vadd.f32 %v6086_v1, %v2826_v11  ;;  %v6283_v37 = vpop.f32.mrf.mxu0 }
 0x33d   : > { %v3563_v23 = vmax.f32 %v3539_v47, 0.0  ;;  %v3286_v3 = vadd.f32 %v3220_v43, %v3189_v34  ;;  %v2740_v47 = vrot.slane %v6244_v8, 2  ;;  %v6280_v34 = vsel %vm839_vm4, %v2999_v18, %v3001_v58 }
 0x33e   : > { %v6250_v22 = vpop.permute.xlu1 %3126  ;;  %v6252_v40 = vpop.permute.xlu0 %2623  ;;  %v3045_v1 = vadd.f32 %v5844_v24, %v2923_v29  ;;  %v3100_v18 = vrot.slane %v6283_v37, 2 }
 0x33f   : > { %3587 = vst.msk [vmem:[%s6052_s28 + $0x20] sm:$0xff] %vm2135_vm5, %v3563_v23  ;;  %v2741_v36 = vsel %vm1015_vm3, %v2738_v42, %v2740_v47 }
 0x340   : > { %2883 = vrot.lane.b32.xlu1 %v6244_v8, %s3992_s9  ;;  %3241 = vrot.lane.b32.xlu0 %v6225_v50, %s3990_s7  ;;  %v3190_v11 = vadd.f32 %v6196_v0, %v3045_v1 }
 0x342   : > { %v3321_v61 = vpop.permute.xlu1 %3320  ;;  %v6267_v54 = vpop.permute.xlu0 %2768  ;;  %v3287_v0 = vadd.f32 %v3222_v15, %v3190_v11 }
 0x343   : > { %v3387_v28 = vadd.f32 %v3321_v61, %v3286_v3 }
 0x344   : > { %3146 = vrot.lane.b32.xlu1 %v3099_v63, %s3991_s8  ;;  %2643 = vrot.lane.b32.xlu0 %v2596_v17, %s3991_s8 }
 0x345   : > { %v3509_v7 = vadd.f32 %v5835_v31, %v3387_v28  ;;  %v2682_v28 = vadd.f32 %v6099_v25, %v5704_v38 }
 0x346   : > { %v3224_v43 = vpop.permute.xlu1 %3223  ;;  %v6276_v50 = vpop.permute.xlu0 %2865 }
 0x347   : > { %v3540_v23 = vadd.f32 %v6030_v51, %v3509_v7  ;;  %v2827_v29 = vadd.f32 %v6118_v45, %v2682_v28  ;;  %v3003_v7 = vrot.slane %v6283_v37, 1 }
 0x348   : > { %3340 = vrot.lane.b32.xlu1 %v6280_v34, %s3992_s9  ;;  %2788 = vrot.lane.b32.xlu0 %v2741_v36, %s3990_s7 }
 0x349   : > { %v3564_v31 = vmax.f32 %v3540_v23, 0.0 }
 0x34a   : > { %v6289_v21 = vpop.permute.xlu1 %2625  ;;  %v6291_v3 = vpop.permute.xlu0 %3128 }
 0x34b   : > { %3588 = vst.msk [vmem:[%s6052_s28 + $0x28] sm:$0xff] %vm2135_vm5, %v3564_v31  ;;  %v6297_v42 = vpop.f32.mrf.mxu0  ;;  %v2475_v61 = vpop.f32.mrf.mxu1 }
 0x34c   : > { %v2597_v63 = vrot.slane %v6297_v42, 1  ;;  %v3466_v24 = vrot.slane %v2475_v61, 2  ;;  %3243 = vrot.lane.b32.xlu1 %v6283_v37, %s3990_s7  ;;  %2885 = vrot.lane.b32.xlu0 %v6297_v42, %s3992_s9  ;;  %v2742_v25 = vrot.slane %v6297_v42, 2  ;;  %v3101_v61 = vsel %vm1015_vm3, %v3098_v46, %v3100_v18 }
 0x34d   : > { %v3919_v17 = vpop.f32.mrf.mxu1  ;;  %v6320_v45 = vpop.f32.mrf.mxu0 }
 0x34e   : > { %v6308_v23 = vpop.permute.xlu1 %2770  ;;  %v3323_v36 = vpop.permute.xlu0 %3322  ;;  %v2598_v38 = vsel %vm839_vm4, %v2595_v20, %v2597_v63  ;;  %v6318_v15 = vsel %vm1015_vm3, %v3464_v27, %v3466_v24  ;;  %v2924_v20 = vadd.f32 %v6137_v49, %v2827_v29  ;;  %v6332_v17 = vsel %vm839_vm4, %v3001_v58, %v3003_v7 }
 0x34f   : > { %v3388_v1 = vadd.f32 %v3323_v36, %v3287_v0  ;;  %v6312_v31 = vpop.f32.mrf.mxu1  ;;  %v2743_v0 = vsel %vm1015_vm3, %v2740_v47, %v2742_v25  ;;  %v3102_v47 = vrot.slane %v6320_v45, 2 }
 0x350   : > { %v3468_v37 = vrot.slane %v6312_v31, 2  ;;  %2645 = vrot.lane.b32.xlu1 %v2598_v38, %s3991_s8  ;;  %3148 = vrot.lane.b32.xlu0 %v3101_v61, %s3991_s8  ;;  %v6337_v38 = vpop.f32.mrf.mxu0  ;;  %v2683_v31 = vadd.f32 %v6157_v32, %v5763_v9 }
 0x351   : > { %v3510_v11 = vadd.f32 %v5840_v44, %v3388_v1  ;;  %v3920_v28 = vpop.f32.mrf.mxu1  ;;  %6906 = vst [vmem:[#allocation35_spill] sm:$0xff] %v6337_v38  ;;  %v3046_v44 = vadd.f32 %v5861_v41, %v2924_v20 }
 0x352   : > { %v6327_v46 = vpop.permute.xlu1 %2867  ;;  %v3226_v53 = vpop.permute.xlu0 %3225  ;;  %v6335_v36 = vsel %vm1015_vm3, %v3466_v24, %v3468_v37  ;;  %v2599_v24 = vrot.slane %v6337_v38, 1  ;;  %v2828_v61 = vadd.f32 %v6172_v30, %v2683_v31  ;;  %v2744_v28 = vrot.slane %v6337_v38, 2 }
 0x353   : > { %v3541_v27 = vadd.f32 %v6030_v51, %v3510_v11  ;;  %v3191_v58 = vadd.f32 %v6250_v22, %v3046_v44  ;;  %v3005_v22 = vrot.slane %v6320_v45, 1 }
 0x354   : > { %2790 = vrot.lane.b32.xlu1 %v2743_v0, %s3990_s7  ;;  %3342 = vrot.lane.b32.xlu0 %v6332_v17, %s3992_s9  ;;  %v3103_v0 = vsel %vm1015_vm3, %v3100_v18, %v3102_v47  ;;  %v2600_v9 = vsel %vm839_vm4, %v2597_v63, %v2599_v24  ;;  %v2925_v32 = vadd.f32 %v6181_v5, %v2828_v61 }
 0x355   : > { %v3565_v49 = vmax.f32 %v3541_v27, 0.0  ;;  %v3288_v41 = vadd.f32 %v3224_v43, %v3191_v58  ;;  %v6368_v43 = vpop.f32.mrf.mxu0  ;;  %v6377_v63 = vsel %vm839_vm4, %v3003_v7, %v3005_v22  ;;  %v2745_v31 = vsel %vm1015_vm3, %v2742_v25, %v2744_v28 }
 0x356   : > { %v6343_v29 = vpop.permute.xlu1 %3130  ;;  %v6345_v1 = vpop.permute.xlu0 %2627 }
 0x357   : > { %3589 = vst.msk [vmem:[%s6052_s28 + $0x30] sm:$0xff] %vm2135_vm5, %v3565_v49 }
 0x358   : > { %2887 = vrot.lane.b32.xlu1 %v6337_v38, %s3992_s9  ;;  %3245 = vrot.lane.b32.xlu0 %v6320_v45, %s3990_s7  ;;  %v6908_v38 = vrot.slane %v6368_v43, 2 }
 0x35a   : > { %v3325_v20 = vpop.permute.xlu1 %3324  ;;  %v6360_v11 = vpop.permute.xlu0 %2772 }
 0x35b   : > { %v3389_v27 = vadd.f32 %v3325_v20, %v3288_v41 }
 0x35c   : > { %3150 = vrot.lane.b32.xlu1 %v3103_v0, %s3991_s8  ;;  %2647 = vrot.lane.b32.xlu0 %v2600_v9, %s3991_s8 }
 0x35d   : > { %v3511_v30 = vadd.f32 %v5879_v48, %v3389_v27  ;;  %v3047_v48 = vadd.f32 %v5890_v57, %v2925_v32  ;;  %v2684_v57 = vadd.f32 %v6194_v52, %v5799_v39 }
 0x35e   : > { %v6371_v45 = vpop.permute.xlu1 %3227  ;;  %v6373_v44 = vpop.permute.xlu0 %2869 }
 0x35f   : > { %v3542_v49 = vadd.f32 %v6030_v51, %v3511_v30  ;;  %v2333_v18 = vpop.f32.mrf.mxu0  ;;  %v2483_v58 = vpop.f32.mrf.mxu1  ;;  %v3192_v7 = vadd.f32 %v6291_v3, %v3047_v48  ;;  %v2829_v48 = vadd.f32 %v6213_v12, %v2684_v57  ;;  %v6909_v57 = vld [vmem:[#allocation22_spill] sm:$0xff] }
 0x360   : > { %v3470_v41 = vrot.slane %v2483_v58, 2  ;;  %3344 = vrot.lane.b32.xlu1 %v6377_v63, %s3992_s9  ;;  %2792 = vrot.lane.b32.xlu0 %v2745_v31, %s3990_s7  ;;  %v2601_v9 = vrot.slane %v2333_v18, 1  ;;  %v2746_v39 = vrot.slane %v2333_v18, 2 }
 0x361   : > { %v3566_v5 = vmax.f32 %v3542_v49, 0.0  ;;  %v6384_v61 = vpop.f32.mrf.mxu0  ;;  %v3923_v20 = vpop.f32.mrf.mxu1  ;;  %v3289_v49 = vadd.f32 %v3226_v53, %v3192_v7  ;;  %v3105_v53 = vsel %vm1015_vm3, %v3102_v47, %v6908_v38  ;;  %v2926_v12 = vadd.f32 %v6232_v16, %v2829_v48  ;;  %v6910_v48 = vld [vmem:[#allocation4_spill] sm:$0xff] }
 0x362   : > { %v6386_v27 = vpop.permute.xlu1 %2629  ;;  %v6388_v0 = vpop.permute.xlu0 %3132  ;;  %v6395_v58 = vsel %vm1015_vm3, %v3468_v37, %v3470_v41  ;;  %v2747_v38 = vsel %vm1015_vm3, %v2744_v28, %v2746_v39 }
 0x363   : > { %3590 = vst.msk [vmem:[%s6052_s28 + $0x38] sm:$0xff] %vm2135_vm5, %v3566_v5  ;;  %v2486_v30 = vpop.f32.mrf.mxu1  ;;  %v2337_v3 = vpop.f32.mrf.mxu0  ;;  %v6748_v5 = vrot.slane %v6368_v43, 1 }
 0x364   : > { %v3472_v32 = vrot.slane %v2486_v30, 2  ;;  %3247 = vrot.lane.b32.xlu1 %v6368_v43, %s3990_s7  ;;  %2889 = vrot.lane.b32.xlu0 %v2333_v18, %s3992_s9  ;;  %v2602_v30 = vsel %vm839_vm4, %v2599_v24, %v2601_v9 }
 0x365   : > { %v3924_v31 = vpop.f32.mrf.mxu1  ;;  %v6416_v7 = vpop.f32.mrf.mxu0  ;;  %v6428_v47 = vsel %vm839_vm4, %v3005_v22, %v6748_v5 }
 0x366   : > { %v6404_v20 = vpop.permute.xlu1 %2774  ;;  %v3327_v37 = vpop.permute.xlu0 %3326  ;;  %v6407_v25 = vsel %vm1015_vm3, %v3470_v41, %v3472_v32 }
 0x367   : > { %6907 = vst [vmem:[#allocation27_spill] sm:$0xff] %v6407_v25  ;;  %v3390_v52 = vadd.f32 %v3327_v37, %v3289_v49  ;;  %v3048_v37 = vadd.f32 %v6910_v48, %v2926_v12 }
 0x368   : > { %2649 = vrot.lane.b32.xlu1 %v2602_v30, %s3991_s8  ;;  %3152 = vrot.lane.b32.xlu0 %v3105_v53, %s3991_s8 }
 0x369   : > { %v3512_v31 = vadd.f32 %v6909_v57, %v3390_v52  ;;  %v3193_v22 = vadd.f32 %v6343_v29, %v3048_v37 }
 0x36a   : > { %v6419_v41 = vpop.permute.xlu1 %2871  ;;  %v6421_v18 = vpop.permute.xlu0 %3229 }
 0x36b   : > { %v3543_v24 = vadd.f32 %v6030_v51, %v3512_v31  ;;  %v2343_v9 = vpop.f32.mrf.mxu0  ;;  %v2491_v49 = vpop.f32.mrf.mxu1  ;;  %v3106_v31 = vrot.slane %v6384_v61, 2 }
 0x36c   : > { %v3474_v16 = vrot.slane %v2491_v49, 2  ;;  %2794 = vrot.lane.b32.xlu1 %v2747_v38, %s3990_s7  ;;  %3346 = vrot.lane.b32.xlu0 %v6428_v47, %s3992_s9  ;;  %v3108_v9 = vrot.slane %v6416_v7, 2  ;;  %v6912_v49 = vld [vmem:[#allocation3_spill] sm:$0xff] }
 0x36d   : > { %v3567_v52 = vmax.f32 %v3543_v24, 0.0  ;;  %v6434_v30 = vpop.f32.mrf.mxu0  ;;  %v3927_v53 = vpop.f32.mrf.mxu1  ;;  %v2685_v38 = vadd.f32 %v6252_v40, %v6912_v49 }
 0x36e   : > { %v6436_v57 = vpop.permute.xlu1 %3134  ;;  %v6438_v28 = vpop.permute.xlu0 %2631  ;;  %v6441_v39 = vsel %vm1015_vm3, %v3472_v32, %v3474_v16  ;;  %v3290_v32 = vadd.f32 %v6371_v45, %v3193_v22  ;;  %v6914_v45 = vrot.slane %v6368_v43, 2 }
 0x36f   : > { %6911 = vst [vmem:[#allocation6_spill] sm:$0xff] %v6441_v39  ;;  %3591 = vst.msk [vmem:[%s6052_s28 + $0x40] sm:$0xff] %vm2135_vm5, %v3567_v52  ;;  %v2346_v12 = vpop.f32.mrf.mxu0  ;;  %v2494_v24 = vpop.f32.mrf.mxu1  ;;  %v2830_v53 = vadd.f32 %v6267_v54, %v2685_v38  ;;  %v3009_v52 = vrot.slane %v6384_v61, 1 }
 0x370   : > { %v3476_v48 = vrot.slane %v2494_v24, 2  ;;  %2891 = vrot.lane.b32.xlu1 %v2337_v3, %s3992_s9  ;;  %3249 = vrot.lane.b32.xlu0 %v6384_v61, %s3990_s7  ;;  %v3011_v3 = vrot.slane %v6416_v7, 1  ;;  %v3107_v22 = vsel %vm1015_vm3, %v6914_v45, %v3106_v31 }
 0x371   : > { %v6454_v29 = vpop.f32.mrf.mxu0  ;;  %v3928_v37 = vpop.f32.mrf.mxu1  ;;  %v2927_v61 = vadd.f32 %v6276_v50, %v2830_v53 }
 0x372   : > { %v3329_v12 = vpop.permute.xlu1 %3328  ;;  %v6458_v5 = vpop.permute.xlu0 %2776  ;;  %v6461_v40 = vsel %vm1015_vm3, %v3474_v16, %v3476_v48  ;;  %v3109_v37 = vsel %vm1015_vm3, %v3106_v31, %v3108_v9  ;;  %v6915_v16 = vld [vmem:[#allocation18_spill] sm:$0xff]  ;;  %v6484_v50 = vsel %vm839_vm4, %v3009_v52, %v3011_v3 }
 0x373   : > { %6913 = vst [vmem:[#allocation36_spill] sm:$0xff] %v6461_v40  ;;  %v3391_v24 = vadd.f32 %v3329_v12, %v3290_v32  ;;  %v2351_v49 = vpop.f32.mrf.mxu0  ;;  %v2499_v39 = vpop.f32.mrf.mxu1 }
 0x374   : > { %v3478_v54 = vrot.slane %v2499_v39, 2  ;;  %3154 = vrot.lane.b32.xlu1 %v3107_v22, %s3991_s8  ;;  %3156 = vrot.lane.b32.xlu0 %v3109_v37, %s3991_s8  ;;  %v6916_v22 = vrot.slane %v6368_v43, 1 }
 0x375   : > { %v3513_v38 = vadd.f32 %v6915_v16, %v3391_v24  ;;  %v2352_v40 = vpop.f32.mrf.mxu0  ;;  %v3931_v25 = vpop.f32.mrf.mxu1 }
 0x376   : > { %v3232_v32 = vpop.permute.xlu1 %3231  ;;  %v6472_v12 = vpop.permute.xlu0 %2873  ;;  %v6475_v49 = vsel %vm1015_vm3, %v3476_v48, %v3478_v54  ;;  %v6481_v37 = vsel %vm839_vm4, %v6916_v22, %v3009_v52  ;;  %v6917_v25 = vld [vmem:[#allocation5_spill] sm:$0xff]  ;;  %v3306_v52 = vrot.slane %v6454_v29, 1  ;;  %v3013_v22 = vrot.slane %v6434_v30, 1 }
 0x377   : > { %v3544_v45 = vadd.f32 %v6030_v51, %v3513_v38  ;;  %v2354_v39 = vpop.f32.mrf.mxu0  ;;  %v2502_v31 = vpop.f32.mrf.mxu1  ;;  %v3049_v48 = vadd.f32 %v6917_v25, %v2927_v61  ;;  %v6918_v61 = vld [vmem:[#allocation19_spill] sm:$0xff] }
 0x378   : > { %3348 = vrot.lane.b32.xlu1 %v6481_v37, %s3992_s9  ;;  %3350 = vrot.lane.b32.xlu0 %v6484_v50, %s3992_s9  ;;  %v3110_v39 = vrot.slane %v6434_v30, 2 }
 0x379   : > { %v3568_v53 = vmax.f32 %v3544_v45, 0.0  ;;  %v2355_v24 = vpop.f32.mrf.mxu0  ;;  %v3932_v54 = vpop.f32.mrf.mxu1  ;;  %v3194_v38 = vadd.f32 %v6388_v0, %v3049_v48  ;;  %v2686_v45 = vadd.f32 %v6289_v21, %v6918_v61 }
 0x37a   : > { %v6491_v16 = vpop.permute.xlu1 %2633  ;;  %v3137_v43 = vpop.permute.xlu0 %3136 }
 0x37b   : > { %3592 = vst.msk [vmem:[%s6052_s28 + $0x48] sm:$0xff] %vm2135_vm5, %v3568_v53  ;;  %v3291_v31 = vadd.f32 %v6421_v18, %v3194_v38  ;;  %v2831_v48 = vadd.f32 %v6308_v23, %v2686_v45  ;;  %v3111_v53 = vsel %vm1015_vm3, %v3108_v9, %v3110_v39  ;;  %v6919_v18 = vld [vmem:[#allocation32_spill] sm:$0xff]  ;;  %v6519_v23 = vsel %vm839_vm4, %v3011_v3, %v3013_v22  ;;  %v6920_v9 = vld [vmem:[#allocation34_spill] sm:$0xff] }
 0x37c   : > { %3251 = vrot.lane.b32.xlu1 %v6416_v7, %s3990_s7  ;;  %3253 = vrot.lane.b32.xlu0 %v6434_v30, %s3990_s7  ;;  %v3307_v7 = vsel %vm839_vm4, %v3013_v22, %v3306_v52 }
 0x37d   : > { %v2928_v21 = vadd.f32 %v6327_v46, %v2831_v48  ;;  %v3308_v48 = vrot.slane %v2352_v40, 1 }
 0x37e   : > { %v6506_v0 = vpop.permute.xlu1 %2778  ;;  %v3331_v25 = vpop.permute.xlu0 %3330 }
 0x37f   : > { %v3392_v24 = vadd.f32 %v3331_v25, %v3291_v31  ;;  %v3050_v39 = vadd.f32 %v6920_v9, %v2928_v21 }
 0x380   : > { %3158 = vrot.lane.b32.xlu1 %v3111_v53, %s3991_s8  ;;  %3354 = vrot.lane.b32.xlu0 %v3307_v7, %s3992_s9 }
 0x381   : > { %v3514_v54 = vadd.f32 %v6919_v18, %v3392_v24  ;;  %v3195_v46 = vadd.f32 %v6436_v57, %v3050_v39  ;;  %v6921_v24 = vld [vmem:[#allocation26_spill] sm:$0xff] }
 0x382   : > { %v6515_v30 = vpop.permute.xlu1 %2875  ;;  %v3234_v38 = vpop.permute.xlu0 %3233  ;;  %v2687_v3 = vadd.f32 %v6345_v1, %v6921_v24 }
 0x383   : > { %v3545_v61 = vadd.f32 %v6030_v51, %v3514_v54  ;;  %v3292_v22 = vadd.f32 %v3232_v32, %v3195_v46  ;;  %v3309_v54 = vsel %vm839_vm4, %v3306_v52, %v3308_v48  ;;  %v6922_v52 = vld [vmem:[#allocation17_spill] sm:$0xff] }
 0x384   : > { %3352 = vrot.lane.b32.xlu1 %v6519_v23, %s3992_s9  ;;  %v2832_v21 = vadd.f32 %v6360_v11, %v2687_v3  ;;  %v2688_v46 = vadd.f32 %v6386_v27, %v6922_v52 }
 0x385   : > { %v3569_v45 = vmax.f32 %v3545_v61, 0.0 }
 0x386   : > { %v3139_v31 = vpop.permute.xlu1 %3138  ;;  %v6524_v25 = vpop.permute.xlu0 %2635  ;;  %v2929_v57 = vadd.f32 %v6373_v44, %v2832_v21  ;;  %v2833_v24 = vadd.f32 %v6404_v20, %v2688_v46  ;;  %v6923_v20 = vld [vmem:[#allocation31_spill] sm:$0xff] }
 0x387   : > { %3593 = vst.msk [vmem:[%s6052_s28 + $0x50] sm:$0xff] %vm2135_vm5, %v3569_v45 }
 0x388   : > { %3255 = vrot.lane.b32.xlu1 %v6454_v29, %s3990_s7  ;;  %v3051_v32 = vadd.f32 %v6042_v55, %v2929_v57  ;;  %v2930_v55 = vadd.f32 %v6419_v41, %v2833_v24 }
 0x38a   : > { %v3333_v53 = vpop.permute.xlu1 %3332  ;;  %v6533_v7 = vpop.permute.xlu0 %2780  ;;  %v3196_v45 = vadd.f32 %v3137_v43, %v3051_v32 }
 0x38b   : > { %v3393_v18 = vadd.f32 %v3333_v53, %v3292_v22 }
 0x38c   : > { %3356 = vrot.lane.b32.xlu1 %v3309_v54, %s3992_s9  ;;  %v3293_v44 = vadd.f32 %v3234_v38, %v3196_v45 }
 0x38d   : > { %v3515_v40 = vadd.f32 %v6022_v6, %v3393_v18  ;;  %v3052_v18 = vadd.f32 %v6090_v56, %v2930_v55 }
 0x38e   : > { %v3236_v29 = vpop.permute.xlu1 %3235  ;;  %v6540_v61 = vpop.permute.xlu0 %2877 }
 0x38f   : > { %v3546_v1 = vadd.f32 %v6030_v51, %v3515_v40  ;;  %v3197_v57 = vadd.f32 %v3139_v31, %v3052_v18  ;;  %v2689_v40 = vadd.f32 %v6438_v28, %v6923_v20 }
 0x391   : > { %v3570_v9 = vmax.f32 %v3546_v1, 0.0  ;;  %v3294_v41 = vadd.f32 %v3236_v29, %v3197_v57  ;;  %v2834_v32 = vadd.f32 %v6458_v5, %v2689_v40  ;;  %v6924_v5 = vld [vmem:[#allocation30_spill] sm:$0xff] }
 0x392   : > { %v6544_v39 = vpop.permute.xlu1 %2637  ;;  %v3141_v11 = vpop.permute.xlu0 %3140 }
 0x393   : > { %3594 = vst.msk [vmem:[%s6052_s28 + $0x58] sm:$0xff] %vm2135_vm5, %v3570_v9  ;;  %v2931_v56 = vadd.f32 %v6472_v12, %v2834_v32 }
 0x396   : > { %v6550_v6 = vpop.permute.xlu1 %2782  ;;  %v3335_v48 = vpop.permute.xlu0 %3334 }
 0x397   : > { %v3394_v3 = vadd.f32 %v3335_v48, %v3293_v44  ;;  %v3053_v44 = vadd.f32 %v6142_v4, %v2931_v56 }
 0x399   : > { %v3516_v22 = vadd.f32 %v6047_v35, %v3394_v3  ;;  %v3198_v24 = vadd.f32 %v3141_v11, %v3053_v44  ;;  %v2690_v3 = vadd.f32 %v6491_v16, %v6924_v5 }
 0x39a   : > { %v6555_v53 = vpop.permute.xlu1 %2879  ;;  %v3238_v43 = vpop.permute.xlu0 %3237 }
 0x39b   : > { %v3547_v21 = vadd.f32 %v6030_v51, %v3516_v22  ;;  %v3295_v12 = vadd.f32 %v3238_v43, %v3198_v24  ;;  %v2835_v22 = vadd.f32 %v6506_v0, %v2690_v3  ;;  %v2691_v0 = vadd.f32 %v6524_v25, %v6003_v62 }
 0x39d   : > { %v3571_v27 = vmax.f32 %v3547_v21, 0.0  ;;  %v2932_v4 = vadd.f32 %v6515_v30, %v2835_v22  ;;  %v2836_v32 = vadd.f32 %v6533_v7, %v2691_v0 }
 0x39e   : > { %v3143_v54 = vpop.permute.xlu1 %3142  ;;  %v6559_v38 = vpop.permute.xlu0 %2639 }
 0x39f   : > { %3595 = vst.msk [vmem:[%s6052_s28 + $0x60] sm:$0xff] %vm2135_vm5, %v3571_v27  ;;  %v3054_v20 = vadd.f32 %v6185_v26, %v2932_v4  ;;  %v2933_v56 = vadd.f32 %v6540_v61, %v2836_v32 }
 0x3a1   : > { %v3055_v44 = vadd.f32 %v6237_v13, %v2933_v56 }
 0x3a2   : > { %v3337_v35 = vpop.permute.xlu1 %3336  ;;  %v6565_v1 = vpop.permute.xlu0 %2784 }
 0x3a3   : > { %v3395_v9 = vadd.f32 %v3337_v35, %v3294_v41  ;;  %v3199_v41 = vadd.f32 %v3143_v54, %v3054_v20 }
 0x3a5   : > { %v3517_v45 = vadd.f32 %v6128_v2, %v3395_v9 }
 0x3a6   : > { %v3240_v52 = vpop.permute.xlu1 %3239  ;;  %v6570_v46 = vpop.permute.xlu0 %2881 }
 0x3a7   : > { %v3548_v31 = vadd.f32 %v6030_v51, %v3517_v45  ;;  %v3296_v30 = vadd.f32 %v3240_v52, %v3199_v41  ;;  %v6925_v52 = vld [vmem:[#allocation33_spill] sm:$0xff] }
 0x3a8   : > { %v2692_v7 = vadd.f32 %v6544_v39, %v6925_v52 }
 0x3a9   : > { %v3572_v28 = vmax.f32 %v3548_v31, 0.0 }
 0x3aa   : > { %v6574_v48 = vpop.permute.xlu1 %2641  ;;  %v3145_v29 = vpop.permute.xlu0 %3144  ;;  %v2837_v3 = vadd.f32 %v6550_v6, %v2692_v7  ;;  %v2693_v6 = vadd.f32 %v6559_v38, %v6107_v19 }
 0x3ab   : > { %3596 = vst.msk [vmem:[%s6052_s28 + $0x68] sm:$0xff] %vm2135_vm5, %v3572_v28  ;;  %v3200_v25 = vadd.f32 %v3145_v29, %v3055_v44 }
 0x3ae   : > { %v6580_v2 = vpop.permute.xlu1 %2786  ;;  %v3339_v55 = vpop.permute.xlu0 %3338 }
 0x3af   : > { %v3396_v21 = vadd.f32 %v3339_v55, %v3295_v12  ;;  %v2934_v55 = vadd.f32 %v6555_v53, %v2837_v3 }
 0x3b1   : > { %v3518_v18 = vadd.f32 %v6147_v33, %v3396_v21  ;;  %v3056_v4 = vadd.f32 %v6280_v34, %v2934_v55 }
 0x3b2   : > { %v6585_v27 = vpop.permute.xlu1 %2883  ;;  %v3242_v11 = vpop.permute.xlu0 %3241 }
 0x3b3   : > { %v3549_v57 = vadd.f32 %v6030_v51, %v3518_v18  ;;  %v3297_v61 = vadd.f32 %v3242_v11, %v3200_v25 }
 0x3b5   : > { %v3573_v16 = vmax.f32 %v3549_v57, 0.0 }
 0x3b6   : > { %v3147_v40 = vpop.permute.xlu1 %3146  ;;  %v2644_v43 = vpop.permute.xlu0 %2643 }
 0x3b7   : > { %3597 = vst.msk [vmem:[%s6052_s28 + $0x70] sm:$0xff] %vm2135_vm5, %v3573_v16  ;;  %v3201_v20 = vadd.f32 %v3147_v40, %v3056_v4  ;;  %v6619_v40 = vld [vmem:[%s6670_s4] ss:$0 sm:$0xff] }
 0x3ba   : > { %v3341_v35 = vpop.permute.xlu1 %3340  ;;  %v2789_v33 = vpop.permute.xlu0 %2788 }
 0x3bb   : > { %v3397_v9 = vadd.f32 %v3341_v35, %v3296_v30 }
 0x3bd   : > { %v3519_v26 = vadd.f32 %v6223_v10, %v3397_v9 }
 0x3be   : > { %v3244_v45 = vpop.permute.xlu1 %3243  ;;  %v2886_v31 = vpop.permute.xlu0 %2885 }
 0x3bf   : > { %v3550_v54 = vadd.f32 %v6030_v51, %v3519_v26  ;;  %v3298_v11 = vadd.f32 %v3244_v45, %v3201_v20 }
 0x3c1   : > { %v3574_v28 = vmax.f32 %v3550_v54, 0.0 }
 0x3c2   : > { %v6598_v24 = vpop.permute.xlu1 %2645  ;;  %v3149_v62 = vpop.permute.xlu0 %3148 }
 0x3c3   : > { %3598 = vst.msk [vmem:[%s6052_s28 + $0x78] sm:$0xff] %vm2135_vm5, %v3574_v28 }
 0x3c6   : > { %v2791_v5 = vpop.permute.xlu1 %2790  ;;  %v3343_v10 = vpop.permute.xlu0 %3342 }
 0x3c7   : > { %v3398_v12 = vadd.f32 %v3343_v10, %v3297_v61 }
 0x3c9   : > { %v3520_v13 = vadd.f32 %v6242_v60, %v3398_v12  ;;  %v2838_v60 = vadd.f32 %v6565_v1, %v2693_v6 }
 0x3ca   : > { %v2888_v22 = vpop.permute.xlu1 %2887  ;;  %v3246_v21 = vpop.permute.xlu0 %3245 }
 0x3cb   : > { %v3551_v29 = vadd.f32 %v6030_v51, %v3520_v13  ;;  %v2935_v51 = vadd.f32 %v6570_v46, %v2838_v60  ;;  %v2695_v46 = vadd.f32 %v2644_v43, %v6202_v14 }
 0x3cd   : > { %v3575_v18 = vmax.f32 %v3551_v29, 0.0  ;;  %v3057_v38 = vadd.f32 %v6332_v17, %v2935_v51  ;;  %v2840_v44 = vadd.f32 %v2789_v33, %v2695_v46  ;;  %v6929_v46 = vld [vmem:[#allocation6_spill] sm:$0xff] }
 0x3ce   : > { %v3151_v57 = vpop.permute.xlu1 %3150  ;;  %v2648_v39 = vpop.permute.xlu0 %2647 }
 0x3cf   : > { %3599 = vst.msk [vmem:[%s6052_s28 + $0x80] sm:$0xff] %vm2135_vm5, %v3575_v18  ;;  %v3202_v1 = vadd.f32 %v3149_v62, %v3057_v38  ;;  %v2937_v25 = vadd.f32 %v2886_v31, %v2840_v44  ;;  %v2697_v14 = vadd.f32 %v2648_v39, %v6297_v42  ;;  %v6928_v38 = vld [vmem:[#allocation36_spill] sm:$0xff] }
 0x3d1   : > { %v3299_v56 = vadd.f32 %v3246_v21, %v3202_v1 }
 0x3d2   : > { %v3345_v53 = vpop.permute.xlu1 %3344  ;;  %v2793_v16 = vpop.permute.xlu0 %2792 }
 0x3d3   : > { %v3399_v41 = vadd.f32 %v3345_v53, %v3298_v11  ;;  %v2842_v3 = vadd.f32 %v2793_v16, %v2697_v14  ;;  %v6927_v53 = vld [vmem:[#allocation35_spill] sm:$0xff] }
 0x3d5   : > { %v3521_v34 = vadd.f32 %v6318_v15, %v3399_v41  ;;  %v2694_v15 = vadd.f32 %v6574_v48, %v6149_v59  ;;  %v3059_v48 = vadd.f32 %v6428_v47, %v2937_v25 }
 0x3d6   : > { %v3248_v0 = vpop.permute.xlu1 %3247  ;;  %v2890_v30 = vpop.permute.xlu0 %2889 }
 0x3d7   : > { %v3552_v19 = vadd.f32 %v6619_v40, %v3521_v34  ;;  %v2839_v54 = vadd.f32 %v6580_v2, %v2694_v15  ;;  %v2939_v31 = vadd.f32 %v2890_v30, %v2842_v3 }
 0x3d9   : > { %v3576_v35 = vmax.f32 %v3552_v19, 0.0  ;;  %v2936_v17 = vadd.f32 %v6585_v27, %v2839_v54  ;;  %v3061_v4 = vadd.f32 %v6484_v50, %v2939_v31 }
 0x3da   : > { %v2650_v32 = vpop.permute.xlu1 %2649  ;;  %v3153_v9 = vpop.permute.xlu0 %3152 }
 0x3db   : > { %3600 = vst.msk [vmem:[%s6052_s28 + $0x88] sm:$0xff] %vm2135_vm5, %v3576_v35  ;;  %v3058_v59 = vadd.f32 %v6377_v63, %v2936_v17  ;;  %v3204_v12 = vadd.f32 %v3153_v9, %v3059_v48  ;;  %v2698_v16 = vadd.f32 %v2650_v32, %v6927_v53 }
 0x3dd   : > { %v3203_v10 = vadd.f32 %v3151_v57, %v3058_v59  ;;  %v6926_v57 = vld [vmem:[#allocation27_spill] sm:$0xff] }
 0x3de   : > { %v2795_v26 = vpop.permute.xlu1 %2794  ;;  %v3347_v45 = vpop.permute.xlu0 %3346 }
 0x3df   : > { %v3400_v28 = vadd.f32 %v3347_v45, %v3299_v56  ;;  %v3300_v27 = vadd.f32 %v3248_v0, %v3203_v10  ;;  %v2843_v51 = vadd.f32 %v2795_v26, %v2698_v16 }
 0x3e1   : > { %v3522_v62 = vadd.f32 %v6335_v36, %v3400_v28  ;;  %v2696_v36 = vadd.f32 %v6598_v24, %v6244_v8 }
 0x3e2   : > { %v2892_v52 = vpop.permute.xlu1 %2891  ;;  %v3250_v7 = vpop.permute.xlu0 %3249 }
 0x3e3   : > { %v3553_v61 = vadd.f32 %v6619_v40, %v3522_v62  ;;  %v3301_v55 = vadd.f32 %v3250_v7, %v3204_v12  ;;  %v2841_v13 = vadd.f32 %v2791_v5, %v2696_v36  ;;  %v2940_v30 = vadd.f32 %v2892_v52, %v2843_v51 }
 0x3e5   : > { %v3577_v43 = vmax.f32 %v3553_v61, 0.0  ;;  %v2938_v47 = vadd.f32 %v2888_v22, %v2841_v13  ;;  %v3062_v1 = vadd.f32 %v6519_v23, %v2940_v30 }
 0x3e6   : > { %v3155_v2 = vpop.permute.xlu1 %3154  ;;  %v3157_v33 = vpop.permute.xlu0 %3156 }
 0x3e7   : > { %3601 = vst.msk [vmem:[%s6052_s28 + $0x90] sm:$0xff] %vm2135_vm5, %v3577_v43  ;;  %v3206_v8 = vadd.f32 %v3157_v33, %v3061_v4  ;;  %v3060_v11 = vadd.f32 %v6481_v37, %v2938_v47 }
 0x3e9   : > { %v3205_v34 = vadd.f32 %v3155_v2, %v3060_v11 }
 0x3ea   : > { %v3349_v63 = vpop.permute.xlu1 %3348  ;;  %v3351_v21 = vpop.permute.xlu0 %3350 }
 0x3eb   : > { %v3401_v42 = vadd.f32 %v3349_v63, %v3300_v27  ;;  %v3402_v29 = vadd.f32 %v3351_v21, %v3301_v55 }
 0x3ed   : > { %v3523_v18 = vadd.f32 %v6395_v58, %v3401_v42  ;;  %v3524_v39 = vadd.f32 %v6926_v57, %v3402_v29 }
 0x3ee   : > { %v3252_v20 = vpop.permute.xlu1 %3251  ;;  %v3254_v6 = vpop.permute.xlu0 %3253 }
 0x3ef   : > { %v3554_v24 = vadd.f32 %v6619_v40, %v3523_v18  ;;  %v3555_v5 = vadd.f32 %v6619_v40, %v3524_v39  ;;  %v3303_v50 = vadd.f32 %v3254_v6, %v3206_v8  ;;  %v3302_v19 = vadd.f32 %v3252_v20, %v3205_v34 }
 0x3f1   : > { %v3578_v22 = vmax.f32 %v3554_v24, 0.0  ;;  %v3579_v60 = vmax.f32 %v3555_v5, 0.0 }
 0x3f2   : > { %v3159_v41 = vpop.permute.xlu1 %3158  ;;  %v3355_v58 = vpop.permute.xlu0 %3354 }
 0x3f3   : > { %3602 = vst.msk [vmem:[%s6052_s28 + $0x98] sm:$0xff] %vm2135_vm5, %v3578_v22  ;;  %3603 = vst.msk [vmem:[%s6052_s28 + $0xa0] sm:$0xff] %vm2135_vm5, %v3579_v60  ;;  %v3404_v0 = vadd.f32 %v3355_v58, %v3303_v50  ;;  %v3207_v45 = vadd.f32 %v3159_v41, %v3062_v1 }
 0x3f5   : > { %v3526_v37 = vadd.f32 %v6928_v38, %v3404_v0 }
 0x3f6   : > { %v3353_v35 = vpop.permute.xlu1 %3352 }
 0x3f7   : > { %v3557_v32 = vadd.f32 %v6619_v40, %v3526_v37  ;;  %v3403_v9 = vadd.f32 %v3353_v35, %v3302_v19 }
 0x3f9   : > { %v3581_v15 = vmax.f32 %v3557_v32, 0.0  ;;  %v3525_v56 = vadd.f32 %v6929_v46, %v3403_v9 }
 0x3fa   : > { %v3256_v26 = vpop.permute.xlu1 %3255 }
 0x3fb   : > { %3605 = vst.msk [vmem:[%s6052_s28 + $0xb0] sm:$0xff] %vm2135_vm5, %v3581_v15  ;;  %v3556_v54 = vadd.f32 %v6619_v40, %v3525_v56  ;;  %v3304_v28 = vadd.f32 %v3256_v26, %v3207_v45 }
 0x3fd   : > { %v3580_v44 = vmax.f32 %v3556_v54, 0.0 }
 0x3fe   : > { %v3357_v17 = vpop.permute.xlu1 %3356 }
 0x3ff   : > { %3604 = vst.msk [vmem:[%s6052_s28 + $0xa8] sm:$0xff] %vm2135_vm5, %v3580_v44  ;;  %v3405_v25 = vadd.f32 %v3357_v17, %v3304_v28 }
 0x401   : > { %v3527_v62 = vadd.f32 %v6475_v49, %v3405_v25 }
 0x403   : > { %v3558_v52 = vadd.f32 %v6619_v40, %v3527_v62 }
 0x405   : > { %v3582_v23 = vmax.f32 %v3558_v52, 0.0 }
 0x407   : > { %3606 = vst.msk [vmem:[%s6052_s28 + $0xb8] sm:$0xff] %vm2135_vm5, %v3582_v23 }
 0x408 PF: > { %s15_s18 = sadd.s32 1, %s3985_s18  }
 0x409   : > { %p12_p4 = scmp.ge.s32.totalorder %s15_s18, 4  }
 0x40b   :  { %14 = sbr.rel (!%p12_p4) target bundleno = 1 (0x1), region = 70 }

</bundles_post_ra>
